<compile_context>
chip_gen: v7x
topology: tpu7x:2x2x1
jax: 0.10.0
libtpu: 0.0.40
codegen_flags: <defaults>
</compile_context>

<pallas_src>
import functools

import jax
import jax.numpy as jnp
from jax.experimental import pallas as pl
from jax.experimental.pallas import tpu as pltpu


def _round_up(x, m):
    return (x + m - 1) // m * m


# ----------------------------------------------------------------------------
# Fused kernel
# ----------------------------------------------------------------------------
def _fused_dqn_kernel(pts_ref, w1_ref, b1_ref, w2_ref, b2_ref, w3_ref, b3_ref,
                      wh1_ref, bh1_ref, wh2_ref, bh2_ref,
                      o_ref,
                      h1_ref, p2_ref, h2_ref, p3_ref,
                      *, batch, n_actions, gp, g1, nj, k2, g2, k3, g3,
                      c1, c2, pos_offsets):
    f32, bf16 = jnp.float32, jnp.bfloat16

    # ---- conv1: one GEMM over the prebuilt parity-split patch matrix --------
    # (w1's columns replicate the c1 output channels 128//c1 times across the
    #  lanes so conv2's lane-packing below is a pure select, no rolls.)
    h1 = jnp.dot(pts_ref[...], w1_ref[...], preferred_element_type=f32)
    h1_ref[...] = jnp.maximum(h1 + b1_ref[...], 0.0).astype(bf16)

    # ---- conv2: tap-packed patch assembly + one dense-K GEMM ----------------
    # dest row r (= oh*nj + ow) of batch b reads h1 row (tap base + r), so one
    # contiguous g2-row slab per (lane-group, batch) covers all output rows.
    tpg2 = 128 // c1                        # taps per 128-lane group
    ngrp2 = (k2 * k2) // tpg2               # lane groups
    lane2 = jax.lax.broadcasted_iota(jnp.int32, (g2, 128), 1)
    taps2 = [(kh, kw) for kh in range(k2) for kw in range(k2)]
    for b in range(batch):
        for g in range(ngrp2):
            slabs = []
            for j in range(tpg2):
                kh, kw = taps2[g * tpg2 + j]
                src = (b * g1 + (kh % 2) * 2 * gp + (kw % 2) * gp
                       + (kh // 2) * nj + (kw // 2))
                slabs.append(h1_ref[pl.ds(src, g2), :])
            packed = slabs[-1]
            for j in range(tpg2 - 2, -1, -1):
                packed = jnp.where(lane2 < (j + 1) * c1, slabs[j], packed)
            p2_ref[pl.ds(b * g2, g2), pl.ds(g * 128, 128)] = packed

    h2 = jnp.dot(p2_ref[...], w2_ref[...], preferred_element_type=f32)
    h2_ref[...] = jnp.maximum(h2 + b2_ref[...], 0.0).astype(bf16)

    # ---- conv3 (stride 1): same trick, 2 taps x 64 ch per lane group --------
    tpg3 = 128 // c2
    ngrp3 = -(-(k3 * k3) // tpg3)
    lane3 = jax.lax.broadcasted_iota(jnp.int32, (g3, 128), 1)
    taps3 = [(kh, kw) for kh in range(k3) for kw in range(k3)]
    for b in range(batch):
        for g in range(ngrp3):
            grp = taps3[g * tpg3:(g + 1) * tpg3]
            slabs = []
            for kh, kw in grp:
                src = b * g2 + kh * nj + kw
                slabs.append(h2_ref[pl.ds(src, g3), :])
            packed = slabs[-1]
            for j in range(len(grp) - 2, -1, -1):
                packed = jnp.where(lane3 < (j + 1) * c2, slabs[j], packed)
            p3_ref[pl.ds(b * g3, g3), pl.ds(g * 128, 128)] = packed

    h3 = jnp.dot(p3_ref[...], w3_ref[...], preferred_element_type=f32)
    h3 = jnp.maximum(h3 + b3_ref[...], 0.0)          # (batch*g3, 128) value

    # ---- dueling head: L1 as accumulation over conv3 spatial positions ------
    hm = None
    for idx, p in enumerate(pos_offsets):
        lhs = jnp.concatenate(
            [h3[b * g3 + p:b * g3 + p + 1, :] for b in range(batch)], axis=0)
        term = jnp.dot(lhs.astype(bf16), wh1_ref[pl.ds(idx * 128, 128), :],
                       preferred_element_type=f32)
        hm = term if hm is None else hm + term
    hm = jnp.maximum(hm + bh1_ref[...], 0.0)          # (batch, 1024) = [val|adv]

    y = jnp.dot(hm.astype(bf16), wh2_ref[...], preferred_element_type=f32)
    y = y + bh2_ref[...]                              # (batch, 128): 0=V, 1..=A
    v = y[:, 0:1]
    a = y[:, 1:1 + n_actions]
    # q = value + advantage - advantage.mean(dim=1, keepdim=True)
    o_ref[...] = v + a - jnp.mean(a, axis=1, keepdims=True)


# ----------------------------------------------------------------------------
# Wrapper-side glue (conv1 patch gather + parameter packing)
# ----------------------------------------------------------------------------
def _im2col_nchw(x, kh, kw, stride):
    """x:(N,C,H,W) -> patches (N, OH, OW, C*KH*KW), K ordered (c, kh, kw)."""
    n, c, h, w = x.shape
    oh = (h - kh) // stride + 1
    ow = (w - kw) // stride + 1
    cols = []
    for i in range(kh):
        for j in range(kw):
            cols.append(x[:, :, i:i + stride * oh:stride, j:j + stride * ow:stride])
    p = jnp.stack(cols, axis=2)                  # (n, c, kh*kw, oh, ow)
    p = p.reshape(n, c * kh * kw, oh, ow)        # K index = c*KH*KW + kh*KW + kw
    return p.transpose(0, 2, 3, 1), oh, ow       # (n, oh, ow, K)


def _pack_params(p, n_actions, oh3, ow3, kdim_pad):
    """Pad / reorder / cast PyTorch-layout weights into the lane-packed,
    bf16 matrices the fused kernel expects (pure parameter glue)."""
    f32, bf16 = jnp.float32, jnp.bfloat16
    c1 = p["w1"].shape[0]
    c2 = p["w2"].shape[0]
    c3 = p["w3"].shape[0]
    rep1 = 128 // c1
    rep2 = 128 // c2

    # conv1: K ordered (c, kh, kw); output channels replicated rep1x over lanes.
    w1 = p["w1"].reshape(c1, -1).T
    w1 = jnp.pad(w1, ((0, kdim_pad - w1.shape[0]), (0, 0)))
    w1 = jnp.concatenate([w1] * rep1, axis=1).astype(bf16)          # (K', 128)
    b1 = jnp.concatenate([p["b1"]] * rep1).reshape(1, 128).astype(f32)

    # conv2: K rows ordered (tap, in-ch) -> matches the tap-packed lane groups;
    # output channels replicated rep2x for conv3's lane packing.
    kk2 = p["w2"].shape[2] * p["w2"].shape[3]
    w2 = jnp.transpose(p["w2"], (2, 3, 1, 0)).reshape(kk2 * c1, c2)
    w2 = jnp.concatenate([w2] * rep2, axis=1).astype(bf16)          # (512, 128)
    b2 = jnp.concatenate([p["b2"]] * rep2).reshape(1, 128).astype(f32)

    # conv3: K rows (tap, in-ch), taps padded to a multiple of rep2 with zeros.
    kk3 = p["w3"].shape[2] * p["w3"].shape[3]
    ntap3 = _round_up(kk3, rep2)
    w3 = jnp.transpose(p["w3"], (2, 3, 1, 0)).reshape(kk3, c2, c3)
    w3 = jnp.pad(w3, ((0, ntap3 - kk3), (0, 0), (0, 0))).reshape(ntap3 * c2, c3)
    w3 = jnp.pad(w3, ((0, 0), (0, 128 - c3))).astype(bf16)          # (640, 128)
    b3 = jnp.pad(p["b3"], (0, 128 - c3)).reshape(1, 128).astype(f32)

    # head L1: one (128, 1024) block per conv3 spatial position; columns are
    # [value hidden (512) | advantage hidden (512)].  PyTorch flatten order is
    # feature = c*(oh3*ow3) + pos, hence the reshape/transpose below.
    npos = oh3 * ow3

    def head_l1(w):                                      # (512, c3*npos)
        n = w.shape[0]
        wr = w.reshape(n, c3, npos).transpose(2, 1, 0)   # (npos, c3, n)
        return jnp.pad(wr, ((0, 0), (0, 128 - c3), (0, 0)))

    wh1 = jnp.concatenate([head_l1(p["wv1"]), head_l1(p["wa1"])], axis=2)
    wh1 = wh1.reshape(npos * 128, -1).astype(bf16)                  # (512, 1024)
    bh1 = jnp.concatenate([p["bv1"], p["ba1"]]).reshape(1, -1).astype(f32)

    # head L2 folded into one (1024, 128) GEMM: col 0 = V, cols 1..A = advantage.
    hdim = p["wv2"].shape[1]
    col_v = jnp.concatenate([p["wv2"].T, jnp.zeros((hdim, 1), f32)], axis=0)
    cols_a = jnp.concatenate([jnp.zeros((hdim, n_actions), f32), p["wa2"].T],
                             axis=0)
    pad_c = jnp.zeros((2 * hdim, 128 - 1 - n_actions), f32)
    wh2 = jnp.concatenate([col_v, cols_a, pad_c], axis=1).astype(bf16)
    bh2 = jnp.concatenate([p["bv2"], p["ba2"],
                           jnp.zeros((128 - 1 - n_actions,), f32)]
                          ).reshape(1, 128).astype(f32)

    return dict(w1=w1, b1=b1, w2=w2, b2=b2, w3=w3, b3=b3,
                wh1=wh1, bh1=bh1, wh2=wh2, bh2=bh2)


def dueling_dqn_forward(x, params):
    """Forward pass of DuelingDQN (NOISY_NET=False / eval-path linear layers)."""
    B = x.shape[0]
    n_actions = params["wa2"].shape[0]
    c1, c2, c3 = (params["w1"].shape[0], params["w2"].shape[0],
                  params["w3"].shape[0])
    k2, k3 = params["w2"].shape[2], params["w3"].shape[2]
    assert 128 % c1 == 0 and 128 % c2 == 0 and c3 <= 128
    assert (k2 * k2) % (128 // c1) == 0
    assert n_actions + 1 <= 128

    # conv1 im2col: the only XLA-side gather, on the raw HBM input; everything
    # downstream stays in VMEM inside the fused kernel.
    pts, oh1, ow1 = _im2col_nchw(x, params["w1"].shape[2],
                                 params["w1"].shape[3], 4)
    kdim = pts.shape[-1]
    kdim_pad = _round_up(kdim, 128)
    assert oh1 % 2 == 0 and ow1 % 2 == 0          # conv2 stride == 2
    ni, nj = oh1 // 2, ow1 // 2

    oh2, ow2 = (oh1 - k2) // 2 + 1, (ow1 - k2) // 2 + 1
    oh3, ow3 = oh2 - k3 + 1, ow2 - k3 + 1
    assert oh3 >= 1 and ow3 >= 1 and ow2 <= nj

    gp = _round_up(ni * nj, 8)                    # padded rows / parity group
    g1 = 4 * gp                                   # h1 rows per batch
    g2 = _round_up((oh2 - 1) * nj + ow2, 8)       # h2 rows per batch
    g3 = _round_up((oh3 - 1) * nj + ow3, 8)       # h3 rows per batch
    # every in-kernel slab read must land inside the region that was written:
    assert ((k2 - 1) // 2) * nj + (k2 - 1) // 2 + g2 <= gp
    assert (k3 - 1) * nj + (k3 - 1) + g3 <= g2
    pos_offsets = tuple(oh * nj + ow for oh in range(oh3) for ow in range(ow3))

    # parity-split + group-pad the conv1 patch rows: (b, h%2, w%2, h//2, w//2),
    # each (b, h%2, w%2) group padded to `gp` rows -> 8-aligned group bases.
    pts = pts.reshape(B, ni, 2, nj, 2, kdim).transpose(0, 2, 4, 1, 3, 5)
    pts = pts.reshape(B, 2, 2, ni * nj, kdim)
    pts = jnp.pad(pts, ((0, 0), (0, 0), (0, 0),
                        (0, gp - ni * nj), (0, kdim_pad - kdim)))
    pts = pts.reshape(B * g1, kdim_pad).astype(jnp.bfloat16)

    pk = _pack_params(params, n_actions, oh3, ow3, kdim_pad)

    ngrp2 = (k2 * k2 * c1) // 128
    ngrp3 = -(-(k3 * k3) // (128 // c2))
    npos = oh3 * ow3

    args = (pts, pk["w1"], pk["b1"], pk["w2"], pk["b2"], pk["w3"], pk["b3"],
            pk["wh1"], pk["bh1"], pk["wh2"], pk["bh2"])

    flops = 2 * (B * g1 * kdim_pad * 128
                 + B * g2 * (ngrp2 * 128) * 128
                 + B * g3 * (ngrp3 * 128) * 128
                 + B * npos * 128 * pk["wh1"].shape[1]
                 + B * pk["wh2"].shape[0] * pk["wh2"].shape[1])
    bytes_accessed = (sum(int(a.size) * a.dtype.itemsize for a in args)
                      + B * n_actions * 4)

    kernel = functools.partial(
        _fused_dqn_kernel, batch=B, n_actions=n_actions,
        gp=gp, g1=g1, nj=nj, k2=k2, g2=g2, k3=k3, g3=g3,
        c1=c1, c2=c2, pos_offsets=pos_offsets)

    # Gridless call: whole-array VMEM residency -> no double-buffering of the
    # ~1.5 MiB of weights (nothing to pipeline with a single invocation).
    return pl.pallas_call(
        kernel,
        out_shape=jax.ShapeDtypeStruct((B, n_actions), jnp.float32),
        in_specs=[pl.BlockSpec(memory_space=pltpu.MemorySpace.VMEM)
                  for _ in args],
        out_specs=pl.BlockSpec(memory_space=pltpu.MemorySpace.VMEM),
        scratch_shapes=[
            pltpu.VMEM((B * g1, 128), jnp.bfloat16),            # h1 (bf16)
            pltpu.VMEM((B * g2, ngrp2 * 128), jnp.bfloat16),    # p2 (tap-packed)
            pltpu.VMEM((B * g2, 128), jnp.bfloat16),            # h2 (bf16)
            pltpu.VMEM((B * g3, ngrp3 * 128), jnp.bfloat16),    # p3 (tap-packed)
        ],
        cost_estimate=pl.CostEstimate(flops=flops, transcendentals=0,
                                      bytes_accessed=bytes_accessed),
    )(*args)


# ----------------------------------------------------------------------------
# Pure-JAX reference (mirrors the PyTorch module, f32) for self-check
# ----------------------------------------------------------------------------
def _reference_forward(x, p):
    dn = ("NCHW", "OIHW", "NCHW")
    h = x
    for w, b, s in ((p["w1"], p["b1"], 4), (p["w2"], p["b2"], 2),
                    (p["w3"], p["b3"], 1)):
        h = jax.lax.conv_general_dilated(h, w, (s, s), "VALID",
                                         dimension_numbers=dn)
        h = jnp.maximum(h + b.reshape(1, -1, 1, 1), 0.0)
    flat = h.reshape(x.shape[0], -1)
    vh = jnp.maximum(flat @ p["wv1"].T + p["bv1"], 0.0)
    v = vh @ p["wv2"].T + p["bv2"]
    ah = jnp.maximum(flat @ p["wa1"].T + p["ba1"], 0.0)
    a = ah @ p["wa2"].T + p["ba2"]
    return v + a - jnp.mean(a, axis=1, keepdims=True)


# ----------------------------------------------------------------------------
# Deterministic parameter init (PyTorch-style uniform(+-1/sqrt(fan_in)))
# ----------------------------------------------------------------------------
def make_params(key, in_ch, n_actions, conv_out):
    ks = jax.random.split(key, 14)

    def u(k, shape, fan_in):
        bound = 1.0 / (fan_in ** 0.5)
        return jax.random.uniform(k, shape, jnp.float32, -bound, bound)

    p = {}
    p["w1"] = u(ks[0], (32, in_ch, 8, 8), in_ch * 8 * 8)
    p["b1"] = u(ks[1], (32,), in_ch * 8 * 8)
    p["w2"] = u(ks[2], (64, 32, 4, 4), 32 * 4 * 4)
    p["b2"] = u(ks[3], (64,), 32 * 4 * 4)
    p["w3"] = u(ks[4], (64, 64, 3, 3), 64 * 3 * 3)
    p["b3"] = u(ks[5], (64,), 64 * 3 * 3)
    p["wv1"] = u(ks[6], (512, conv_out), conv_out)
    p["bv1"] = u(ks[7], (512,), conv_out)
    p["wv2"] = u(ks[8], (1, 512), 512)
    p["bv2"] = u(ks[9], (1,), 512)
    p["wa1"] = u(ks[10], (512, conv_out), conv_out)
    p["ba1"] = u(ks[11], (512,), conv_out)
    p["wa2"] = u(ks[12], (n_actions, 512), 512)
    p["ba2"] = u(ks[13], (n_actions,), 512)
    return p


# ----------------------------------------------------------------------------
if __name__ == "__main__":
    key = jax.random.PRNGKey(0)
    k_x, k_p = jax.random.split(key)

    # input_shape = (4, 44, 44):  44 -> conv1(8,s4) -> 10 -> conv2(4,s2) -> 4
    #                             -> conv3(3,s1) -> 2  => conv_out = 64*2*2 = 256
    B, C, H, W = 2, 4, 44, 44
    n_actions = 6
    conv_out = 64 * 2 * 2

    x = jax.random.normal(k_x, (B, C, H, W), dtype=jnp.float32)
    params = make_params(k_p, C, n_actions, conv_out)

    q = jax.block_until_ready(jax.jit(dueling_dqn_forward)(x, params))
    q_ref = jax.block_until_ready(jax.jit(_reference_forward)(x, params))

    assert q.shape == (B, n_actions), q.shape
    assert bool(jnp.all(jnp.isfinite(q)))
    # bf16 MXU operands vs f32 reference -> loose tolerance is expected.
    max_err = float(jnp.max(jnp.abs(q - q_ref)))
    assert max_err < 3e-2, f"kernel/reference mismatch: {max_err}"
    print("KERNEL_OK")
</pallas_src>

<mosaic_0001>
module attributes {stable_mosaic.version = 11 : i64} {
  func.func @_fused_dqn_kernel(%arg0: memref<256x256xbf16, #tpu.memory_space<vmem>>, %arg1: memref<256x128xbf16, #tpu.memory_space<vmem>>, %arg2: memref<1x128xf32, #tpu.memory_space<vmem>>, %arg3: memref<512x128xbf16, #tpu.memory_space<vmem>>, %arg4: memref<1x128xf32, #tpu.memory_space<vmem>>, %arg5: memref<640x128xbf16, #tpu.memory_space<vmem>>, %arg6: memref<1x128xf32, #tpu.memory_space<vmem>>, %arg7: memref<512x1024xbf16, #tpu.memory_space<vmem>>, %arg8: memref<1x1024xf32, #tpu.memory_space<vmem>>, %arg9: memref<1024x128xbf16, #tpu.memory_space<vmem>>, %arg10: memref<1x128xf32, #tpu.memory_space<vmem>>, %arg11: memref<2x6xf32, #tpu.memory_space<vmem>>, %arg12: memref<256x128xbf16, #tpu.memory_space<vmem>>, %arg13: memref<48x512xbf16, #tpu.memory_space<vmem>>, %arg14: memref<48x128xbf16, #tpu.memory_space<vmem>>, %arg15: memref<16x640xbf16, #tpu.memory_space<vmem>>) attributes {dimension_semantics = [], scalar_prefetch = 0 : i64, scratch_operands = 4 : i64, tpu.core_type = #tpu.core_type<tc>} {
    %c0 = arith.constant 0 : index
    %c0_0 = arith.constant 0 : index
    %0 = vector.load %arg0[%c0, %c0_0] : memref<256x256xbf16, #tpu.memory_space<vmem>>, vector<256x256xbf16>
    %c0_1 = arith.constant 0 : index
    %c0_2 = arith.constant 0 : index
    %1 = vector.load %arg1[%c0_1, %c0_2] : memref<256x128xbf16, #tpu.memory_space<vmem>>, vector<256x128xbf16>
    %cst = arith.constant dense<0.000000e+00> : vector<256x128xf32>
    %2 = tpu.matmul %0, %1, %cst {dimension_numbers = #tpu.dot_dimension_numbers<[1], [0], [0], [1], [0, 0, 1, 1], [], []>} : vector<256x256xbf16>, vector<256x128xbf16>, vector<256x128xf32> -> vector<256x128xf32>
    %c0_3 = arith.constant 0 : index
    %c0_4 = arith.constant 0 : index
    %3 = vector.load %arg2[%c0_3, %c0_4] : memref<1x128xf32, #tpu.memory_space<vmem>>, vector<1x128xf32>
    %4 = vector.broadcast %3 : vector<1x128xf32> to vector<256x128xf32>
    %5 = arith.addf %2, %4 : vector<256x128xf32>
    %cst_5 = arith.constant 0.000000e+00 : f32
    %6 = vector.broadcast %cst_5 : f32 to vector<256x128xf32>
    %7 = arith.maximumf %5, %6 : vector<256x128xf32>
    %8 = arith.truncf %7 : vector<256x128xf32> to vector<256x128xbf16>
    %c0_6 = arith.constant 0 : index
    %c0_7 = arith.constant 0 : index
    %9 = vector.load %arg12[%c0_6, %c0_7] : memref<256x128xbf16, #tpu.memory_space<vmem>>, vector<256x128xbf16>
    tpu.vector_store %arg12[%c0_6, %c0_7], %8 {strides = array<i32>} : memref<256x128xbf16, #tpu.memory_space<vmem>>, vector<256x128xbf16>,
    %10 = tpu.iota {dimensions = array<i32: 1>} : vector<24x128xi32>
    %c0_8 = arith.constant 0 : index
    %c0_9 = arith.constant 0 : index
    %11 = vector.load %arg12[%c0_8, %c0_9] : memref<256x128xbf16, #tpu.memory_space<vmem>>, vector<24x128xbf16>
    %c32 = arith.constant 32 : index
    %c0_10 = arith.constant 0 : index
    %12 = vector.load %arg12[%c32, %c0_10] : memref<256x128xbf16, #tpu.memory_space<vmem>>, vector<24x128xbf16>
    %c1 = arith.constant 1 : index
    %c0_11 = arith.constant 0 : index
    %13 = vector.load %arg12[%c1, %c0_11] : memref<256x128xbf16, #tpu.memory_space<vmem>>, vector<24x128xbf16>
    %c33 = arith.constant 33 : index
    %c0_12 = arith.constant 0 : index
    %14 = vector.load %arg12[%c33, %c0_12] : memref<256x128xbf16, #tpu.memory_space<vmem>>, vector<24x128xbf16>
    %c96_i32 = arith.constant 96 : i32
    %15 = vector.broadcast %c96_i32 : i32 to vector<24x128xi32>
    %16 = arith.cmpi slt, %10, %15 : vector<24x128xi32>
    %17 = arith.select %16, %13, %14 : vector<24x128xi1>, vector<24x128xbf16>
    %c64_i32 = arith.constant 64 : i32
    %18 = vector.broadcast %c64_i32 : i32 to vector<24x128xi32>
    %19 = arith.cmpi slt, %10, %18 : vector<24x128xi32>
    %20 = arith.select %19, %12, %17 : vector<24x128xi1>, vector<24x128xbf16>
    %c32_i32 = arith.constant 32 : i32
    %21 = vector.broadcast %c32_i32 : i32 to vector<24x128xi32>
    %22 = arith.cmpi slt, %10, %21 : vector<24x128xi32>
    %23 = arith.select %22, %11, %20 : vector<24x128xi1>, vector<24x128xbf16>
    %c0_13 = arith.constant 0 : index
    %c0_14 = arith.constant 0 : index
    %24 = vector.load %arg13[%c0_13, %c0_14] : memref<48x512xbf16, #tpu.memory_space<vmem>>, vector<24x128xbf16>
    tpu.vector_store %arg13[%c0_13, %c0_14], %23 {strides = array<i32>} : memref<48x512xbf16, #tpu.memory_space<vmem>>, vector<24x128xbf16>,
    %c64 = arith.constant 64 : index
    %c0_15 = arith.constant 0 : index
    %25 = vector.load %arg12[%c64, %c0_15] : memref<256x128xbf16, #tpu.memory_space<vmem>>, vector<24x128xbf16>
    %c96 = arith.constant 96 : index
    %c0_16 = arith.constant 0 : index
    %26 = vector.load %arg12[%c96, %c0_16] : memref<256x128xbf16, #tpu.memory_space<vmem>>, vector<24x128xbf16>
    %c65 = arith.constant 65 : index
    %c0_17 = arith.constant 0 : index
    %27 = vector.load %arg12[%c65, %c0_17] : memref<256x128xbf16, #tpu.memory_space<vmem>>, vector<24x128xbf16>
    %c97 = arith.constant 97 : index
    %c0_18 = arith.constant 0 : index
    %28 = vector.load %arg12[%c97, %c0_18] : memref<256x128xbf16, #tpu.memory_space<vmem>>, vector<24x128xbf16>
    %c96_i32_19 = arith.constant 96 : i32
    %29 = vector.broadcast %c96_i32_19 : i32 to vector<24x128xi32>
    %30 = arith.cmpi slt, %10, %29 : vector<24x128xi32>
    %31 = arith.select %30, %27, %28 : vector<24x128xi1>, vector<24x128xbf16>
    %c64_i32_20 = arith.constant 64 : i32
    %32 = vector.broadcast %c64_i32_20 : i32 to vector<24x128xi32>
    %33 = arith.cmpi slt, %10, %32 : vector<24x128xi32>
    %34 = arith.select %33, %26, %31 : vector<24x128xi1>, vector<24x128xbf16>
    %c32_i32_21 = arith.constant 32 : i32
    %35 = vector.broadcast %c32_i32_21 : i32 to vector<24x128xi32>
    %36 = arith.cmpi slt, %10, %35 : vector<24x128xi32>
    %37 = arith.select %36, %25, %34 : vector<24x128xi1>, vector<24x128xbf16>
    %c0_22 = arith.constant 0 : index
    %c128 = arith.constant 128 : index
    %38 = vector.load %arg13[%c0_22, %c128] : memref<48x512xbf16, #tpu.memory_space<vmem>>, vector<24x128xbf16>
    tpu.vector_store %arg13[%c0_22, %c128], %37 {strides = array<i32>} : memref<48x512xbf16, #tpu.memory_space<vmem>>, vector<24x128xbf16>,
    %c5 = arith.constant 5 : index
    %c0_23 = arith.constant 0 : index
    %39 = vector.load %arg12[%c5, %c0_23] : memref<256x128xbf16, #tpu.memory_space<vmem>>, vector<24x128xbf16>
    %c37 = arith.constant 37 : index
    %c0_24 = arith.constant 0 : index
    %40 = vector.load %arg12[%c37, %c0_24] : memref<256x128xbf16, #tpu.memory_space<vmem>>, vector<24x128xbf16>
    %c6 = arith.constant 6 : index
    %c0_25 = arith.constant 0 : index
    %41 = vector.load %arg12[%c6, %c0_25] : memref<256x128xbf16, #tpu.memory_space<vmem>>, vector<24x128xbf16>
    %c38 = arith.constant 38 : index
    %c0_26 = arith.constant 0 : index
    %42 = vector.load %arg12[%c38, %c0_26] : memref<256x128xbf16, #tpu.memory_space<vmem>>, vector<24x128xbf16>
    %c96_i32_27 = arith.constant 96 : i32
    %43 = vector.broadcast %c96_i32_27 : i32 to vector<24x128xi32>
    %44 = arith.cmpi slt, %10, %43 : vector<24x128xi32>
    %45 = arith.select %44, %41, %42 : vector<24x128xi1>, vector<24x128xbf16>
    %c64_i32_28 = arith.constant 64 : i32
    %46 = vector.broadcast %c64_i32_28 : i32 to vector<24x128xi32>
    %47 = arith.cmpi slt, %10, %46 : vector<24x128xi32>
    %48 = arith.select %47, %40, %45 : vector<24x128xi1>, vector<24x128xbf16>
    %c32_i32_29 = arith.constant 32 : i32
    %49 = vector.broadcast %c32_i32_29 : i32 to vector<24x128xi32>
    %50 = arith.cmpi slt, %10, %49 : vector<24x128xi32>
    %51 = arith.select %50, %39, %48 : vector<24x128xi1>, vector<24x128xbf16>
    %c0_30 = arith.constant 0 : index
    %c256 = arith.constant 256 : index
    %52 = vector.load %arg13[%c0_30, %c256] : memref<48x512xbf16, #tpu.memory_space<vmem>>, vector<24x128xbf16>
    tpu.vector_store %arg13[%c0_30, %c256], %51 {strides = array<i32>} : memref<48x512xbf16, #tpu.memory_space<vmem>>, vector<24x128xbf16>,
    %c69 = arith.constant 69 : index
    %c0_31 = arith.constant 0 : index
    %53 = vector.load %arg12[%c69, %c0_31] : memref<256x128xbf16, #tpu.memory_space<vmem>>, vector<24x128xbf16>
    %c101 = arith.constant 101 : index
    %c0_32 = arith.constant 0 : index
    %54 = vector.load %arg12[%c101, %c0_32] : memref<256x128xbf16, #tpu.memory_space<vmem>>, vector<24x128xbf16>
    %c70 = arith.constant 70 : index
    %c0_33 = arith.constant 0 : index
    %55 = vector.load %arg12[%c70, %c0_33] : memref<256x128xbf16, #tpu.memory_space<vmem>>, vector<24x128xbf16>
    %c102 = arith.constant 102 : index
    %c0_34 = arith.constant 0 : index
    %56 = vector.load %arg12[%c102, %c0_34] : memref<256x128xbf16, #tpu.memory_space<vmem>>, vector<24x128xbf16>
    %c96_i32_35 = arith.constant 96 : i32
    %57 = vector.broadcast %c96_i32_35 : i32 to vector<24x128xi32>
    %58 = arith.cmpi slt, %10, %57 : vector<24x128xi32>
    %59 = arith.select %58, %55, %56 : vector<24x128xi1>, vector<24x128xbf16>
    %c64_i32_36 = arith.constant 64 : i32
    %60 = vector.broadcast %c64_i32_36 : i32 to vector<24x128xi32>
    %61 = arith.cmpi slt, %10, %60 : vector<24x128xi32>
    %62 = arith.select %61, %54, %59 : vector<24x128xi1>, vector<24x128xbf16>
    %c32_i32_37 = arith.constant 32 : i32
    %63 = vector.broadcast %c32_i32_37 : i32 to vector<24x128xi32>
    %64 = arith.cmpi slt, %10, %63 : vector<24x128xi32>
    %65 = arith.select %64, %53, %62 : vector<24x128xi1>, vector<24x128xbf16>
    %c0_38 = arith.constant 0 : index
    %c384 = arith.constant 384 : index
    %66 = vector.load %arg13[%c0_38, %c384] : memref<48x512xbf16, #tpu.memory_space<vmem>>, vector<24x128xbf16>
    tpu.vector_store %arg13[%c0_38, %c384], %65 {strides = array<i32>} : memref<48x512xbf16, #tpu.memory_space<vmem>>, vector<24x128xbf16>,
    %c128_39 = arith.constant 128 : index
    %c0_40 = arith.constant 0 : index
    %67 = vector.load %arg12[%c128_39, %c0_40] : memref<256x128xbf16, #tpu.memory_space<vmem>>, vector<24x128xbf16>
    %c160 = arith.constant 160 : index
    %c0_41 = arith.constant 0 : index
    %68 = vector.load %arg12[%c160, %c0_41] : memref<256x128xbf16, #tpu.memory_space<vmem>>, vector<24x128xbf16>
    %c129 = arith.constant 129 : index
    %c0_42 = arith.constant 0 : index
    %69 = vector.load %arg12[%c129, %c0_42] : memref<256x128xbf16, #tpu.memory_space<vmem>>, vector<24x128xbf16>
    %c161 = arith.constant 161 : index
    %c0_43 = arith.constant 0 : index
    %70 = vector.load %arg12[%c161, %c0_43] : memref<256x128xbf16, #tpu.memory_space<vmem>>, vector<24x128xbf16>
    %c96_i32_44 = arith.constant 96 : i32
    %71 = vector.broadcast %c96_i32_44 : i32 to vector<24x128xi32>
    %72 = arith.cmpi slt, %10, %71 : vector<24x128xi32>
    %73 = arith.select %72, %69, %70 : vector<24x128xi1>, vector<24x128xbf16>
    %c64_i32_45 = arith.constant 64 : i32
    %74 = vector.broadcast %c64_i32_45 : i32 to vector<24x128xi32>
    %75 = arith.cmpi slt, %10, %74 : vector<24x128xi32>
    %76 = arith.select %75, %68, %73 : vector<24x128xi1>, vector<24x128xbf16>
    %c32_i32_46 = arith.constant 32 : i32
    %77 = vector.broadcast %c32_i32_46 : i32 to vector<24x128xi32>
    %78 = arith.cmpi slt, %10, %77 : vector<24x128xi32>
    %79 = arith.select %78, %67, %76 : vector<24x128xi1>, vector<24x128xbf16>
    %c24 = arith.constant 24 : index
    %c0_47 = arith.constant 0 : index
    %80 = vector.load %arg13[%c24, %c0_47] : memref<48x512xbf16, #tpu.memory_space<vmem>>, vector<24x128xbf16>
    tpu.vector_store %arg13[%c24, %c0_47], %79 {strides = array<i32>} : memref<48x512xbf16, #tpu.memory_space<vmem>>, vector<24x128xbf16>,
    %c192 = arith.constant 192 : index
    %c0_48 = arith.constant 0 : index
    %81 = vector.load %arg12[%c192, %c0_48] : memref<256x128xbf16, #tpu.memory_space<vmem>>, vector<24x128xbf16>
    %c224 = arith.constant 224 : index
    %c0_49 = arith.constant 0 : index
    %82 = vector.load %arg12[%c224, %c0_49] : memref<256x128xbf16, #tpu.memory_space<vmem>>, vector<24x128xbf16>
    %c193 = arith.constant 193 : index
    %c0_50 = arith.constant 0 : index
    %83 = vector.load %arg12[%c193, %c0_50] : memref<256x128xbf16, #tpu.memory_space<vmem>>, vector<24x128xbf16>
    %c225 = arith.constant 225 : index
    %c0_51 = arith.constant 0 : index
    %84 = vector.load %arg12[%c225, %c0_51] : memref<256x128xbf16, #tpu.memory_space<vmem>>, vector<24x128xbf16>
    %c96_i32_52 = arith.constant 96 : i32
    %85 = vector.broadcast %c96_i32_52 : i32 to vector<24x128xi32>
    %86 = arith.cmpi slt, %10, %85 : vector<24x128xi32>
    %87 = arith.select %86, %83, %84 : vector<24x128xi1>, vector<24x128xbf16>
    %c64_i32_53 = arith.constant 64 : i32
    %88 = vector.broadcast %c64_i32_53 : i32 to vector<24x128xi32>
    %89 = arith.cmpi slt, %10, %88 : vector<24x128xi32>
    %90 = arith.select %89, %82, %87 : vector<24x128xi1>, vector<24x128xbf16>
    %c32_i32_54 = arith.constant 32 : i32
    %91 = vector.broadcast %c32_i32_54 : i32 to vector<24x128xi32>
    %92 = arith.cmpi slt, %10, %91 : vector<24x128xi32>
    %93 = arith.select %92, %81, %90 : vector<24x128xi1>, vector<24x128xbf16>
    %c24_55 = arith.constant 24 : index
    %c128_56 = arith.constant 128 : index
    %94 = vector.load %arg13[%c24_55, %c128_56] : memref<48x512xbf16, #tpu.memory_space<vmem>>, vector<24x128xbf16>
    tpu.vector_store %arg13[%c24_55, %c128_56], %93 {strides = array<i32>} : memref<48x512xbf16, #tpu.memory_space<vmem>>, vector<24x128xbf16>,
    %c133 = arith.constant 133 : index
    %c0_57 = arith.constant 0 : index
    %95 = vector.load %arg12[%c133, %c0_57] : memref<256x128xbf16, #tpu.memory_space<vmem>>, vector<24x128xbf16>
    %c165 = arith.constant 165 : index
    %c0_58 = arith.constant 0 : index
    %96 = vector.load %arg12[%c165, %c0_58] : memref<256x128xbf16, #tpu.memory_space<vmem>>, vector<24x128xbf16>
    %c134 = arith.constant 134 : index
    %c0_59 = arith.constant 0 : index
    %97 = vector.load %arg12[%c134, %c0_59] : memref<256x128xbf16, #tpu.memory_space<vmem>>, vector<24x128xbf16>
    %c166 = arith.constant 166 : index
    %c0_60 = arith.constant 0 : index
    %98 = vector.load %arg12[%c166, %c0_60] : memref<256x128xbf16, #tpu.memory_space<vmem>>, vector<24x128xbf16>
    %c96_i32_61 = arith.constant 96 : i32
    %99 = vector.broadcast %c96_i32_61 : i32 to vector<24x128xi32>
    %100 = arith.cmpi slt, %10, %99 : vector<24x128xi32>
    %101 = arith.select %100, %97, %98 : vector<24x128xi1>, vector<24x128xbf16>
    %c64_i32_62 = arith.constant 64 : i32
    %102 = vector.broadcast %c64_i32_62 : i32 to vector<24x128xi32>
    %103 = arith.cmpi slt, %10, %102 : vector<24x128xi32>
    %104 = arith.select %103, %96, %101 : vector<24x128xi1>, vector<24x128xbf16>
    %c32_i32_63 = arith.constant 32 : i32
    %105 = vector.broadcast %c32_i32_63 : i32 to vector<24x128xi32>
    %106 = arith.cmpi slt, %10, %105 : vector<24x128xi32>
    %107 = arith.select %106, %95, %104 : vector<24x128xi1>, vector<24x128xbf16>
    %c24_64 = arith.constant 24 : index
    %c256_65 = arith.constant 256 : index
    %108 = vector.load %arg13[%c24_64, %c256_65] : memref<48x512xbf16, #tpu.memory_space<vmem>>, vector<24x128xbf16>
    tpu.vector_store %arg13[%c24_64, %c256_65], %107 {strides = array<i32>} : memref<48x512xbf16, #tpu.memory_space<vmem>>, vector<24x128xbf16>,
    %c197 = arith.constant 197 : index
    %c0_66 = arith.constant 0 : index
    %109 = vector.load %arg12[%c197, %c0_66] : memref<256x128xbf16, #tpu.memory_space<vmem>>, vector<24x128xbf16>
    %c229 = arith.constant 229 : index
    %c0_67 = arith.constant 0 : index
    %110 = vector.load %arg12[%c229, %c0_67] : memref<256x128xbf16, #tpu.memory_space<vmem>>, vector<24x128xbf16>
    %c198 = arith.constant 198 : index
    %c0_68 = arith.constant 0 : index
    %111 = vector.load %arg12[%c198, %c0_68] : memref<256x128xbf16, #tpu.memory_space<vmem>>, vector<24x128xbf16>
    %c230 = arith.constant 230 : index
    %c0_69 = arith.constant 0 : index
    %112 = vector.load %arg12[%c230, %c0_69] : memref<256x128xbf16, #tpu.memory_space<vmem>>, vector<24x128xbf16>
    %c96_i32_70 = arith.constant 96 : i32
    %113 = vector.broadcast %c96_i32_70 : i32 to vector<24x128xi32>
    %114 = arith.cmpi slt, %10, %113 : vector<24x128xi32>
    %115 = arith.select %114, %111, %112 : vector<24x128xi1>, vector<24x128xbf16>
    %c64_i32_71 = arith.constant 64 : i32
    %116 = vector.broadcast %c64_i32_71 : i32 to vector<24x128xi32>
    %117 = arith.cmpi slt, %10, %116 : vector<24x128xi32>
    %118 = arith.select %117, %110, %115 : vector<24x128xi1>, vector<24x128xbf16>
    %c32_i32_72 = arith.constant 32 : i32
    %119 = vector.broadcast %c32_i32_72 : i32 to vector<24x128xi32>
    %120 = arith.cmpi slt, %10, %119 : vector<24x128xi32>
    %121 = arith.select %120, %109, %118 : vector<24x128xi1>, vector<24x128xbf16>
    %c24_73 = arith.constant 24 : index
    %c384_74 = arith.constant 384 : index
    %122 = vector.load %arg13[%c24_73, %c384_74] : memref<48x512xbf16, #tpu.memory_space<vmem>>, vector<24x128xbf16>
    tpu.vector_store %arg13[%c24_73, %c384_74], %121 {strides = array<i32>} : memref<48x512xbf16, #tpu.memory_space<vmem>>, vector<24x128xbf16>,
    %c0_75 = arith.constant 0 : index
    %c0_76 = arith.constant 0 : index
    %123 = vector.load %arg13[%c0_75, %c0_76] : memref<48x512xbf16, #tpu.memory_space<vmem>>, vector<48x512xbf16>
    %c0_77 = arith.constant 0 : index
    %c0_78 = arith.constant 0 : index
    %124 = vector.load %arg3[%c0_77, %c0_78] : memref<512x128xbf16, #tpu.memory_space<vmem>>, vector<512x128xbf16>
    %cst_79 = arith.constant dense<0.000000e+00> : vector<48x128xf32>
    %125 = tpu.matmul %123, %124, %cst_79 {dimension_numbers = #tpu.dot_dimension_numbers<[1], [0], [0], [1], [0, 0, 1, 1], [], []>} : vector<48x512xbf16>, vector<512x128xbf16>, vector<48x128xf32> -> vector<48x128xf32>
    %c0_80 = arith.constant 0 : index
    %c0_81 = arith.constant 0 : index
    %126 = vector.load %arg4[%c0_80, %c0_81] : memref<1x128xf32, #tpu.memory_space<vmem>>, vector<1x128xf32>
    %127 = vector.broadcast %126 : vector<1x128xf32> to vector<48x128xf32>
    %128 = arith.addf %125, %127 : vector<48x128xf32>
    %cst_82 = arith.constant 0.000000e+00 : f32
    %129 = vector.broadcast %cst_82 : f32 to vector<48x128xf32>
    %130 = arith.maximumf %128, %129 : vector<48x128xf32>
    %131 = arith.truncf %130 : vector<48x128xf32> to vector<48x128xbf16>
    %c0_83 = arith.constant 0 : index
    %c0_84 = arith.constant 0 : index
    %132 = vector.load %arg14[%c0_83, %c0_84] : memref<48x128xbf16, #tpu.memory_space<vmem>>, vector<48x128xbf16>
    tpu.vector_store %arg14[%c0_83, %c0_84], %131 {strides = array<i32>} : memref<48x128xbf16, #tpu.memory_space<vmem>>, vector<48x128xbf16>,
    %133 = tpu.iota {dimensions = array<i32: 1>} : vector<8x128xi32>
    %c0_85 = arith.constant 0 : index
    %c0_86 = arith.constant 0 : index
    %134 = vector.load %arg14[%c0_85, %c0_86] : memref<48x128xbf16, #tpu.memory_space<vmem>>, vector<8x128xbf16>
    %c1_87 = arith.constant 1 : index
    %c0_88 = arith.constant 0 : index
    %135 = vector.load %arg14[%c1_87, %c0_88] : memref<48x128xbf16, #tpu.memory_space<vmem>>, vector<8x128xbf16>
    %c64_i32_89 = arith.constant 64 : i32
    %136 = vector.broadcast %c64_i32_89 : i32 to vector<8x128xi32>
    %137 = arith.cmpi slt, %133, %136 : vector<8x128xi32>
    %138 = arith.select %137, %134, %135 : vector<8x128xi1>, vector<8x128xbf16>
    %c0_90 = arith.constant 0 : index
    %c0_91 = arith.constant 0 : index
    %139 = vector.load %arg15[%c0_90, %c0_91] : memref<16x640xbf16, #tpu.memory_space<vmem>>, vector<8x128xbf16>
    tpu.vector_store %arg15[%c0_90, %c0_91], %138 {strides = array<i32>} : memref<16x640xbf16, #tpu.memory_space<vmem>>, vector<8x128xbf16>,
    %c2 = arith.constant 2 : index
    %c0_92 = arith.constant 0 : index
    %140 = vector.load %arg14[%c2, %c0_92] : memref<48x128xbf16, #tpu.memory_space<vmem>>, vector<8x128xbf16>
    %c5_93 = arith.constant 5 : index
    %c0_94 = arith.constant 0 : index
    %141 = vector.load %arg14[%c5_93, %c0_94] : memref<48x128xbf16, #tpu.memory_space<vmem>>, vector<8x128xbf16>
    %c64_i32_95 = arith.constant 64 : i32
    %142 = vector.broadcast %c64_i32_95 : i32 to vector<8x128xi32>
    %143 = arith.cmpi slt, %133, %142 : vector<8x128xi32>
    %144 = arith.select %143, %140, %141 : vector<8x128xi1>, vector<8x128xbf16>
    %c0_96 = arith.constant 0 : index
    %c128_97 = arith.constant 128 : index
    %145 = vector.load %arg15[%c0_96, %c128_97] : memref<16x640xbf16, #tpu.memory_space<vmem>>, vector<8x128xbf16>
    tpu.vector_store %arg15[%c0_96, %c128_97], %144 {strides = array<i32>} : memref<16x640xbf16, #tpu.memory_space<vmem>>, vector<8x128xbf16>,
    %c6_98 = arith.constant 6 : index
    %c0_99 = arith.constant 0 : index
    %146 = vector.load %arg14[%c6_98, %c0_99] : memref<48x128xbf16, #tpu.memory_space<vmem>>, vector<8x128xbf16>
    %c7 = arith.constant 7 : index
    %c0_100 = arith.constant 0 : index
    %147 = vector.load %arg14[%c7, %c0_100] : memref<48x128xbf16, #tpu.memory_space<vmem>>, vector<8x128xbf16>
    %c64_i32_101 = arith.constant 64 : i32
    %148 = vector.broadcast %c64_i32_101 : i32 to vector<8x128xi32>
    %149 = arith.cmpi slt, %133, %148 : vector<8x128xi32>
    %150 = arith.select %149, %146, %147 : vector<8x128xi1>, vector<8x128xbf16>
    %c0_102 = arith.constant 0 : index
    %c256_103 = arith.constant 256 : index
    %151 = vector.load %arg15[%c0_102, %c256_103] : memref<16x640xbf16, #tpu.memory_space<vmem>>, vector<8x128xbf16>
    tpu.vector_store %arg15[%c0_102, %c256_103], %150 {strides = array<i32>} : memref<16x640xbf16, #tpu.memory_space<vmem>>, vector<8x128xbf16>,
    %c10 = arith.constant 10 : index
    %c0_104 = arith.constant 0 : index
    %152 = vector.load %arg14[%c10, %c0_104] : memref<48x128xbf16, #tpu.memory_space<vmem>>, vector<8x128xbf16>
    %c11 = arith.constant 11 : index
    %c0_105 = arith.constant 0 : index
    %153 = vector.load %arg14[%c11, %c0_105] : memref<48x128xbf16, #tpu.memory_space<vmem>>, vector<8x128xbf16>
    %c64_i32_106 = arith.constant 64 : i32
    %154 = vector.broadcast %c64_i32_106 : i32 to vector<8x128xi32>
    %155 = arith.cmpi slt, %133, %154 : vector<8x128xi32>
    %156 = arith.select %155, %152, %153 : vector<8x128xi1>, vector<8x128xbf16>
    %c0_107 = arith.constant 0 : index
    %c384_108 = arith.constant 384 : index
    %157 = vector.load %arg15[%c0_107, %c384_108] : memref<16x640xbf16, #tpu.memory_space<vmem>>, vector<8x128xbf16>
    tpu.vector_store %arg15[%c0_107, %c384_108], %156 {strides = array<i32>} : memref<16x640xbf16, #tpu.memory_space<vmem>>, vector<8x128xbf16>,
    %c12 = arith.constant 12 : index
    %c0_109 = arith.constant 0 : index
    %158 = vector.load %arg14[%c12, %c0_109] : memref<48x128xbf16, #tpu.memory_space<vmem>>, vector<8x128xbf16>
    %c0_110 = arith.constant 0 : index
    %c512 = arith.constant 512 : index
    %159 = vector.load %arg15[%c0_110, %c512] : memref<16x640xbf16, #tpu.memory_space<vmem>>, vector<8x128xbf16>
    tpu.vector_store %arg15[%c0_110, %c512], %158 {strides = array<i32>} : memref<16x640xbf16, #tpu.memory_space<vmem>>, vector<8x128xbf16>,
    %c24_111 = arith.constant 24 : index
    %c0_112 = arith.constant 0 : index
    %160 = vector.load %arg14[%c24_111, %c0_112] : memref<48x128xbf16, #tpu.memory_space<vmem>>, vector<8x128xbf16>
    %c25 = arith.constant 25 : index
    %c0_113 = arith.constant 0 : index
    %161 = vector.load %arg14[%c25, %c0_113] : memref<48x128xbf16, #tpu.memory_space<vmem>>, vector<8x128xbf16>
    %c64_i32_114 = arith.constant 64 : i32
    %162 = vector.broadcast %c64_i32_114 : i32 to vector<8x128xi32>
    %163 = arith.cmpi slt, %133, %162 : vector<8x128xi32>
    %164 = arith.select %163, %160, %161 : vector<8x128xi1>, vector<8x128xbf16>
    %c8 = arith.constant 8 : index
    %c0_115 = arith.constant 0 : index
    %165 = vector.load %arg15[%c8, %c0_115] : memref<16x640xbf16, #tpu.memory_space<vmem>>, vector<8x128xbf16>
    tpu.vector_store %arg15[%c8, %c0_115], %164 {strides = array<i32>} : memref<16x640xbf16, #tpu.memory_space<vmem>>, vector<8x128xbf16>,
    %c26 = arith.constant 26 : index
    %c0_116 = arith.constant 0 : index
    %166 = vector.load %arg14[%c26, %c0_116] : memref<48x128xbf16, #tpu.memory_space<vmem>>, vector<8x128xbf16>
    %c29 = arith.constant 29 : index
    %c0_117 = arith.constant 0 : index
    %167 = vector.load %arg14[%c29, %c0_117] : memref<48x128xbf16, #tpu.memory_space<vmem>>, vector<8x128xbf16>
    %c64_i32_118 = arith.constant 64 : i32
    %168 = vector.broadcast %c64_i32_118 : i32 to vector<8x128xi32>
    %169 = arith.cmpi slt, %133, %168 : vector<8x128xi32>
    %170 = arith.select %169, %166, %167 : vector<8x128xi1>, vector<8x128xbf16>
    %c8_119 = arith.constant 8 : index
    %c128_120 = arith.constant 128 : index
    %171 = vector.load %arg15[%c8_119, %c128_120] : memref<16x640xbf16, #tpu.memory_space<vmem>>, vector<8x128xbf16>
    tpu.vector_store %arg15[%c8_119, %c128_120], %170 {strides = array<i32>} : memref<16x640xbf16, #tpu.memory_space<vmem>>, vector<8x128xbf16>,
    %c30 = arith.constant 30 : index
    %c0_121 = arith.constant 0 : index
    %172 = vector.load %arg14[%c30, %c0_121] : memref<48x128xbf16, #tpu.memory_space<vmem>>, vector<8x128xbf16>
    %c31 = arith.constant 31 : index
    %c0_122 = arith.constant 0 : index
    %173 = vector.load %arg14[%c31, %c0_122] : memref<48x128xbf16, #tpu.memory_space<vmem>>, vector<8x128xbf16>
    %c64_i32_123 = arith.constant 64 : i32
    %174 = vector.broadcast %c64_i32_123 : i32 to vector<8x128xi32>
    %175 = arith.cmpi slt, %133, %174 : vector<8x128xi32>
    %176 = arith.select %175, %172, %173 : vector<8x128xi1>, vector<8x128xbf16>
    %c8_124 = arith.constant 8 : index
    %c256_125 = arith.constant 256 : index
    %177 = vector.load %arg15[%c8_124, %c256_125] : memref<16x640xbf16, #tpu.memory_space<vmem>>, vector<8x128xbf16>
    tpu.vector_store %arg15[%c8_124, %c256_125], %176 {strides = array<i32>} : memref<16x640xbf16, #tpu.memory_space<vmem>>, vector<8x128xbf16>,
    %c34 = arith.constant 34 : index
    %c0_126 = arith.constant 0 : index
    %178 = vector.load %arg14[%c34, %c0_126] : memref<48x128xbf16, #tpu.memory_space<vmem>>, vector<8x128xbf16>
    %c35 = arith.constant 35 : index
    %c0_127 = arith.constant 0 : index
    %179 = vector.load %arg14[%c35, %c0_127] : memref<48x128xbf16, #tpu.memory_space<vmem>>, vector<8x128xbf16>
    %c64_i32_128 = arith.constant 64 : i32
    %180 = vector.broadcast %c64_i32_128 : i32 to vector<8x128xi32>
    %181 = arith.cmpi slt, %133, %180 : vector<8x128xi32>
    %182 = arith.select %181, %178, %179 : vector<8x128xi1>, vector<8x128xbf16>
    %c8_129 = arith.constant 8 : index
    %c384_130 = arith.constant 384 : index
    %183 = vector.load %arg15[%c8_129, %c384_130] : memref<16x640xbf16, #tpu.memory_space<vmem>>, vector<8x128xbf16>
    tpu.vector_store %arg15[%c8_129, %c384_130], %182 {strides = array<i32>} : memref<16x640xbf16, #tpu.memory_space<vmem>>, vector<8x128xbf16>,
    %c36 = arith.constant 36 : index
    %c0_131 = arith.constant 0 : index
    %184 = vector.load %arg14[%c36, %c0_131] : memref<48x128xbf16, #tpu.memory_space<vmem>>, vector<8x128xbf16>
    %c8_132 = arith.constant 8 : index
    %c512_133 = arith.constant 512 : index
    %185 = vector.load %arg15[%c8_132, %c512_133] : memref<16x640xbf16, #tpu.memory_space<vmem>>, vector<8x128xbf16>
    tpu.vector_store %arg15[%c8_132, %c512_133], %184 {strides = array<i32>} : memref<16x640xbf16, #tpu.memory_space<vmem>>, vector<8x128xbf16>,
    %c0_134 = arith.constant 0 : index
    %c0_135 = arith.constant 0 : index
    %186 = vector.load %arg15[%c0_134, %c0_135] : memref<16x640xbf16, #tpu.memory_space<vmem>>, vector<16x640xbf16>
    %c0_136 = arith.constant 0 : index
    %c0_137 = arith.constant 0 : index
    %187 = vector.load %arg5[%c0_136, %c0_137] : memref<640x128xbf16, #tpu.memory_space<vmem>>, vector<640x128xbf16>
    %cst_138 = arith.constant dense<0.000000e+00> : vector<16x128xf32>
    %188 = tpu.matmul %186, %187, %cst_138 {dimension_numbers = #tpu.dot_dimension_numbers<[1], [0], [0], [1], [0, 0, 1, 1], [], []>} : vector<16x640xbf16>, vector<640x128xbf16>, vector<16x128xf32> -> vector<16x128xf32>
    %c0_139 = arith.constant 0 : index
    %c0_140 = arith.constant 0 : index
    %189 = vector.load %arg6[%c0_139, %c0_140] : memref<1x128xf32, #tpu.memory_space<vmem>>, vector<1x128xf32>
    %190 = vector.broadcast %189 : vector<1x128xf32> to vector<16x128xf32>
    %191 = arith.addf %188, %190 : vector<16x128xf32>
    %cst_141 = arith.constant 0.000000e+00 : f32
    %192 = vector.broadcast %cst_141 : f32 to vector<16x128xf32>
    %193 = arith.maximumf %191, %192 : vector<16x128xf32>
    %194 = vector.extract_strided_slice %193 {offsets = [0, 0], sizes = [1, 128], strides = [1, 1]} : vector<16x128xf32> to vector<1x128xf32>
    %195 = vector.extract_strided_slice %193 {offsets = [8, 0], sizes = [1, 128], strides = [1, 1]} : vector<16x128xf32> to vector<1x128xf32>
    %196 = tpu.concatenate %194, %195 in 0 : vector<1x128xf32>, vector<1x128xf32> -> vector<2x128xf32>
    %197 = arith.truncf %196 : vector<2x128xf32> to vector<2x128xbf16>
    %c0_142 = arith.constant 0 : index
    %c0_143 = arith.constant 0 : index
    %198 = vector.load %arg7[%c0_142, %c0_143] : memref<512x1024xbf16, #tpu.memory_space<vmem>>, vector<128x1024xbf16>
    %cst_144 = arith.constant dense<0.000000e+00> : vector<2x1024xf32>
    %199 = tpu.matmul %197, %198, %cst_144 {dimension_numbers = #tpu.dot_dimension_numbers<[1], [0], [0], [1], [0, 0, 1, 1], [], []>} : vector<2x128xbf16>, vector<128x1024xbf16>, vector<2x1024xf32> -> vector<2x1024xf32>
    %200 = vector.extract_strided_slice %193 {offsets = [1, 0], sizes = [1, 128], strides = [1, 1]} : vector<16x128xf32> to vector<1x128xf32>
    %201 = vector.extract_strided_slice %193 {offsets = [9, 0], sizes = [1, 128], strides = [1, 1]} : vector<16x128xf32> to vector<1x128xf32>
    %202 = tpu.concatenate %200, %201 in 0 : vector<1x128xf32>, vector<1x128xf32> -> vector<2x128xf32>
    %203 = arith.truncf %202 : vector<2x128xf32> to vector<2x128xbf16>
    %c128_145 = arith.constant 128 : index
    %c0_146 = arith.constant 0 : index
    %204 = vector.load %arg7[%c128_145, %c0_146] : memref<512x1024xbf16, #tpu.memory_space<vmem>>, vector<128x1024xbf16>
    %cst_147 = arith.constant dense<0.000000e+00> : vector<2x1024xf32>
    %205 = tpu.matmul %203, %204, %cst_147 {dimension_numbers = #tpu.dot_dimension_numbers<[1], [0], [0], [1], [0, 0, 1, 1], [], []>} : vector<2x128xbf16>, vector<128x1024xbf16>, vector<2x1024xf32> -> vector<2x1024xf32>
    %206 = arith.addf %199, %205 : vector<2x1024xf32>
    %207 = vector.extract_strided_slice %193 {offsets = [5, 0], sizes = [1, 128], strides = [1, 1]} : vector<16x128xf32> to vector<1x128xf32>
    %208 = vector.extract_strided_slice %193 {offsets = [13, 0], sizes = [1, 128], strides = [1, 1]} : vector<16x128xf32> to vector<1x128xf32>
    %209 = tpu.concatenate %207, %208 in 0 : vector<1x128xf32>, vector<1x128xf32> -> vector<2x128xf32>
    %210 = arith.truncf %209 : vector<2x128xf32> to vector<2x128xbf16>
    %c256_148 = arith.constant 256 : index
    %c0_149 = arith.constant 0 : index
    %211 = vector.load %arg7[%c256_148, %c0_149] : memref<512x1024xbf16, #tpu.memory_space<vmem>>, vector<128x1024xbf16>
    %cst_150 = arith.constant dense<0.000000e+00> : vector<2x1024xf32>
    %212 = tpu.matmul %210, %211, %cst_150 {dimension_numbers = #tpu.dot_dimension_numbers<[1], [0], [0], [1], [0, 0, 1, 1], [], []>} : vector<2x128xbf16>, vector<128x1024xbf16>, vector<2x1024xf32> -> vector<2x1024xf32>
    %213 = arith.addf %206, %212 : vector<2x1024xf32>
    %214 = vector.extract_strided_slice %193 {offsets = [6, 0], sizes = [1, 128], strides = [1, 1]} : vector<16x128xf32> to vector<1x128xf32>
    %215 = vector.extract_strided_slice %193 {offsets = [14, 0], sizes = [1, 128], strides = [1, 1]} : vector<16x128xf32> to vector<1x128xf32>
    %216 = tpu.concatenate %214, %215 in 0 : vector<1x128xf32>, vector<1x128xf32> -> vector<2x128xf32>
    %217 = arith.truncf %216 : vector<2x128xf32> to vector<2x128xbf16>
    %c384_151 = arith.constant 384 : index
    %c0_152 = arith.constant 0 : index
    %218 = vector.load %arg7[%c384_151, %c0_152] : memref<512x1024xbf16, #tpu.memory_space<vmem>>, vector<128x1024xbf16>
    %cst_153 = arith.constant dense<0.000000e+00> : vector<2x1024xf32>
    %219 = tpu.matmul %217, %218, %cst_153 {dimension_numbers = #tpu.dot_dimension_numbers<[1], [0], [0], [1], [0, 0, 1, 1], [], []>} : vector<2x128xbf16>, vector<128x1024xbf16>, vector<2x1024xf32> -> vector<2x1024xf32>
    %220 = arith.addf %213, %219 : vector<2x1024xf32>
    %c0_154 = arith.constant 0 : index
    %c0_155 = arith.constant 0 : index
    %221 = vector.load %arg8[%c0_154, %c0_155] : memref<1x1024xf32, #tpu.memory_space<vmem>>, vector<1x1024xf32>
    %222 = vector.broadcast %221 : vector<1x1024xf32> to vector<2x1024xf32>
    %223 = arith.addf %220, %222 : vector<2x1024xf32>
    %cst_156 = arith.constant 0.000000e+00 : f32
    %224 = vector.broadcast %cst_156 : f32 to vector<2x1024xf32>
    %225 = arith.maximumf %223, %224 : vector<2x1024xf32>
    %226 = arith.truncf %225 : vector<2x1024xf32> to vector<2x1024xbf16>
    %c0_157 = arith.constant 0 : index
    %c0_158 = arith.constant 0 : index
    %227 = vector.load %arg9[%c0_157, %c0_158] : memref<1024x128xbf16, #tpu.memory_space<vmem>>, vector<1024x128xbf16>
    %cst_159 = arith.constant dense<0.000000e+00> : vector<2x128xf32>
    %228 = tpu.matmul %226, %227, %cst_159 {dimension_numbers = #tpu.dot_dimension_numbers<[1], [0], [0], [1], [0, 0, 1, 1], [], []>} : vector<2x1024xbf16>, vector<1024x128xbf16>, vector<2x128xf32> -> vector<2x128xf32>
    %c0_160 = arith.constant 0 : index
    %c0_161 = arith.constant 0 : index
    %229 = vector.load %arg10[%c0_160, %c0_161] : memref<1x128xf32, #tpu.memory_space<vmem>>, vector<1x128xf32>
    %230 = vector.broadcast %229 : vector<1x128xf32> to vector<2x128xf32>
    %231 = arith.addf %228, %230 : vector<2x128xf32>
    %232 = vector.extract_strided_slice %231 {offsets = [0, 0], sizes = [2, 1], strides = [1, 1]} : vector<2x128xf32> to vector<2x1xf32>
    %233 = vector.extract_strided_slice %231 {offsets = [0, 1], sizes = [2, 6], strides = [1, 1]} : vector<2x128xf32> to vector<2x6xf32>
    %234 = vector.broadcast %232 : vector<2x1xf32> to vector<2x6xf32>
    %235 = arith.addf %234, %233 : vector<2x6xf32>
    %cst_162 = arith.constant dense<0.000000e+00> : vector<2xf32>
    %236 = vector.multi_reduction <add>, %233, %cst_162 [1] : vector<2x6xf32> to vector<2xf32>
    %237 = vector.shape_cast %236 : vector<2xf32> to vector<2x1xf32>
    %cst_163 = arith.constant 6.000000e+00 : f32
    %238 = vector.broadcast %cst_163 : f32 to vector<2x1xf32>
    %239 = arith.divf %237, %238 : vector<2x1xf32>
    %240 = vector.broadcast %239 : vector<2x1xf32> to vector<2x6xf32>
    %241 = arith.subf %235, %240 : vector<2x6xf32>
    %c0_164 = arith.constant 0 : index
    %c0_165 = arith.constant 0 : index
    %242 = vector.load %arg11[%c0_164, %c0_165] : memref<2x6xf32, #tpu.memory_space<vmem>>, vector<2x6xf32>
    tpu.vector_store %arg11[%c0_164, %c0_165], %241 {strides = array<i32>} : memref<2x6xf32, #tpu.memory_space<vmem>>, vector<2x6xf32>,
    return
  }
}

</mosaic_0001>

<bundles_post_ra>
// kernel: dueling_dqn_forward.1
= control target key start
LH: loop header
LB: loop body
LE: loop exit
PB: predicated region body
PF: predicated region fallthrough
CT: control target
= control target key end

     0   :  { %s7814_s0 = inlined_call_operand.vmem [shape: bf16[256,256], index: 0, kind: input, shape index: {}]   ;;  %s7815_s1 = inlined_call_operand.vmem [shape: bf16[256,128], index: 1, kind: input, shape index: {}]   ;;  %s7816_s2 = inlined_call_operand.vmem [shape: f32[1,128], index: 2, kind: input, shape index: {}]   ;;  %s7817_s3 = inlined_call_operand.vmem [shape: bf16[512,128], index: 3, kind: input, shape index: {}]   ;;  %s7818_s4 = inlined_call_operand.vmem [shape: f32[1,128], index: 4, kind: input, shape index: {}]   ;;  %s7819_s5 = inlined_call_operand.vmem [shape: bf16[640,128], index: 5, kind: input, shape index: {}]   ;;  %s7820_s6 = inlined_call_operand.vmem [shape: f32[1,128], index: 6, kind: input, shape index: {}]   ;;  %s7821_s7 = inlined_call_operand.vmem [shape: bf16[512,1024], index: 7, kind: input, shape index: {}]   ;;  %s7822_s8 = inlined_call_operand.vmem [shape: f32[1,1024], index: 8, kind: input, shape index: {}]   ;;  %s7823_s9 = inlined_call_operand.vmem [shape: bf16[1024,128], index: 9, kind: input, shape index: {}]   ;;  %s7824_s10 = inlined_call_operand.vmem [shape: f32[1,128], index: 10, kind: input, shape index: {}]   ;;  %s7825_s11 = inlined_call_operand.hbm [shape: f32[2,6], index: 11, kind: output, shape index: {}]  }
   0x1   :  { %v5804_v0 = vld [vmem:[%s7815_s1 + $0x40] sm:$0xff]   ;;  %v5806_v2 = vld [vmem:[%s7815_s1 + $0x48] sm:$0xff]   ;;  %v5808_v4 = vld [vmem:[%s7815_s1 + $0x50] sm:$0xff]  }
   0x2   :  { %v5805_v1 = vld [vmem:[%s7815_s1] sm:$0xff]   ;;  %5456 = vmatprep.subr.bf16.mxu0 %v5804_v0  ;;  %v5807_v3 = vld [vmem:[%s7815_s1 + $0x8] sm:$0xff]   ;;  %v5809_v5 = vld [vmem:[%s7815_s1 + $0x10] sm:$0xff]  }
   0x3   :  { %5457 = vmatpush3.bf16.msra.mxu0 %v5805_v1  ;;  %v5810_v6 = vld [vmem:[%s7815_s1 + $0x58] sm:$0xff]   ;;  %v5812_v8 = vld [vmem:[%s7815_s1 + $0x60] sm:$0xff]   ;;  %v5814_v10 = vld [vmem:[%s7815_s1 + $0x68] sm:$0xff]  }
   0x4   :  { %5458 = vmatprep.subr.bf16.mxu0 %v5806_v2  ;;  %v5811_v7 = vld [vmem:[%s7815_s1 + $0x18] sm:$0xff]   ;;  %v5813_v9 = vld [vmem:[%s7815_s1 + $0x20] sm:$0xff]   ;;  %v5815_v12 = vld [vmem:[%s7815_s1 + $0x28] sm:$0xff]  }
   0x5   :  { %v5822_v11 = vld [vmem:[%s7814_s0 + $0x4] ss:$8 sps:$4 sm:$0xff]   ;;  %v5816_v13 = vld [vmem:[%s7815_s1 + $0x70] sm:$0xff]   ;;  %v5818_v15 = vld [vmem:[%s7815_s1 + $0x78] sm:$0xff]  }
   0x6   :  { %401 = vmatprep.mubr.bf16.mxu0 %v5822_v11  ;;  %v5817_v14 = vld [vmem:[%s7815_s1 + $0x30] sm:$0xff]   ;;  %v5819_v16 = vld [vmem:[%s7815_s1 + $0x38] sm:$0xff]   ;;  %v5820_v17 = vld [vmem:[%s7814_s0] ss:$8 sps:$4 sm:$0xff]  }
   0x7   :  { %5459 = vmatpush3.bf16.msra.mxu0 %v5807_v3  ;;  %v5823_v18 = vld [vmem:[%s7814_s0 + $0x14] ss:$8 sps:$4 sm:$0xff]   ;;  %v5825_v19 = vld [vmem:[%s7814_s0 + $0x10] ss:$8 sps:$4 sm:$0xff]   ;;  %v5826_v20 = vld [vmem:[%s7814_s0 + $0x24] ss:$8 sps:$4 sm:$0xff]  }
   0x8   :  { %5460 = vmatprep.subr.bf16.mxu0 %v5808_v4  ;;  %v5828_v21 = vld [vmem:[%s7814_s0 + $0x20] ss:$8 sps:$4 sm:$0xff]   ;;  %v5829_v22 = vld [vmem:[%s7814_s0 + $0x34] ss:$8 sps:$4 sm:$0xff]   ;;  %v5831_v23 = vld [vmem:[%s7814_s0 + $0x30] ss:$8 sps:$4 sm:$0xff]  }
   0x9   :  { %v5832_v24 = vld [vmem:[%s7814_s0 + $0x44] ss:$8 sps:$4 sm:$0xff]   ;;  %v5834_v25 = vld [vmem:[%s7814_s0 + $0x40] ss:$8 sps:$4 sm:$0xff]   ;;  %v5835_v26 = vld [vmem:[%s7814_s0 + $0x54] ss:$8 sps:$4 sm:$0xff]  }
   0xa   :  { %v5837_v27 = vld [vmem:[%s7814_s0 + $0x50] ss:$8 sps:$4 sm:$0xff]   ;;  %v5838_v28 = vld [vmem:[%s7814_s0 + $0x64] ss:$8 sps:$4 sm:$0xff]   ;;  %v5840_v29 = vld [vmem:[%s7814_s0 + $0x60] ss:$8 sps:$4 sm:$0xff]  }
   0xb   :  { %5461 = vmatpush3.bf16.msra.mxu0 %v5809_v5  ;;  %v5841_v30 = vld [vmem:[%s7814_s0 + $0x74] ss:$8 sps:$4 sm:$0xff]   ;;  %v5843_v31 = vld [vmem:[%s7814_s0 + $0x70] ss:$8 sps:$4 sm:$0xff]   ;;  %v5844_v32 = vld [vmem:[%s7814_s0 + $0x84] ss:$8 sps:$4 sm:$0xff]  }
   0xc   :  { %5462 = vmatprep.subr.bf16.mxu0 %v5810_v6  ;;  %v5846_v33 = vld [vmem:[%s7814_s0 + $0x80] ss:$8 sps:$4 sm:$0xff]   ;;  %v5847_v34 = vld [vmem:[%s7814_s0 + $0x94] ss:$8 sps:$4 sm:$0xff]   ;;  %v5849_v35 = vld [vmem:[%s7814_s0 + $0x90] ss:$8 sps:$4 sm:$0xff]  }
   0xd   :  { %v5850_v36 = vld [vmem:[%s7814_s0 + $0xa4] ss:$8 sps:$4 sm:$0xff]   ;;  %v5852_v37 = vld [vmem:[%s7814_s0 + $0xa0] ss:$8 sps:$4 sm:$0xff]   ;;  %v5853_v38 = vld [vmem:[%s7814_s0 + $0xb4] ss:$8 sps:$4 sm:$0xff]  }
   0xe   :  { %v5855_v39 = vld [vmem:[%s7814_s0 + $0xb0] ss:$8 sps:$4 sm:$0xff]   ;;  %v5856_v40 = vld [vmem:[%s7814_s0 + $0xc4] ss:$8 sps:$4 sm:$0xff]   ;;  %v5858_v41 = vld [vmem:[%s7814_s0 + $0xc0] ss:$8 sps:$4 sm:$0xff]  }
   0xf   :  { %5463 = vmatpush3.bf16.msra.mxu0 %v5811_v7  ;;  %v5859_v42 = vld [vmem:[%s7814_s0 + $0xd4] ss:$8 sps:$4 sm:$0xff]  }
  0x10   :  { %5464 = vmatprep.subr.bf16.mxu0 %v5812_v8 }
  0x13   :  { %5465 = vmatpush3.bf16.msra.mxu0 %v5813_v9 }
  0x14   :  { %5466 = vmatprep.subr.bf16.mxu0 %v5814_v10 }
  0x17   :  { %5467 = vmatpush3.bf16.msra.mxu0 %v5815_v12 }
  0x18   :  { %5468 = vmatprep.subr.bf16.mxu0 %v5816_v13 }
  0x1b   :  { %5469 = vmatpush3.bf16.msra.mxu0 %v5817_v14 }
  0x1c   :  { %5470 = vmatprep.subr.bf16.mxu0 %v5818_v15 }
  0x1f   :  { %5471 = vmatpush3.bf16.msra.mxu0 %v5819_v16 }
  0x22   :  { %402 = vmatmul.mubr.bf16.vlgmr.msra.gmra.mrb[0].mxu0 %v5820_v17 }
  0x23   :  { %409 = vmatprep.mubr.bf16.mxu0 %v5823_v18 }
  0x2a   :  { %410 = vmatmul.mubr.bf16.gmra.mrb[4].mxu0 %v5825_v19 }
  0x2b   :  { %417 = vmatprep.mubr.bf16.mxu0 %v5826_v20 }
  0x32   :  { %418 = vmatmul.mubr.bf16.gmra.mrb[8].mxu0 %v5828_v21 }
  0x33   :  { %425 = vmatprep.mubr.bf16.mxu0 %v5829_v22 }
  0x3a   :  { %426 = vmatmul.mubr.bf16.gmra.mrb[12].mxu0 %v5831_v23 }
  0x3b   :  { %433 = vmatprep.mubr.bf16.mxu0 %v5832_v24 }
  0x42   :  { %434 = vmatmul.mubr.bf16.gmra.mrb[16].mxu0 %v5834_v25 }
  0x43   :  { %441 = vmatprep.mubr.bf16.mxu0 %v5835_v26 }
  0x4a   :  { %442 = vmatmul.mubr.bf16.gmra.mrb[20].mxu0 %v5837_v27 }
  0x4b   :  { %449 = vmatprep.mubr.bf16.mxu0 %v5838_v28 }
  0x52   :  { %450 = vmatmul.mubr.bf16.gmra.mrb[24].mxu0 %v5840_v29 }
  0x53   :  { %457 = vmatprep.mubr.bf16.mxu0 %v5841_v30 }
  0x5a   :  { %458 = vmatmul.mubr.bf16.gmra.mrb[28].mxu0 %v5843_v31 }
  0x5b   :  { %465 = vmatprep.mubr.bf16.mxu0 %v5844_v32 }
  0x62   :  { %466 = vmatmul.mubr.bf16.gmra.mrb[32].mxu0 %v5846_v33 }
  0x63   :  { %473 = vmatprep.mubr.bf16.mxu0 %v5847_v34 }
  0x6a   :  { %474 = vmatmul.mubr.bf16.gmra.mrb[36].mxu0 %v5849_v35 }
  0x6b   :  { %481 = vmatprep.mubr.bf16.mxu0 %v5850_v36 }
  0x72   :  { %482 = vmatmul.mubr.bf16.gmra.mrb[40].mxu0 %v5852_v37 }
  0x73   :  { %489 = vmatprep.mubr.bf16.mxu0 %v5853_v38 }
  0x7a   :  { %490 = vmatmul.mubr.bf16.gmra.mrb[44].mxu0 %v5855_v39 }
  0x7b   :  { %497 = vmatprep.mubr.bf16.mxu0 %v5856_v40 }
  0x7c   :  { %16 = vsyncpa [#allocation7], 0  ;;  %v5861_v43 = vld [vmem:[%s7814_s0 + $0xd0] ss:$8 sps:$4 sm:$0xff]   ;;  %v5862_v44 = vld [vmem:[%s7814_s0 + $0xe4] ss:$8 sps:$4 sm:$0xff]   ;;  %v594_v9 = vlaneseq }
  0x7d   :  { %v6028_v45 = vmov 0   ;;  %v5864_v46 = vld [vmem:[%s7814_s0 + $0xe0] ss:$8 sps:$4 sm:$0xff]   ;;  %v5865_v47 = vld [vmem:[%s7814_s0 + $0xf4] ss:$8 sps:$4 sm:$0xff]   ;;  %vm815_vm11 = vcmask 1043456  }
  0x7e   :  { %5802 = vset.pattern.permute.xlu1 %v6028_v45  ;;  %5803 = vset.pattern.permute.xlu0 %v6028_v45  ;;  %v5867_v48 = vld [vmem:[%s7814_s0 + $0xf0] ss:$8 sps:$4 sm:$0xff]   ;;  %v5868_v49 = vld [vmem:[%s7817_s3 + $0x40] sm:$0xff]   ;;  %v5870_v51 = vld [vmem:[%s7817_s3 + $0x48] sm:$0xff]   ;;  %v595_v14 = vand.u32 127, %v594_v9  ;;  %v6298_v22 = vshrl.u32 %v594_v9, 7 }
  0x7f   :  { %v5869_v50 = vld [vmem:[%s7817_s3] sm:$0xff]   ;;  %5568 = vmatprep.subr.bf16.mxu1 %v5868_v49  ;;  %v5871_v52 = vld [vmem:[%s7817_s3 + $0x8] sm:$0xff]   ;;  %v5872_v53 = vld [vmem:[%s7817_s3 + $0x50] sm:$0xff]   ;;  %vm620_vm7 = vsmask.f32 7424  ;;  %vm6030_vm13 = vmmov 0  }
  0x80   :  { %5569 = vmatpush3.bf16.msra.mxu1 %v5869_v50  ;;  %v5873_v54 = vld [vmem:[%s7817_s3 + $0x10] sm:$0xff]   ;;  %v5874_v55 = vld [vmem:[%s7817_s3 + $0x58] sm:$0xff]   ;;  %v5876_v57 = vld [vmem:[%s7817_s3 + $0x60] sm:$0xff]   ;;  %vm602_vm0 = vcmp.lt.s32.totalorder %v595_v14, 96  ;;  %v6305_v29 = vsub.s32 0, %v6298_v22  ;;  %vm612_vm3 = vcmp.lt.s32.totalorder %v595_v14, 64 }
  0x81   :  { %5570 = vmatprep.subr.bf16.mxu1 %v5870_v51  ;;  %v5875_v56 = vld [vmem:[%s7817_s3 + $0x18] sm:$0xff]   ;;  %v5877_v58 = vld [vmem:[%s7817_s3 + $0x20] sm:$0xff]   ;;  %v5878_v59 = vld [vmem:[%s7817_s3 + $0x68] sm:$0xff]   ;;  %vm640_vm4 = vcmp.lt.s32.totalorder %v595_v14, 32  ;;  %vm712_vm10 = vsmask.f32 5376 }
  0x82   :  { %498 = vmatmul.mubr.bf16.gmra.mrb[48].mxu0 %v5858_v41  ;;  %v5879_v60 = vld [vmem:[%s7817_s3 + $0x28] sm:$0xff]   ;;  %v5880_v61 = vld [vmem:[%s7817_s3 + $0x70] sm:$0xff]   ;;  %v5882_v63 = vld [vmem:[%s7817_s3 + $0x78] sm:$0xff]   ;;  %vm890_vm12 = vsmask.f32 1280  ;;  %vm1440_vm14 = vcmask 1041408  }
  0x83   :  { %505 = vmatprep.mubr.bf16.mxu0 %v5859_v42  ;;  %v5881_v62 = vld [vmem:[%s7817_s3 + $0x30] sm:$0xff]   ;;  %v5883_v0 = vld [vmem:[%s7817_s3 + $0x38] sm:$0xff]   ;;  %v6290_v2 = vld [vmem:[%s7816_s2] ss:$0 sm:$0xff]  ;;  %vm1430_vm15 = vcmask 1042432   ;;  %s6032_s17 = smov [#allocation6]  }
  0x84   :  { %5571 = vmatpush3.bf16.msra.mxu1 %v5871_v52  ;;  %vm603_vm1 = vmpackc.low %vm602_vm0, %vm602_vm0  ;;  %v5884_v24 = vld [vmem:[%s7817_s3 + $0xc0] sm:$0xff]   ;;  %vm1468_vm0 = vsmask.f32 6400  ;;  %s5004_s18 = sshll.u32 %s6032_s17, 4  ;;  %s5005_s18 = int_to_ptr.vmem [resolvable:$true] %s5004_s18 }
  0x85   :  { %5572 = vmatprep.subr.bf16.mxu1 %v5872_v53  ;;  %v604_v33 = vsel %vm603_vm1, 65537, %v6028_v45  ;;  %vm6324_vm5 = vmpackc.low %vm612_vm3, %vm612_vm3  ;;  %vm1492_vm1 = vcmask 1046528   ;;  %vm2004_vm3 = vcmask 1040384   ;;  %s6004_s19 = scalar_lea.vmem %s5005_s18, 32  ;;  %p6009_p1 = scmp.lt.s32.totalorder %s5005_s18, %s5005_s18 }
  0x86   :  { %v608_v37 = vrot.slane %v604_v33, %v6305_v29  ;;  %vm641_vm6 = vmpackc.low %vm640_vm4, %vm640_vm4  ;;  %vm4986_vm4 = vcmask 41984   ;;  %p6005_p0 = scmp.ne.s32.totalorder %s5005_s18, %s6004_s19  ;;  %p6010_p2 = scmp.lt.s32.totalorder %s6004_s19, %s6004_s19 }
  0x88   :  { %5573 = vmatpush3.bf16.msra.mxu1 %v5873_v54  ;;  %vm6311_vm2 = vcmp.ne.s16.totalorder %v608_v37, 0  ;;  %p6011_p3 = por %p6010_p2, %p6009_p1 }
  0x89   :  { %5574 = vmatprep.subr.bf16.mxu1 %v5874_v55 }
  0x8a   :  { %506 = vmatmul.mubr.bf16.gmra.mrb[52].mxu0 %v5861_v43  ;;  %p6012_p4 = pnand %p6011_p3, %p6005_p0 }
  0x8b   :  { %513 = vmatprep.mubr.bf16.mxu0 %v5862_v44 }
  0x8c   :  { %5575 = vmatpush3.bf16.msra.mxu1 %v5875_v56 }
  0x8d   :  { %5576 = vmatprep.subr.bf16.mxu1 %v5876_v57 }
  0x90   :  { %5577 = vmatpush3.bf16.msra.mxu1 %v5877_v58 }
  0x91   :  { %5578 = vmatprep.subr.bf16.mxu1 %v5878_v59 }
  0x92   :  { %514 = vmatmul.mubr.bf16.gmra.mrb[56].mxu0 %v5864_v46 }
  0x93   :  { %521 = vmatprep.mubr.bf16.mxu0 %v5865_v47 }
  0x94   :  { %5579 = vmatpush3.bf16.msra.mxu1 %v5879_v60 }
  0x95   :  { %5580 = vmatprep.subr.bf16.mxu1 %v5880_v61 }
  0x98   :  { %5581 = vmatpush3.bf16.msra.mxu1 %v5881_v62  ;;  %v5926_v62 = vld [vmem:[%s7819_s5 + $0xc8] sm:$0xff]  }
  0x99   :  { %5582 = vmatprep.subr.bf16.mxu1 %v5882_v63 }
  0x9a   :  { %522 = vmatmul.mubr.bf16.gmra.mrb[60].mxu0 %v5867_v48 }
  0x9c   :  { %5583 = vmatpush3.bf16.msra.mxu1 %v5883_v0 }
  0x9d   :  { %5602 = vmatprep.subr.bf16.mxu1 %v5884_v24 }
  0xf5   :  { %v5472_v1 = vpop.f32.mrb[0].mxu0 }
  0xf6   :  { %v5473_v3 = vpop.f32.mrb[1].mxu0 }
  0xf7   :  { %v5474_v4 = vadd.f32 %v5473_v3, %v5472_v1  ;;  %v5475_v5 = vpop.f32.mrb[2].mxu0 }
  0xf8   :  { %v5476_v6 = vpop.f32.mrb[3].mxu0 }
  0xf9   :  { %v404_v7 = vadd.f32 %v5474_v4, %v6290_v2  ;;  %v5477_v8 = vadd.f32 %v5476_v6, %v5475_v5  ;;  %v614_v5 = vsel %vm6324_vm5, 65537, %v6028_v45 }
  0xfb   :  { %v407_v10 = vadd.f32 %v5477_v8, %v6290_v2  ;;  %v530_v11 = vmax.f32 %v404_v7, 0.0  ;;  %v642_v8 = vsel %vm641_vm6, 65537, %v6028_v45 }
  0xfc   :  { %v646_v24 = vrot.slane %v642_v8, %v6305_v29 }
  0xfd   :  { %v531_v12 = vmax.f32 %v407_v10, 0.0  ;;  %v5478_v13 = vpop.f32.mrb[4].mxu0 }
  0xfe   :  { %v5479_v15 = vpop.f32.mrb[5].mxu0  ;;  %vm6350_vm9 = vcmp.ne.s16.totalorder %v646_v24, 0 }
  0xff   :  { %v6294_v16 = vpack.c.bf16 %v531_v12, %v530_v11  ;;  %v5480_v17 = vadd.f32 %v5479_v15, %v5478_v13  ;;  %v5481_v18 = vpop.f32.mrb[6].mxu0  ;;  %v618_v13 = vrot.slane %v614_v5, %v6305_v29 }
 0x100   :  { %v5482_v19 = vpop.f32.mrb[7].mxu0 }
 0x101   :  { %578 = vst [vmem:[#allocation2] sm:$0xff] %v6294_v16  ;;  %v412_v20 = vadd.f32 %v5480_v17, %v6290_v2  ;;  %v5483_v21 = vadd.f32 %v5482_v19, %v5481_v18  ;;  %vm6346_vm8 = vcmp.ne.s16.totalorder %v618_v13, 0 }
 0x103   :  { %v415_v23 = vadd.f32 %v5483_v21, %v6290_v2  ;;  %v532_v25 = vmax.f32 %v412_v20, 0.0 }
 0x105   :  { %v533_v26 = vmax.f32 %v415_v23, 0.0  ;;  %v5484_v27 = vpop.f32.mrb[8].mxu0 }
 0x106   :  { %v5485_v28 = vpop.f32.mrb[9].mxu0 }
 0x107   :  { %v563_v30 = vpack.c.bf16 %v533_v26, %v532_v25  ;;  %v5486_v31 = vadd.f32 %v5485_v28, %v5484_v27  ;;  %v5487_v32 = vpop.f32.mrb[10].mxu0 }
 0x108   :  { %v5488_v34 = vpop.f32.mrb[11].mxu0  ;;  %v687_v60 = vld [vmem:[#allocation2] sm:$0xf8] }
 0x109   :  { %579 = vst [vmem:[#allocation2 + $0x8] sm:$0xff] %v563_v30  ;;  %v420_v35 = vadd.f32 %v5486_v31, %v6290_v2  ;;  %v5489_v36 = vadd.f32 %v5488_v34, %v5487_v32 }
 0x10b   :  { %v423_v38 = vadd.f32 %v5489_v36, %v6290_v2  ;;  %v534_v39 = vmax.f32 %v420_v35, 0.0  ;;  %v5925_v36 = vld [vmem:[%s7819_s5 + $0x80] sm:$0xff]  }
 0x10d   :  { %v535_v40 = vmax.f32 %v423_v38, 0.0  ;;  %v5490_v41 = vpop.f32.mrb[12].mxu0 }
 0x10e   :  { %v5491_v43 = vpop.f32.mrb[13].mxu0 }
 0x10f   :  { %v6315_v44 = vpack.c.bf16 %v535_v40, %v534_v39  ;;  %v5492_v46 = vadd.f32 %v5491_v43, %v5490_v41  ;;  %v5493_v47 = vpop.f32.mrb[14].mxu0 }
 0x110   :  { %v5494_v48 = vpop.f32.mrb[15].mxu0  ;;  %v600_v12 = vld [vmem:[#allocation2 + $0x8] sm:$0x1f] }
 0x111   :  { %580 = vst [vmem:[#allocation2 + $0x10] sm:$0xff] %v6315_v44  ;;  %v428_v49 = vadd.f32 %v5492_v46, %v6290_v2  ;;  %v5495_v50 = vadd.f32 %v5494_v48, %v5493_v47  ;;  %v610_v51 = vsel %vm6311_vm2, %v6294_v16, %v6315_v44  ;;  %v684_v15 = vld [vmem:[#allocation2 + $0x8] sm:$0x7f]  ;;  %v5900_v46 = vld [vmem:[%s7819_s5 + $0x100] sm:$0xff]  }
 0x112   :  { %v624_v7 = vshll.u32 %v610_v51, 16  ;;  %v622_v26 = vshrl.u32 %v610_v51, 16 }
 0x113   :  { %v431_v52 = vadd.f32 %v5495_v50, %v6290_v2  ;;  %v536_v53 = vmax.f32 %v428_v49, 0.0 }
 0x114   :  { %v626_v21 = vrot.slane %v624_v7, 1 }
 0x115   :  { %v537_v54 = vmax.f32 %v431_v52, 0.0  ;;  %v5496_v55 = vpop.f32.mrb[16].mxu0 }
 0x116   :  { %v5497_v56 = vpop.f32.mrb[17].mxu0  ;;  %v627_v38 = vor.u32 %v626_v21, %v622_v26 }
 0x117   :  { %v565_v57 = vpack.c.bf16 %v537_v54, %v536_v53  ;;  %v5498_v58 = vadd.f32 %v5497_v56, %v5496_v55  ;;  %v5499_v59 = vpop.f32.mrb[18].mxu0  ;;  %v683_v56 = vld [vmem:[#allocation2] sm:$0xfc] }
 0x118   :  { %v688_v61 = vld [vmem:[#allocation2 + $0x10] sm:$0xf8]  ;;  %v5500_v63 = vpop.f32.mrb[19].mxu0 }
 0x119   :  { %v689_v0 = vsel %vm6311_vm2, %v687_v60, %v688_v61  ;;  %581 = vst [vmem:[#allocation2 + $0x18] sm:$0xff] %v565_v57  ;;  %v436_v1 = vadd.f32 %v5498_v58, %v6290_v2  ;;  %v5501_v3 = vadd.f32 %v5500_v63, %v5499_v59  ;;  %v685_v50 = vld [vmem:[#allocation2 + $0x10] sm:$0xfc] }
 0x11a   :  { %v694_v4 = vshll.u32 %v689_v0, 16  ;;  %v692_v27 = vshrl.u32 %v689_v0, 16 }
 0x11b   :  { %v439_v6 = vadd.f32 %v5501_v3, %v6290_v2  ;;  %v538_v9 = vmax.f32 %v436_v1, 0.0 }
 0x11c   :  { %v696_v17 = vrot.slane %v694_v4, 1 }
 0x11d   :  { %v539_v10 = vmax.f32 %v439_v6, 0.0  ;;  %v5502_v11 = vpop.f32.mrb[20].mxu0 }
 0x11e   :  { %v5503_v14 = vpop.f32.mrb[21].mxu0  ;;  %v697_v35 = vor.u32 %v696_v17, %v692_v27 }
 0x11f   :  { %v6337_v18 = vpack.c.bf16 %v539_v10, %v538_v9  ;;  %v5504_v19 = vadd.f32 %v5503_v14, %v5502_v11  ;;  %v5505_v20 = vpop.f32.mrb[22].mxu0  ;;  %v597_v9 = vld [vmem:[#allocation2 + $0x8] sm:$0xf] }
 0x120   :  { %v601_v23 = vld [vmem:[#allocation2 + $0x18] sm:$0x1f]  ;;  %v5506_v32 = vpop.f32.mrb[23].mxu0 }
 0x121   :  { %v686_v25 = vld [vmem:[#allocation2 + $0x18] sm:$0x7f]  ;;  %v611_v28 = vsel %vm6311_vm2, %v600_v12, %v601_v23  ;;  %582 = vst [vmem:[#allocation2 + $0x20] sm:$0xff] %v6337_v18  ;;  %v444_v31 = vadd.f32 %v5504_v19, %v6290_v2  ;;  %v5507_v37 = vadd.f32 %v5506_v32, %v5505_v20 }
 0x122   :  { %v690_v30 = vsel %vm6311_vm2, %v684_v15, %v686_v25  ;;  %v629_v33 = vshll.u32 %v611_v28, 16  ;;  %v633_v40 = vshrl.u32 %v611_v28, 16  ;;  %v599_v57 = vld [vmem:[#allocation2 + $0x18] sm:$0xf] }
 0x123   :  { %v699_v34 = vshll.u32 %v690_v30, 16  ;;  %v703_v43 = vshrl.u32 %v690_v30, 16  ;;  %v540_v47 = vmax.f32 %v444_v31, 0.0  ;;  %v447_v48 = vadd.f32 %v5507_v37, %v6290_v2 }
 0x124   :  { %v631_v39 = vrot.slane %v629_v33, 1 }
 0x125   :  { %v701_v41 = vrot.slane %v699_v34, 1  ;;  %v5508_v49 = vpop.f32.mrb[24].mxu0  ;;  %v541_v59 = vmax.f32 %v447_v48, 0.0 }
 0x126   :  { %v5509_v53 = vpop.f32.mrb[25].mxu0  ;;  %v632_v54 = vsel %vm620_vm7, %v627_v38, %v631_v39  ;;  %v635_v55 = vor.u32 %v633_v40, %v631_v39 }
 0x127   :  { %v702_v51 = vsel %vm620_vm7, %v697_v35, %v701_v41  ;;  %v705_v52 = vor.u32 %v703_v43, %v701_v41  ;;  %v5510_v60 = vadd.f32 %v5509_v53, %v5508_v49  ;;  %v5511_v61 = vpop.f32.mrb[26].mxu0  ;;  %v638_v63 = vsel %vm6346_vm8, %v6315_v44, %v632_v54 }
 0x128   :  { %v708_v58 = vsel %vm6346_vm8, %v685_v50, %v702_v51  ;;  %v5512_v1 = vpop.f32.mrb[27].mxu0  ;;  %v6367_v3 = vsel %vm6350_vm9, %v6294_v16, %v638_v63  ;;  %v639_v4 = vsel %vm6346_vm8, %v599_v57, %v635_v55  ;;  %v567_v7 = vpack.c.bf16 %v541_v59, %v540_v47  ;;  %v738_v50 = vld [vmem:[#allocation2 + $0x20] sm:$0xf8] }
 0x129   :  { %v709_v0 = vsel %vm6346_vm8, %v686_v25, %v705_v52  ;;  %v710_v5 = vsel %vm6350_vm9, %v683_v56, %v708_v58  ;;  %v452_v44 = vadd.f32 %v5510_v60, %v6290_v2  ;;  %v5513_v8 = vadd.f32 %v5512_v1, %v5511_v61 }
 0x12a   :  { %v711_v6 = vsel %vm6350_vm9, %v684_v15, %v709_v0  ;;  %v649_v16 = vsel %vm6350_vm9, %v597_v9, %v639_v4  ;;  %v714_v12 = vshrl.u32 %v710_v5, 16  ;;  %583 = vst [vmem:[#allocation2 + $0x28] sm:$0xff] %v567_v7  ;;  %v717_v14 = vshll.u32 %v710_v5, 16 }
 0x12b   :  { %v722_v10 = vshrl.u32 %v711_v6, 16  ;;  %v725_v11 = vshll.u32 %v711_v6, 16  ;;  %v455_v13 = vadd.f32 %v5513_v8, %v6290_v2  ;;  %651 = vst [vmem:[#allocation3 + $0x20] sm:$0xf] %v649_v16  ;;  %v542_v15 = vmax.f32 %v452_v44, 0.0 }
 0x12c   :  { %v716_v20 = vrot.slane %v714_v12, 2  ;;  %v719_v24 = vrot.slane %v717_v14, 3 }
 0x12d   :  { %v724_v17 = vrot.slane %v722_v10, 2  ;;  %v727_v19 = vrot.slane %v725_v11, 3  ;;  %v543_v21 = vmax.f32 %v455_v13, 0.0  ;;  %v5514_v23 = vpop.f32.mrb[28].mxu0 }
 0x12e   :  { %v5515_v25 = vpop.f32.mrb[29].mxu0  ;;  %v720_v31 = vor.u32 %v719_v24, %v716_v20 }
 0x12f   :  { %v728_v26 = vor.u32 %v727_v19, %v724_v17  ;;  %v6379_v27 = vpack.c.bf16 %v543_v21, %v542_v15  ;;  %v5516_v28 = vadd.f32 %v5515_v25, %v5514_v23  ;;  %v5517_v30 = vpop.f32.mrb[30].mxu0 }
 0x130   :  { %v5518_v32 = vpop.f32.mrb[31].mxu0 }
 0x131   :  { %733 = vst [vmem:[#allocation3 + $0x30] sm:$0xf] %v728_v26  ;;  %584 = vst [vmem:[#allocation2 + $0x30] sm:$0xff] %v6379_v27  ;;  %v460_v33 = vadd.f32 %v5516_v28, %v6290_v2  ;;  %v5519_v34 = vadd.f32 %v5518_v32, %v5517_v30  ;;  %v658_v35 = vsel %vm6311_vm2, %v6337_v18, %v6379_v27  ;;  %v656_v63 = vld [vmem:[#allocation2 + $0x28] sm:$0x1f] }
 0x132   :  { %v6388_v37 = vsel %vm712_vm10, %v720_v31, %v728_v26  ;;  %v663_v58 = vshll.u32 %v658_v35, 16  ;;  %v735_v1 = vld [vmem:[#allocation2 + $0x28] sm:$0x7f]  ;;  %v661_v10 = vshrl.u32 %v658_v35, 16 }
 0x133   :  { %v463_v38 = vadd.f32 %v5519_v34, %v6290_v2  ;;  %v544_v39 = vmax.f32 %v460_v33, 0.0 }
 0x134   :  { %v665_v44 = vrot.slane %v663_v58, 1 }
 0x135   :  { %v545_v40 = vmax.f32 %v463_v38, 0.0  ;;  %v5520_v41 = vpop.f32.mrb[32].mxu0 }
 0x136   :  { %v5521_v43 = vpop.f32.mrb[33].mxu0  ;;  %v666_v21 = vor.u32 %v665_v44, %v661_v10 }
 0x137   :  { %v569_v47 = vpack.c.bf16 %v545_v40, %v544_v39  ;;  %v5522_v48 = vadd.f32 %v5521_v43, %v5520_v41  ;;  %v5523_v49 = vpop.f32.mrb[34].mxu0  ;;  %v5885_v39 = vld [vmem:[%s7817_s3 + $0x80] sm:$0xff]  }
 0x138   :  { %v739_v51 = vld [vmem:[#allocation2 + $0x30] sm:$0xf8]  ;;  %v5524_v52 = vpop.f32.mrb[35].mxu0  ;;  %v734_v41 = vld [vmem:[#allocation2 + $0x20] sm:$0xfc] }
 0x139   :  { %v740_v53 = vsel %vm6311_vm2, %v738_v50, %v739_v51  ;;  %585 = vst [vmem:[#allocation2 + $0x38] sm:$0xff] %v569_v47  ;;  %v468_v54 = vadd.f32 %v5522_v48, %v6290_v2  ;;  %v5525_v55 = vadd.f32 %v5524_v52, %v5523_v49  ;;  %v736_v32 = vld [vmem:[#allocation2 + $0x30] sm:$0xfc] }
 0x13a   :  { %v745_v56 = vshll.u32 %v740_v53, 16  ;;  %v743_v11 = vshrl.u32 %v740_v53, 16 }
 0x13b   :  { %v471_v57 = vadd.f32 %v5525_v55, %v6290_v2  ;;  %v546_v59 = vmax.f32 %v468_v54, 0.0  ;;  %v5886_v55 = vld [vmem:[%s7817_s3 + $0xc8] sm:$0xff]  }
 0x13c   :  { %v747_v4 = vrot.slane %v745_v56, 1  ;;  %v653_v56 = vld [vmem:[#allocation2 + $0x28] sm:$0xf] }
 0x13d   :  { %v547_v60 = vmax.f32 %v471_v57, 0.0  ;;  %v5526_v61 = vpop.f32.mrb[36].mxu0 }
 0x13e   :  { %v5527_v0 = vpop.f32.mrb[37].mxu0  ;;  %v748_v20 = vor.u32 %v747_v4, %v743_v11 }
 0x13f   :  { %v6395_v5 = vpack.c.bf16 %v547_v60, %v546_v59  ;;  %v5528_v6 = vadd.f32 %v5527_v0, %v5526_v61  ;;  %v5529_v7 = vpop.f32.mrb[38].mxu0 }
 0x140   :  { %v657_v8 = vld [vmem:[#allocation2 + $0x38] sm:$0x1f]  ;;  %v5530_v14 = vpop.f32.mrb[39].mxu0 }
 0x141   :  { %v737_v9 = vld [vmem:[#allocation2 + $0x38] sm:$0x7f]  ;;  %v659_v16 = vsel %vm6311_vm2, %v656_v63, %v657_v8  ;;  %586 = vst [vmem:[#allocation2 + $0x40] sm:$0xff] %v6395_v5  ;;  %v476_v13 = vadd.f32 %v5528_v6, %v6290_v2  ;;  %v5531_v15 = vadd.f32 %v5530_v14, %v5529_v7  ;;  %v5887_v6 = vld [vmem:[%s7817_s3 + $0x88] sm:$0xff]  }
 0x142   :  { %v741_v12 = vsel %vm6311_vm2, %v735_v1, %v737_v9  ;;  %v668_v17 = vshll.u32 %v659_v16, 16  ;;  %v672_v23 = vshrl.u32 %v659_v16, 16  ;;  %v655_v43 = vld [vmem:[#allocation2 + $0x38] sm:$0xf] }
 0x143   :  { %v750_v19 = vshll.u32 %v741_v12, 16  ;;  %v754_v25 = vshrl.u32 %v741_v12, 16  ;;  %v548_v28 = vmax.f32 %v476_v13, 0.0  ;;  %v479_v30 = vadd.f32 %v5531_v15, %v6290_v2  ;;  %v5889_v15 = vld [vmem:[%s7817_s3 + $0x90] sm:$0xff]  }
 0x144   :  { %v670_v26 = vrot.slane %v668_v17, 1 }
 0x145   :  { %v752_v24 = vrot.slane %v750_v19, 1  ;;  %v5532_v31 = vpop.f32.mrb[40].mxu0  ;;  %v549_v47 = vmax.f32 %v479_v30, 0.0 }
 0x146   :  { %v5533_v35 = vpop.f32.mrb[41].mxu0  ;;  %v671_v38 = vsel %vm620_vm7, %v666_v21, %v670_v26  ;;  %v674_v40 = vor.u32 %v672_v23, %v670_v26 }
 0x147   :  { %v753_v33 = vsel %vm620_vm7, %v748_v20, %v752_v24  ;;  %v756_v34 = vor.u32 %v754_v25, %v752_v24  ;;  %v5534_v48 = vadd.f32 %v5533_v35, %v5532_v31  ;;  %v5535_v49 = vpop.f32.mrb[42].mxu0  ;;  %v677_v50 = vsel %vm6346_vm8, %v6379_v27, %v671_v38  ;;  %v5890_v24 = vld [vmem:[%s7817_s3 + $0xd8] sm:$0xff]  }
 0x148   :  { %v759_v51 = vsel %vm6346_vm8, %v736_v32, %v753_v33  ;;  %v5536_v53 = vpop.f32.mrb[43].mxu0  ;;  %v679_v54 = vsel %vm6350_vm9, %v6337_v18, %v677_v50  ;;  %v678_v57 = vsel %vm6346_vm8, %v655_v43, %v674_v40  ;;  %v571_v58 = vpack.c.bf16 %v549_v47, %v548_v28  ;;  %v5891_v32 = vld [vmem:[%s7817_s3 + $0x98] sm:$0xff]   ;;  %v5892_v33 = vld [vmem:[%s7817_s3 + $0xe0] sm:$0xff]  }
 0x149   :  { %v760_v52 = vsel %vm6346_vm8, %v737_v9, %v756_v34  ;;  %v761_v27 = vsel %vm6350_vm9, %v734_v41, %v759_v51  ;;  %v484_v59 = vadd.f32 %v5534_v48, %v6290_v2  ;;  %v5537_v60 = vadd.f32 %v5536_v53, %v5535_v49  ;;  %1269 = vmatprep.mubr.bf16.mxu1 %v679_v54  ;;  %v5893_v47 = vld [vmem:[%s7817_s3 + $0xa0] sm:$0xff]   ;;  %v5894_v51 = vld [vmem:[%s7817_s3 + $0xe8] sm:$0xff]  }
 0x14a   :  { %v680_v61 = vsel %vm6350_vm9, %v653_v56, %v678_v57  ;;  %1270 = vmatmul.mubr.bf16.vlgmr.msra.gmra.mrb[0].mxu1 %v6367_v3  ;;  %v762_v18 = vsel %vm6350_vm9, %v735_v1, %v760_v52  ;;  %v764_v63 = vshrl.u32 %v761_v27, 16  ;;  %v767_v0 = vshll.u32 %v761_v27, 16  ;;  %587 = vst [vmem:[#allocation2 + $0x48] sm:$0xff] %v571_v58  ;;  %v5888_v3 = vld [vmem:[%s7817_s3 + $0xd0] sm:$0xff]   ;;  %v865_v48 = vld [vmem:[#allocation2 + $0x40] sm:$0xf8] }
 0x14b   :  { %682 = vst [vmem:[#allocation3 + $0x28] sm:$0xf] %v680_v61  ;;  %v487_v4 = vadd.f32 %v5537_v60, %v6290_v2  ;;  %5603 = vmatpush3.bf16.msra.mxu1 %v5885_v39  ;;  %v772_v7 = vshrl.u32 %v762_v18, 16  ;;  %v775_v44 = vshll.u32 %v762_v18, 16  ;;  %v550_v1 = vmax.f32 %v484_v59, 0.0  ;;  %v5895_v27 = vld [vmem:[%s7817_s3 + $0xa8] sm:$0xff]  }
 0x14c   :  { %5604 = vmatprep.subr.bf16.mxu1 %v5886_v55  ;;  %v766_v8 = vrot.slane %v764_v63, 2  ;;  %v769_v9 = vrot.slane %v767_v0, 3  ;;  %v5896_v58 = vld [vmem:[%s7817_s3 + $0xf0] sm:$0xff]  }
 0x14d   :  { %v551_v10 = vmax.f32 %v487_v4, 0.0  ;;  %v5538_v11 = vpop.f32.mrb[44].mxu0  ;;  %v774_v16 = vrot.slane %v772_v7, 2  ;;  %v777_v12 = vrot.slane %v775_v44, 3 }
 0x14e   :  { %v5539_v13 = vpop.f32.mrb[45].mxu0  ;;  %v770_v14 = vor.u32 %v769_v9, %v766_v8  ;;  %v5897_v8 = vld [vmem:[%s7817_s3 + $0xb0] sm:$0xff]  }
 0x14f   :  { %v6439_v17 = vpack.c.bf16 %v551_v10, %v550_v1  ;;  %v5540_v19 = vadd.f32 %v5539_v13, %v5538_v11  ;;  %v5541_v20 = vpop.f32.mrb[46].mxu0  ;;  %5605 = vmatpush3.bf16.msra.mxu1 %v5887_v6  ;;  %v778_v21 = vor.u32 %v777_v12, %v774_v16  ;;  %v5898_v11 = vld [vmem:[%s7817_s3 + $0xf8] sm:$0xff]  }
 0x150   :  { %v5542_v23 = vpop.f32.mrb[47].mxu0  ;;  %5606 = vmatprep.subr.bf16.mxu1 %v5888_v3 }
 0x151   :  { %588 = vst [vmem:[#allocation2 + $0x50] sm:$0xff] %v6439_v17  ;;  %v790_v25 = vsel %vm6311_vm2, %v6395_v5, %v6439_v17  ;;  %v492_v26 = vadd.f32 %v5540_v19, %v6290_v2  ;;  %v5543_v28 = vadd.f32 %v5542_v23, %v5541_v20  ;;  %v6454_v30 = vsel %vm712_vm10, %v770_v14, %v778_v21  ;;  %v788_v18 = vld [vmem:[#allocation2 + $0x48] sm:$0x1f] }
 0x152   :  { %783 = vst [vmem:[#allocation3 + $0x38] sm:$0xf] %v778_v21  ;;  %v795_v55 = vshll.u32 %v790_v25, 16  ;;  %v6479_v0 = vld [vmem:[#allocation2 + $0x48] sm:$0x7f]  ;;  %v793_v9 = vshrl.u32 %v790_v25, 16 }
 0x153   :  { %v495_v31 = vadd.f32 %v5543_v28, %v6290_v2  ;;  %5607 = vmatpush3.bf16.msra.mxu1 %v5889_v15  ;;  %v552_v34 = vmax.f32 %v492_v26, 0.0  ;;  %v5899_v25 = vld [vmem:[%s7817_s3 + $0xb8] sm:$0xff]  }
 0x154   :  { %5608 = vmatprep.subr.bf16.mxu1 %v5890_v24  ;;  %v797_v4 = vrot.slane %v795_v55, 1 }
 0x155   :  { %v553_v35 = vmax.f32 %v495_v31, 0.0  ;;  %v5544_v38 = vpop.f32.mrb[48].mxu0 }
 0x156   :  { %v5545_v39 = vpop.f32.mrb[49].mxu0  ;;  %v798_v21 = vor.u32 %v797_v4, %v793_v9 }
 0x157   :  { %v573_v40 = vpack.c.bf16 %v553_v35, %v552_v34  ;;  %v5546_v41 = vadd.f32 %v5545_v39, %v5544_v38  ;;  %v5547_v43 = vpop.f32.mrb[50].mxu0  ;;  %5609 = vmatpush3.bf16.msra.mxu1 %v5891_v32 }
 0x158   :  { %v866_v49 = vld [vmem:[#allocation2 + $0x50] sm:$0xf8]  ;;  %v5548_v50 = vpop.f32.mrb[51].mxu0  ;;  %5610 = vmatprep.subr.bf16.mxu1 %v5892_v33 }
 0x159   :  { %v867_v52 = vsel %vm6311_vm2, %v865_v48, %v866_v49  ;;  %589 = vst [vmem:[#allocation2 + $0x58] sm:$0xff] %v573_v40  ;;  %v500_v53 = vadd.f32 %v5546_v41, %v6290_v2  ;;  %v5549_v54 = vadd.f32 %v5548_v50, %v5547_v43  ;;  %v863_v38 = vld [vmem:[#allocation2 + $0x50] sm:$0xfc]  ;;  %v861_v48 = vld [vmem:[#allocation2 + $0x40] sm:$0xfc] }
 0x15a   :  { %v872_v56 = vshll.u32 %v867_v52, 16  ;;  %v870_v16 = vshrl.u32 %v867_v52, 16 }
 0x15b   :  { %v503_v57 = vadd.f32 %v5549_v54, %v6290_v2  ;;  %5611 = vmatpush3.bf16.msra.mxu1 %v5893_v47  ;;  %v554_v59 = vmax.f32 %v500_v53, 0.0 }
 0x15c   :  { %5612 = vmatprep.subr.bf16.mxu1 %v5894_v51  ;;  %v874_v6 = vrot.slane %v872_v56, 1 }
 0x15d   :  { %v555_v60 = vmax.f32 %v503_v57, 0.0  ;;  %v5550_v61 = vpop.f32.mrb[52].mxu0 }
 0x15e   :  { %v5551_v63 = vpop.f32.mrb[53].mxu0  ;;  %v875_v23 = vor.u32 %v874_v6, %v870_v16 }
 0x15f   :  { %v6481_v7 = vpack.c.bf16 %v555_v60, %v554_v59  ;;  %v5552_v44 = vadd.f32 %v5551_v63, %v5550_v61  ;;  %v5553_v3 = vpop.f32.mrb[54].mxu0  ;;  %5613 = vmatpush3.bf16.msra.mxu1 %v5895_v27  ;;  %v785_v59 = vld [vmem:[#allocation2 + $0x48] sm:$0xf] }
 0x160   :  { %v789_v1 = vld [vmem:[#allocation2 + $0x58] sm:$0x1f]  ;;  %5614 = vmatprep.subr.bf16.mxu1 %v5896_v58  ;;  %v5554_v19 = vpop.f32.mrb[55].mxu0 }
 0x161   :  { %v864_v10 = vld [vmem:[#allocation2 + $0x58] sm:$0x7f]  ;;  %v791_v12 = vsel %vm6311_vm2, %v788_v18, %v789_v1  ;;  %590 = vst [vmem:[#allocation2 + $0x60] sm:$0xff] %v6481_v7  ;;  %v508_v14 = vadd.f32 %v5552_v44, %v6290_v2  ;;  %v5555_v24 = vadd.f32 %v5554_v19, %v5553_v3 }
 0x162   :  { %v868_v13 = vsel %vm6311_vm2, %v6479_v0, %v864_v10  ;;  %v800_v20 = vshll.u32 %v791_v12, 16  ;;  %v804_v28 = vshrl.u32 %v791_v12, 16  ;;  %v787_v49 = vld [vmem:[#allocation2 + $0x58] sm:$0xf] }
 0x163   :  { %v877_v15 = vshll.u32 %v868_v13, 16  ;;  %5615 = vmatpush3.bf16.msra.mxu1 %v5897_v8  ;;  %v881_v32 = vshrl.u32 %v868_v13, 16  ;;  %v556_v33 = vmax.f32 %v508_v14, 0.0  ;;  %v511_v34 = vadd.f32 %v5555_v24, %v6290_v2 }
 0x164   :  { %v802_v26 = vrot.slane %v800_v20, 1  ;;  %5616 = vmatprep.subr.bf16.mxu1 %v5898_v11 }
 0x165   :  { %v879_v31 = vrot.slane %v877_v15, 1  ;;  %v5556_v35 = vpop.f32.mrb[56].mxu0  ;;  %v557_v50 = vmax.f32 %v511_v34, 0.0 }
 0x166   :  { %v806_v39 = vor.u32 %v804_v28, %v802_v26  ;;  %v5557_v41 = vpop.f32.mrb[57].mxu0  ;;  %v803_v43 = vsel %vm620_vm7, %v798_v21, %v802_v26 }
 0x167   :  { %v883_v40 = vor.u32 %v881_v32, %v879_v31  ;;  %v880_v47 = vsel %vm620_vm7, %v875_v23, %v879_v31  ;;  %v5558_v51 = vadd.f32 %v5557_v41, %v5556_v35  ;;  %v5559_v52 = vpop.f32.mrb[58].mxu0  ;;  %v809_v53 = vsel %vm6346_vm8, %v6439_v17, %v803_v43  ;;  %5617 = vmatpush3.bf16.msra.mxu1 %v5899_v25 }
 0x168   :  { %v886_v54 = vsel %vm6346_vm8, %v863_v38, %v880_v47  ;;  %v810_v55 = vsel %vm6346_vm8, %v787_v49, %v806_v39  ;;  %v5560_v57 = vpop.f32.mrb[59].mxu0  ;;  %v811_v27 = vsel %vm6350_vm9, %v6395_v5, %v809_v53  ;;  %v575_v17 = vpack.c.bf16 %v557_v50, %v556_v33  ;;  %v916_v39 = vld [vmem:[#allocation2 + $0x60] sm:$0xf8] }
 0x169   :  { %v887_v56 = vsel %vm6346_vm8, %v864_v10, %v883_v40  ;;  %v888_v58 = vsel %vm6350_vm9, %v861_v48, %v886_v54  ;;  %v516_v60 = vadd.f32 %v5558_v51, %v6290_v2  ;;  %v5561_v61 = vadd.f32 %v5560_v57, %v5559_v52 }
 0x16a   :  { %v816_v18 = vrot.slane %v811_v27, 4  ;;  %v812_v63 = vsel %vm6350_vm9, %v785_v59, %v810_v55  ;;  %v892_v4 = vshrl.u32 %v888_v58, 16  ;;  %v895_v6 = vshll.u32 %v888_v58, 16  ;;  %591 = vst [vmem:[#allocation2 + $0x68] sm:$0xff] %v575_v17 }
 0x16b   :  { %v889_v44 = vsel %vm6350_vm9, %v6479_v0, %v887_v56  ;;  %v519_v5 = vadd.f32 %v5561_v61, %v6290_v2  ;;  %v817_v3 = vrot.slane %v812_v63, 4  ;;  %v558_v11 = vmax.f32 %v516_v60, 0.0 }
 0x16c   :  { %821 = vst [vmem:[#allocation3 + $0x20] sm:$0xf0] %v816_v18  ;;  %v900_v8 = vshrl.u32 %v889_v44, 16  ;;  %v894_v9 = vrot.slane %v892_v4, 6  ;;  %v897_v1 = vrot.slane %v895_v6, 7  ;;  %v903_v10 = vshll.u32 %v889_v44, 16 }
 0x16d   :  { %v559_v16 = vmax.f32 %v519_v5, 0.0  ;;  %v5562_v12 = vpop.f32.mrb[60].mxu0  ;;  %v6524_v13 = vsel %vm815_vm11, %v816_v18, %v817_v3  ;;  %v912_v3 = vld [vmem:[#allocation2 + $0x60] sm:$0xfc] }
 0x16e   :  { %v902_v14 = vrot.slane %v900_v8, 6  ;;  %v5563_v19 = vpop.f32.mrb[61].mxu0  ;;  %v898_v20 = vor.u32 %v897_v1, %v894_v9  ;;  %v905_v15 = vrot.slane %v903_v10, 7 }
 0x16f   :  { %v576_v0 = vpack.c.bf16 %v559_v16, %v558_v11  ;;  %v5564_v21 = vadd.f32 %v5563_v19, %v5562_v12  ;;  %v5565_v23 = vpop.f32.mrb[62].mxu0 }
 0x170   :  { %v5566_v24 = vpop.f32.mrb[63].mxu0  ;;  %910 = vst [vmem:[#allocation3 + $0x30] sm:$0xf0] %v898_v20  ;;  %v906_v25 = vor.u32 %v905_v15, %v902_v14 }
 0x171   :  { %592 = vst [vmem:[#allocation2 + $0x70] sm:$0xff] %v576_v0  ;;  %v829_v26 = vsel %vm6311_vm2, %v6481_v7, %v576_v0  ;;  %v524_v28 = vadd.f32 %v5564_v21, %v6290_v2  ;;  %v5567_v31 = vadd.f32 %v5566_v24, %v5565_v23  ;;  %v827_v48 = vld [vmem:[#allocation2 + $0x68] sm:$0x1f] }
 0x172   :  { %v6531_v32 = vsel %vm890_vm12, %v898_v20, %v906_v25  ;;  %v834_v43 = vshll.u32 %v829_v26, 16  ;;  %v913_v51 = vld [vmem:[#allocation2 + $0x68] sm:$0x7f]  ;;  %v832_v54 = vshrl.u32 %v829_v26, 16 }
 0x173   :  { %v527_v33 = vadd.f32 %v5567_v31, %v6290_v2  ;;  %v560_v34 = vmax.f32 %v524_v28, 0.0  ;;  %v824_v1 = vld [vmem:[#allocation2 + $0x68] sm:$0xf] }
 0x174   :  { %v836_v49 = vrot.slane %v834_v43, 1  ;;  %v5901_v43 = vld [vmem:[%s7819_s5 + $0x108] sm:$0xff]  }
 0x175   :  { %v561_v35 = vmax.f32 %v527_v33, 0.0 }
 0x176   :  { %v837_v58 = vor.u32 %v836_v49, %v832_v54  ;;  %v5907_v49 = vld [vmem:[%s7819_s5 + $0x8] sm:$0xff]  }
 0x177   :  { %v577_v38 = vpack.c.bf16 %v561_v35, %v560_v34 }
 0x178   :  { %v917_v40 = vld [vmem:[#allocation2 + $0x70] sm:$0xf8] }
 0x179   :  { %v918_v41 = vsel %vm6311_vm2, %v916_v39, %v917_v40  ;;  %593 = vst [vmem:[#allocation2 + $0x78] sm:$0xff] %v577_v38  ;;  %v914_v63 = vld [vmem:[#allocation2 + $0x70] sm:$0xfc]  ;;  %v966_v39 = vld [vmem:[#allocation3 + $0x20] sm:$0xff] }
 0x17a   :  { %v923_v47 = vshll.u32 %v918_v41, 16  ;;  %v921_v55 = vshrl.u32 %v918_v41, 16  ;;  %v6029_v41 = vmov 0.0  }
 0x17b   :  { %5777 = vmatprep.subr.bf16.mxu0 %v6029_v41  ;;  %5793 = vmatprep.mubr.msk.bf16.mxu0 %vm6030_vm13, %v6029_v41 }
 0x17c   :  { %v925_v50 = vrot.slane %v923_v47, 1  ;;  %5778 = vmatpush3.bf16.msra.mxu0 %v5900_v46  ;;  %v5904_v47 = vld [vmem:[%s7819_s5 + $0x40] sm:$0xff]  }
 0x17d   :  { %5779 = vmatprep.subr.bf16.mxu0 %v6029_v41  ;;  %5636 = vmatprep.subr.bf16.mxu1 %v5904_v47 }
 0x17e   :  { %v926_v59 = vor.u32 %v925_v50, %v921_v55  ;;  %v5908_v50 = vld [vmem:[%s7819_s5 + $0x120] sm:$0xff]  }
 0x180   :  { %v828_v52 = vld [vmem:[#allocation2 + $0x78] sm:$0x1f]  ;;  %5780 = vmatpush3.bf16.msra.mxu0 %v5901_v43 }
 0x181   :  { %v915_v53 = vld [vmem:[#allocation2 + $0x78] sm:$0x7f]  ;;  %v830_v2 = vsel %vm6311_vm2, %v827_v48, %v828_v52  ;;  %5781 = vmatprep.subr.bf16.mxu0 %v6029_v41  ;;  %v5905_v48 = vld [vmem:[%s7819_s5] sm:$0xff]  }
 0x182   :  { %v919_v56 = vsel %vm6311_vm2, %v913_v51, %v915_v53  ;;  %v839_v57 = vshll.u32 %v830_v2, 16  ;;  %v843_v60 = vshrl.u32 %v830_v2, 16  ;;  %v826_v8 = vld [vmem:[#allocation2 + $0x78] sm:$0xf]  ;;  %vm1518_vm2 = vcmask 1044480  }
 0x183   :  { %v928_v27 = vshll.u32 %v919_v56, 16  ;;  %v932_v18 = vshrl.u32 %v919_v56, 16 }
 0x184   :  { %v841_v17 = vrot.slane %v839_v57, 1  ;;  %v5911_v57 = vld [vmem:[%s7819_s5 + $0x58] sm:$0xff]  }
 0x185   :  { %v930_v61 = vrot.slane %v928_v27, 1  ;;  %v5912_v27 = vld [vmem:[%s7819_s5 + $0x128] sm:$0xff]  }
 0x186   :  { %v845_v4 = vor.u32 %v843_v60, %v841_v17  ;;  %v842_v44 = vsel %vm620_vm7, %v837_v58, %v841_v17  ;;  %v5914_v17 = vld [vmem:[%s7819_s5 + $0x60] sm:$0xff]   ;;  %v5915_v60 = vld [vmem:[%s7819_s5 + $0x130] sm:$0xff]  }
 0x187   :  { %v934_v6 = vor.u32 %v932_v18, %v930_v61  ;;  %v931_v5 = vsel %vm620_vm7, %v926_v59, %v930_v61  ;;  %v848_v42 = vsel %vm6346_vm8, %v576_v0, %v842_v44  ;;  %v5913_v59 = vld [vmem:[%s7819_s5 + $0x18] sm:$0xff]   ;;  %v5916_v61 = vld [vmem:[%s7819_s5 + $0x20] sm:$0xff]   ;;  %v5917_v18 = vld [vmem:[%s7819_s5 + $0x68] sm:$0xff]  }
 0x188   :  { %v937_v9 = vsel %vm6346_vm8, %v914_v63, %v931_v5  ;;  %v849_v10 = vsel %vm6346_vm8, %v826_v8, %v845_v4  ;;  %v850_v16 = vsel %vm6350_vm9, %v6481_v7, %v848_v42  ;;  %v5918_v63 = vld [vmem:[%s7819_s5 + $0x138] sm:$0xff]   ;;  %v5919_v4 = vld [vmem:[%s7819_s5 + $0x28] sm:$0xff]   ;;  %v5921_v44 = vld [vmem:[%s7819_s5 + $0x30] sm:$0xff]  }
 0x189   :  { %v938_v11 = vsel %vm6346_vm8, %v915_v53, %v934_v6  ;;  %v939_v12 = vsel %vm6350_vm9, %v912_v3, %v937_v9  ;;  %v854_v14 = vrot.slane %v850_v16, 4  ;;  %v851_v19 = vsel %vm6350_vm9, %v824_v1, %v849_v10  ;;  %v5910_v53 = vld [vmem:[%s7819_s5 + $0x10] sm:$0xff]   ;;  %v5922_v5 = vld [vmem:[%s7819_s5 + $0x78] sm:$0xff]   ;;  %v5924_v8 = vld [vmem:[%s7819_s5 + $0xc0] sm:$0xff]  }
 0x18a   :  { %v942_v20 = vshrl.u32 %v939_v12, 16  ;;  %v945_v15 = vshll.u32 %v939_v12, 16  ;;  %v855_v0 = vrot.slane %v851_v19, 4  ;;  %v940_v21 = vsel %vm6350_vm9, %v913_v51, %v938_v11  ;;  %v5909_v51 = vld [vmem:[%s7819_s5 + $0x50] sm:$0xff]   ;;  %v5923_v3 = vld [vmem:[%s7819_s5 + $0x38] sm:$0xff]  }
 0x18b   :  { %859 = vst [vmem:[#allocation3 + $0x28] sm:$0xf0] %v854_v14  ;;  %v950_v25 = vshrl.u32 %v940_v21, 16  ;;  %v953_v26 = vshll.u32 %v940_v21, 16  ;;  %v5920_v6 = vld [vmem:[%s7819_s5 + $0x70] sm:$0xff]  }
 0x18c   :  { %v944_v23 = vrot.slane %v942_v20, 6  ;;  %v947_v24 = vrot.slane %v945_v15, 7  ;;  %v856_v7 = vsel %vm815_vm11, %v854_v14, %v855_v0  ;;  %v5061_v21 = vld [vmem:[%s7818_s4] ss:$0 sm:$0xff] }
 0x18d   :  { %v952_v31 = vrot.slane %v950_v25, 6  ;;  %v955_v33 = vrot.slane %v953_v26, 7 }
 0x18e   :  { %v948_v28 = vor.u32 %v947_v24, %v944_v23 }
 0x18f   :  { %v956_v34 = vor.u32 %v955_v33, %v952_v31 }
 0x190   :  { %960 = vst [vmem:[#allocation3 + $0x38] sm:$0xf0] %v948_v28 }
 0x191   :  { %v957_v35 = vsel %vm890_vm12, %v948_v28, %v956_v34 }
 0x192   :  { %v967_v38 = vld [vmem:[#allocation3 + $0x28] sm:$0xff] }
 0x193   :  { %1277 = vmatprep.mubr.bf16.mxu1 %v967_v38 }
 0x194   :  { %1278 = vmatmul.mubr.bf16.gmra.mrb[4].mxu1 %v966_v39 }
 0x195   :  { %1285 = vmatprep.mubr.bf16.mxu1 %v856_v7 }
 0x197   :  { %v969_v40 = vld [vmem:[#allocation3 + $0x38] sm:$0xff] }
 0x19c   :  { %1286 = vmatmul.mubr.bf16.gmra.mrb[8].mxu1 %v6524_v13  ;;  %v968_v13 = vld [vmem:[#allocation3 + $0x30] sm:$0xff] }
 0x19d   :  { %1326 = vmatprep.mubr.bf16.mxu1 %v6454_v30  ;;  %v5903_v30 = vld [vmem:[%s7819_s5 + $0x118] sm:$0xff]  }
 0x1a4   :  { %1327 = vmatmul.mubr.bf16.vlgmr.msra.gmra.mrb[12].mxu1 %v6388_v37  ;;  %v5902_v37 = vld [vmem:[%s7819_s5 + $0x110] sm:$0xff]  }
 0x1a5   :  { %1334 = vmatprep.mubr.bf16.mxu1 %v969_v40  ;;  %5782 = vmatpush3.bf16.msra.mxu0 %v5902_v37 }
 0x1a6   :  { %5783 = vmatprep.subr.bf16.mxu0 %v6029_v41  ;;  %5637 = vmatpush3.bf16.msra.mxu1 %v5905_v48 }
 0x1a9   :  { %5784 = vmatpush3.bf16.msra.mxu0 %v5903_v30 }
 0x1aa   :  { %5785 = vmatprep.subr.bf16.mxu0 %v6029_v41 }
 0x1ac   :  { %1335 = vmatmul.mubr.bf16.gmra.mrb[16].mxu1 %v968_v13 }
 0x1ad   :  { %1342 = vmatprep.mubr.bf16.mxu1 %v957_v35  ;;  %5786 = vmatpush3.bf16.msra.mxu0 %v5908_v50 }
 0x1ae   :  { %5787 = vmatprep.subr.bf16.mxu0 %v6029_v41 }
 0x1b1   :  { %5788 = vmatpush3.bf16.msra.mxu0 %v5912_v27 }
 0x1b2   :  { %5789 = vmatprep.subr.bf16.mxu0 %v6029_v41 }
 0x1b4   :  { %1343 = vmatmul.mubr.bf16.gmra.mrb[20].mxu1 %v6531_v32  ;;  %v5906_v32 = vld [vmem:[%s7819_s5 + $0x48] sm:$0xff]  }
 0x1b5   :  { %5638 = vmatprep.subr.bf16.mxu1 %v5906_v32  ;;  %5790 = vmatpush3.bf16.msra.mxu0 %v5915_v60 }
 0x1b6   :  { %5639 = vmatpush3.bf16.msra.mxu1 %v5907_v49  ;;  %5791 = vmatprep.subr.bf16.mxu0 %v6029_v41 }
 0x1b7   :  { %5640 = vmatprep.subr.bf16.mxu1 %v5909_v51 }
 0x1b9   :  { %5792 = vmatpush3.bf16.msra.mxu0 %v5918_v63 }
 0x1ba   :  { %5641 = vmatpush3.bf16.msra.mxu1 %v5910_v53 }
 0x1bb   :  { %5642 = vmatprep.subr.bf16.mxu1 %v5911_v57 }
 0x1be   :  { %5643 = vmatpush3.bf16.msra.mxu1 %v5913_v59 }
 0x1bf   :  { %5644 = vmatprep.subr.bf16.mxu1 %v5914_v17 }
 0x1c2   :  { %5645 = vmatpush3.bf16.msra.mxu1 %v5916_v61 }
 0x1c3   :  { %5646 = vmatprep.subr.bf16.mxu1 %v5917_v18 }
 0x1c6   :  { %5647 = vmatpush3.bf16.msra.mxu1 %v5919_v4 }
 0x1c7   :  { %5648 = vmatprep.subr.bf16.mxu1 %v5920_v6 }
 0x1ca   :  { %5649 = vmatpush3.bf16.msra.mxu1 %v5921_v44 }
 0x1cb   :  { %5650 = vmatprep.subr.bf16.mxu1 %v5922_v5 }
 0x1ce   :  { %5651 = vmatpush3.bf16.msra.mxu1 %v5923_v3 }
 0x1cf   :  { %5658 = vmatprep.subr.bf16.mxu1 %v5924_v8 }
 0x21d   :  { %v5584_v52 = vpop.f32.mrb[0].mxu1 }
 0x21e   :  { %v5585_v54 = vpop.f32.mrb[1].mxu1 }
 0x21f   :  { %v5586_v55 = vadd.f32 %v5585_v54, %v5584_v52  ;;  %v5587_v2 = vpop.f32.mrb[2].mxu1 }
 0x220   :  { %v5588_v56 = vpop.f32.mrb[3].mxu1 }
 0x221   :  { %v5589_v58 = vadd.f32 %v5588_v56, %v5587_v2  ;;  %v1272_v25 = vadd.f32 %v5586_v55, %v5061_v21 }
 0x223   :  { %v1275_v31 = vadd.f32 %v5589_v58, %v5061_v21 }
 0x267   :  { %v5590_v42 = vpop.f32.mrb[4].mxu1 }
 0x268   :  { %v5591_v9 = vpop.f32.mrb[5].mxu1 }
 0x269   :  { %v5592_v1 = vadd.f32 %v5591_v9, %v5590_v42  ;;  %v5593_v10 = vpop.f32.mrb[6].mxu1 }
 0x26a   :  { %v5594_v11 = vpop.f32.mrb[7].mxu1 }
 0x26b   :  { %v5595_v16 = vadd.f32 %v5594_v11, %v5593_v10  ;;  %v1280_v41 = vadd.f32 %v5592_v1, %v5061_v21 }
 0x26d   :  { %v1283_v47 = vadd.f32 %v5595_v16, %v5061_v21 }
 0x26f   :  { %v5596_v12 = vpop.f32.mrb[8].mxu1 }
 0x270   :  { %v5597_v14 = vpop.f32.mrb[9].mxu1 }
 0x271   :  { %v5598_v19 = vadd.f32 %v5597_v14, %v5596_v12  ;;  %v5599_v20 = vpop.f32.mrb[10].mxu1 }
 0x272   :  { %v5600_v15 = vpop.f32.mrb[11].mxu1 }
 0x273   :  { %v5601_v0 = vadd.f32 %v5600_v15, %v5599_v20  ;;  %v1288_v56 = vadd.f32 %v5598_v19, %v5061_v21 }
 0x275   :  { %v1291_v42 = vadd.f32 %v5601_v0, %v5061_v21 }
 0x277   :  { %v5618_v23 = vpop.f32.mrb[12].mxu1 }
 0x278   :  { %v5619_v24 = vpop.f32.mrb[13].mxu1 }
 0x279   :  { %v5620_v26 = vadd.f32 %v5619_v24, %v5618_v23  ;;  %v5621_v7 = vpop.f32.mrb[14].mxu1 }
 0x27a   :  { %v5622_v28 = vpop.f32.mrb[15].mxu1 }
 0x27b   :  { %v1329_v33 = vadd.f32 %v5620_v26, %v1272_v25  ;;  %v5623_v34 = vadd.f32 %v5622_v28, %v5621_v7 }
 0x27d   :  { %v1332_v35 = vadd.f32 %v5623_v34, %v1275_v31  ;;  %v1351_v38 = vmax.f32 %v1329_v33, 0.0 }
 0x27f   :  { %v1352_v39 = vmax.f32 %v1332_v35, 0.0  ;;  %v5624_v46 = vpop.f32.mrb[16].mxu1 }
 0x280   :  { %v5625_v40 = vpop.f32.mrb[17].mxu1 }
 0x281   :  { %v1357_v43 = vpack.c.bf16 %v1352_v39, %v1351_v38  ;;  %v5626_v13 = vadd.f32 %v5625_v40, %v5624_v46  ;;  %v5627_v37 = vpop.f32.mrb[18].mxu1 }
 0x282   :  { %v5628_v30 = vpop.f32.mrb[19].mxu1 }
 0x283   :  { %1360 = vst [vmem:[#allocation4] sm:$0xff] %v1357_v43  ;;  %v1337_v48 = vadd.f32 %v5626_v13, %v1280_v41  ;;  %v5629_v32 = vadd.f32 %v5628_v30, %v5627_v37 }
 0x285   :  { %v1340_v49 = vadd.f32 %v5629_v32, %v1283_v47  ;;  %v1353_v50 = vmax.f32 %v1337_v48, 0.0 }
 0x287   :  { %v1354_v51 = vmax.f32 %v1340_v49, 0.0  ;;  %v5630_v52 = vpop.f32.mrb[20].mxu1 }
 0x288   :  { %v5631_v53 = vpop.f32.mrb[21].mxu1 }
 0x289   :  { %v1358_v54 = vpack.c.bf16 %v1354_v51, %v1353_v50  ;;  %v5632_v55 = vadd.f32 %v5631_v53, %v5630_v52  ;;  %v5633_v2 = vpop.f32.mrb[22].mxu1 }
 0x28a   :  { %v1364_v57 = vld [vmem:[#allocation4] sm:$0x1f]  ;;  %v1406_v61 = vld [vmem:[#allocation4] sm:$0xe0]  ;;  %v5634_v5 = vpop.f32.mrb[23].mxu1 }
 0x28b   :  { %v1376_v27 = vld [vmem:[#allocation4] sm:$0x7c]  ;;  %v1368_v58 = vshll.u32 %v1364_v57, 16  ;;  %1361 = vst [vmem:[#allocation4 + $0x8] sm:$0xff] %v1358_v54  ;;  %v1345_v18 = vadd.f32 %v5632_v55, %v1288_v56  ;;  %v1366_v63 = vshrl.u32 %v1364_v57, 16  ;;  %v1412_v8 = vshll.u32 %v1406_v61, 16 }
 0x28c   :  { %v1378_v59 = vshrl.u32 %v1376_v27, 16  ;;  %v1381_v17 = vshll.u32 %v1376_v27, 16  ;;  %v1392_v60 = vld [vmem:[#allocation4] sm:$0xf8]  ;;  %v5635_v1 = vadd.f32 %v5634_v5, %v5633_v2  ;;  %v1410_v31 = vshrl.u32 %v1406_v61, 16 }
 0x28d   :  { %v1370_v4 = vrot.slane %v1368_v58, 1  ;;  %v1396_v3 = vshll.u32 %v1392_v60, 16  ;;  %v1363_v10 = vld [vmem:[#allocation4] sm:$0xf]  ;;  %v1394_v11 = vshrl.u32 %v1392_v60, 16  ;;  %v1414_v23 = vrot.slane %v1412_v8, 1 }
 0x28e   :  { %v1380_v6 = vrot.slane %v1378_v59, 1  ;;  %v1383_v44 = vrot.slane %v1381_v17, 2  ;;  %v1436_v14 = vld [vmem:[#allocation4] sm:$0xc0]  ;;  %v1348_v19 = vadd.f32 %v5635_v1, %v1291_v42  ;;  %v1375_v0 = vld [vmem:[#allocation4] sm:$0x1e] }
 0x28f   :  { %v1371_v9 = vor.u32 %v1370_v4, %v1366_v63  ;;  %v1398_v16 = vrot.slane %v1396_v3, 1  ;;  %v1391_v21 = vld [vmem:[#allocation4] sm:$0x78]  ;;  %v1441_v33 = vrot.slane %v1436_v14, 6  ;;  %v1355_v34 = vmax.f32 %v1345_v18, 0.0 }
 0x290   :  { %v1384_v12 = vor.u32 %v1383_v44, %v1380_v6  ;;  %v1356_v28 = vmax.f32 %v1348_v19, 0.0  ;;  %v1415_v40 = vor.u32 %v1414_v23, %v1410_v31 }
 0x291   :  { %v1373_v20 = vsel %vm6324_vm5, %v1363_v10, %v1371_v9  ;;  %v1399_v15 = vor.u32 %v1398_v16, %v1394_v11 }
 0x292   :  { %v1408_v24 = vld [vmem:[#allocation4 + $0x8] sm:$0x3]  ;;  %1374 = vst [vmem:[#allocation5] sm:$0xf] %v1373_v20  ;;  %v1386_v35 = vsel %vm6324_vm5, %v1375_v0, %v1384_v12  ;;  %v1447_v41 = vld [vmem:[#allocation4 + $0x8] sm:$0xf0]  ;;  %v1359_v43 = vpack.c.bf16 %v1356_v28, %v1355_v34 }
 0x293   :  { %v1437_v25 = vld [vmem:[#allocation4 + $0x8] sm:$0x3]  ;;  %v1417_v26 = vshll.u32 %v1408_v24, 16  ;;  %v1421_v39 = vshrl.u32 %v1408_v24, 16  ;;  %v1401_v46 = vsel %vm6324_vm5, %v1391_v21, %v1399_v15  ;;  %v1388_v30 = vrot.slane %v1386_v35, 1 }
 0x294   :  { %v1442_v7 = vrot.slane %v1437_v25, 6  ;;  %v1407_v47 = vld [vmem:[#allocation4 + $0x8] sm:$0x1]  ;;  %v1466_v48 = vld [vmem:[#allocation4 + $0x8] sm:$0xc0]  ;;  %1362 = vst [vmem:[#allocation4 + $0x10] sm:$0xff] %v1359_v43 }
 0x295   :  { %v1419_v38 = vrot.slane %v1417_v26, 1  ;;  %v1403_v49 = vrot.slane %v1401_v46, 3  ;;  %v1452_v50 = vshll.u32 %v1447_v41, 16  ;;  %1390 = vst [vmem:[#allocation5 + $0x8] sm:$0xf] %v1388_v30  ;;  %v1470_v55 = vshrl.u32 %v1466_v48, 16 }
 0x296   :  { %v1443_v13 = vsel %vm1440_vm14, %v1441_v33, %v1442_v7  ;;  %v1473_v2 = vshll.u32 %v1466_v48, 16  ;;  %v1450_v27 = vshrl.u32 %v1447_v41, 16  ;;  %v1498_v18 = vld [vmem:[#allocation4 + $0x8] sm:$0x80] }
 0x297   :  { %v1423_v37 = vor.u32 %v1421_v39, %v1419_v38  ;;  %1445 = vst [vmem:[#allocation5 + $0x20] sm:$0xf] %v1443_v13  ;;  %v1420_v32 = vsel %vm620_vm7, %v1415_v40, %v1419_v38  ;;  %1405 = vst [vmem:[#allocation5 + $0x10] sm:$0xf] %v1403_v49  ;;  %v1454_v57 = vrot.slane %v1452_v50, 1  ;;  %v1472_v58 = vrot.slane %v1470_v55, 1 }
 0x298   :  { %v1426_v51 = vsel %vm6346_vm8, %v1406_v61, %v1420_v32  ;;  %v1475_v59 = vrot.slane %v1473_v2, 2  ;;  %v1502_v11 = vshrl.u32 %v1498_v18, 16  ;;  %v1446_v14 = vld [vmem:[#allocation4 + $0x8] sm:$0xf0]  ;;  %v5929_v55 = vld [vmem:[%s7819_s5 + $0x90] sm:$0xff]   ;;  %v5930_v2 = vld [vmem:[%s7819_s5 + $0xd8] sm:$0xff]  }
 0x299   :  { %v1427_v52 = vsel %vm6346_vm8, %v1407_v47, %v1423_v37  ;;  %v1431_v53 = vrot.slane %v1426_v51, 5  ;;  %v1455_v6 = vor.u32 %v1454_v57, %v1450_v27  ;;  %v1464_v28 = vld [vmem:[#allocation4 + $0x8] sm:$0xe0]  ;;  %v5932_v57 = vld [vmem:[%s7819_s5 + $0xe0] sm:$0xff]  }
 0x29a   :  { %v1432_v54 = vrot.slane %v1427_v52, 5  ;;  %v1476_v10 = vor.u32 %v1475_v59, %v1472_v58  ;;  %v5933_v27 = vld [vmem:[%s7819_s5 + $0xa0] sm:$0xff]   ;;  %v5934_v58 = vld [vmem:[%s7819_s5 + $0xe8] sm:$0xff]  }
 0x29b   :  { %v1448_v17 = vld [vmem:[#allocation4 + $0x10] sm:$0x1]  ;;  %v1525_v5 = vld [vmem:[#allocation4 + $0x10] sm:$0x3e]  ;;  %v5935_v59 = vld [vmem:[%s7819_s5 + $0xa8] sm:$0xff]  }
 0x29c   :  { %v1433_v56 = vsel %vm1430_vm15, %v1431_v53, %v1432_v54  ;;  %v1467_v60 = vld [vmem:[#allocation4 + $0x10] sm:$0x7]  ;;  %v1457_v61 = vshll.u32 %v1448_v17, 16  ;;  %v1529_v16 = vshll.u32 %v1525_v5, 16  ;;  %v1527_v25 = vshrl.u32 %v1525_v5, 16  ;;  %v5927_v53 = vld [vmem:[%s7819_s5 + $0x88] sm:$0xff]  }
 0x29d   :  { %1435 = vst [vmem:[#allocation5 + $0x18] sm:$0xf] %v1433_v56  ;;  %v1478_v63 = vshrl.u32 %v1467_v60, 16  ;;  %v1481_v4 = vshll.u32 %v1467_v60, 16  ;;  %v1500_v44 = vld [vmem:[#allocation4 + $0x10] sm:$0xf] }
 0x29e   :  { %v1539_v3 = vld [vmem:[#allocation4 + $0x10] sm:$0x3c]  ;;  %v1459_v8 = vrot.slane %v1457_v61, 1  ;;  %v1505_v1 = vshll.u32 %v1500_v44, 16  ;;  %v1509_v15 = vshrl.u32 %v1500_v44, 16  ;;  %v1531_v26 = vrot.slane %v1529_v16, 1 }
 0x29f   :  { %v1480_v42 = vrot.slane %v1478_v63, 1  ;;  %v1483_v9 = vrot.slane %v1481_v4, 2  ;;  %v1541_v12 = vrot.slane %v1539_v3, 6  ;;  %v1465_v24 = vld [vmem:[#allocation4 + $0x10] sm:$0x1]  ;;  %v5931_v56 = vld [vmem:[%s7819_s5 + $0x98] sm:$0xff]  }
 0x2a0   :  { %v1507_v20 = vrot.slane %v1505_v1, 1  ;;  %v1460_v23 = vsel %vm620_vm7, %v1455_v6, %v1459_v8  ;;  %v1499_v34 = vld [vmem:[#allocation4 + $0x10] sm:$0x7]  ;;  %v1532_v39 = vor.u32 %v1531_v26, %v1527_v25  ;;  %v5939_v61 = vld [vmem:[%s7819_s5 + $0xb8] sm:$0xff]   ;;  %v2076_v4 = vld [vmem:[%s7821_s7 + $0x200] sm:$0xff] }
 0x2a1   :  { %v1484_v19 = vor.u32 %v1483_v9, %v1480_v42  ;;  %1543 = vst [vmem:[#allocation5 + $0x20] sm:$0xf0] %v1541_v12  ;;  %v1462_v7 = vsel %vm6324_vm5, %v1446_v14, %v1460_v23  ;;  %v1524_v43 = vld [vmem:[#allocation4 + $0x10] sm:$0x1e]  ;;  %v2080_v6 = vld [vmem:[%s7821_s7 + $0x220] sm:$0xff]  ;;  %v2077_v44 = vld [vmem:[%s7821_s7 + $0x208] sm:$0xff] }
 0x2a2   :  { %v1511_v0 = vor.u32 %v1509_v15, %v1507_v20  ;;  %1463 = vst [vmem:[#allocation5] sm:$0xf0] %v1462_v7  ;;  %v1508_v33 = vsel %vm620_vm7, %v1502_v11, %v1507_v20  ;;  %v1534_v30 = vsel %vm6324_vm5, %v1524_v43, %v1532_v39  ;;  %v5928_v54 = vld [vmem:[%s7819_s5 + $0xd0] sm:$0xff]   ;;  %v5135_v5 = vcombine.low %v2076_v4, %v2080_v6  ;;  %v2081_v8 = vld [vmem:[%s7821_s7 + $0x228] sm:$0xff]  ;;  %v2084_v42 = vld [vmem:[%s7821_s7 + $0x240] sm:$0xff] }
 0x2a3   :  { %v1485_v21 = vsel %vm1468_vm0, %v1476_v10, %v1484_v19  ;;  %v1489_v31 = vsel %vm6346_vm8, %v1465_v24, %v1484_v19  ;;  %v1514_v46 = vsel %vm6346_vm8, %v1498_v18, %v1508_v33  ;;  %v1536_v48 = vrot.slane %v1534_v30, 5  ;;  %v5936_v17 = vld [vmem:[%s7819_s5 + $0xf0] sm:$0xff]   ;;  %v5938_v18 = vld [vmem:[%s7819_s5 + $0xf8] sm:$0xff]   ;;  %v2088_v9 = vld [vmem:[%s7821_s7 + $0x260] sm:$0xff] }
 0x2a4   :  { %v1488_v35 = vsel %vm6346_vm8, %v1464_v28, %v1485_v21  ;;  %v1494_v38 = vrot.slane %v1489_v31, 1  ;;  %v1515_v40 = vsel %vm6346_vm8, %v1499_v34, %v1511_v0  ;;  %v1519_v13 = vrot.slane %v1514_v46, 3  ;;  %v5937_v60 = vld [vmem:[%s7819_s5 + $0xb0] sm:$0xff]   ;;  %v2085_v16 = vld [vmem:[%s7821_s7 + $0x248] sm:$0xff]  ;;  %v2092_v14 = vld [vmem:[%s7821_s7 + $0x280] sm:$0xff] }
 0x2a5   :  { %v1493_v41 = vrot.slane %v1488_v35, 1  ;;  %v1520_v37 = vrot.slane %v1515_v40, 3  ;;  %1538 = vst [vmem:[#allocation5 + $0x18] sm:$0xf0] %v1536_v48  ;;  %v5136_v3 = vcombine.high %v2076_v4, %v2080_v6  ;;  %v5137_v1 = vcombine.low %v2077_v44, %v2081_v8  ;;  %v2089_v12 = vld [vmem:[%s7821_s7 + $0x268] sm:$0xff]  ;;  %v2096_v20 = vld [vmem:[%s7821_s7 + $0x2a0] sm:$0xff] }
 0x2a6   :  { %v5138_v10 = vcombine.high %v2077_v44, %v2081_v8  ;;  %v5144_v11 = vcombine.high %v2084_v42, %v2088_v9  ;;  %v5146_v19 = vcombine.high %v2085_v16, %v2089_v12  ;;  %v2093_v15 = vld [vmem:[%s7821_s7 + $0x288] sm:$0xff]  ;;  %v5143_v24 = vcombine.low %v2084_v42, %v2088_v9  ;;  %v2100_v28 = vld [vmem:[%s7821_s7 + $0x2c0] sm:$0xff]  ;;  %v6816_v6 = vld [vmem:[%s7821_s7 + $0x210] sm:$0xff] }
 0x2a7   :  { %v1495_v47 = vsel %vm1492_vm1, %v1493_v41, %v1494_v38  ;;  %v1521_v32 = vsel %vm1518_vm2, %v1519_v13, %v1520_v37  ;;  %v2097_v23 = vld [vmem:[%s7821_s7 + $0x2a8] sm:$0xff]  ;;  %v5145_v25 = vcombine.low %v2085_v16, %v2089_v12  ;;  %v5152_v26 = vcombine.high %v2092_v14, %v2096_v20  ;;  %v2104_v0 = vld [vmem:[%s7821_s7 + $0x2e0] sm:$0xff]  ;;  %v6821_v44 = vld [vmem:[%s7821_s7 + $0x230] sm:$0xff] }
 0x2a8   :  { %1497 = vst [vmem:[#allocation5 + $0x8] sm:$0xf0] %v1495_v47  ;;  %v1548_v49 = vld [vmem:[#allocation5 + $0x20] sm:$0xff]  ;;  %1523 = vst [vmem:[#allocation5 + $0x10] sm:$0xf0] %v1521_v32  ;;  %2501 = vmatprep.subr.bf16.mxu0 %v5138_v10  ;;  %v5154_v7 = vcombine.high %v2093_v15, %v2097_v23  ;;  %v2101_v21 = vld [vmem:[%s7821_s7 + $0x2c8] sm:$0xff]  ;;  %v5151_v33 = vcombine.low %v2092_v14, %v2096_v20  ;;  %v5153_v34 = vcombine.low %v2093_v15, %v2097_v23 }
 0x2a9   :  { %5794 = vmatmul.mubr.bf16.vlgmr.msra.gmra.mrb[64].mxu0 %v1548_v49  ;;  %v1544_v51 = vld [vmem:[#allocation5] sm:$0xff]  ;;  %v2105_v31 = vld [vmem:[%s7821_s7 + $0x2e8] sm:$0xff]  ;;  %v5160_v35 = vcombine.high %v2100_v28, %v2104_v0  ;;  %v2108_v39 = vld [vmem:[%s7821_s7 + $0x300] sm:$0xff]  ;;  %v5159_v43 = vcombine.low %v2100_v28, %v2104_v0  ;;  %v5139_v8 = vcombine.low %v6816_v6, %v6821_v44  ;;  %v5140_v42 = vcombine.high %v6816_v6, %v6821_v44 }
 0x2aa   :  { %2533 = vmatprep.mubr.bf16.mxu0 %v6028_v45  ;;  %2502 = vmatpush1.bf16.msra.mxu0 %v5137_v1  ;;  %v5162_v38 = vcombine.high %v2101_v21, %v2105_v31  ;;  %v2112_v46 = vld [vmem:[%s7821_s7 + $0x320] sm:$0xff]  ;;  %v2109_v40 = vld [vmem:[%s7821_s7 + $0x308] sm:$0xff]  ;;  %v5161_v13 = vcombine.low %v2101_v21, %v2105_v31  ;;  %v2079_v9 = vld [vmem:[%s7821_s7 + $0x218] sm:$0xff] }
 0x2ab   :  { %2503 = vmatprep.subr.bf16.mxu0 %v5146_v19  ;;  %v2113_v41 = vld [vmem:[%s7821_s7 + $0x328] sm:$0xff]  ;;  %v5168_v37 = vcombine.high %v2108_v39, %v2112_v46  ;;  %v5167_v47 = vcombine.low %v2108_v39, %v2112_v46  ;;  %v2116_v32 = vld [vmem:[%s7821_s7 + $0x340] sm:$0xff]  ;;  %v2083_v1 = vld [vmem:[%s7821_s7 + $0x238] sm:$0xff] }
 0x2ac   :  { %v1547_v52 = vld [vmem:[#allocation5 + $0x18] sm:$0xff]  ;;  %v5170_v30 = vcombine.high %v2109_v40, %v2113_v41  ;;  %v5169_v48 = vcombine.low %v2109_v40, %v2113_v41  ;;  %v2120_v49 = vld [vmem:[%s7821_s7 + $0x360] sm:$0xff]  ;;  %v2137_v4 = vld [vmem:[%s7821_s7 + $0x3e8] sm:$0xff]  ;;  %v5141_v10 = vcombine.low %v2079_v9, %v2083_v1 }
 0x2ad   :  { %v2106_v6 = vld [vmem:[%s7821_s7 + $0x2f0] sm:$0xff]  ;;  %v2103_v44 = vld [vmem:[%s7821_s7 + $0x2d8] sm:$0xff] }
 0x2ae   :  { %2504 = vmatpush1.bf16.msra.mxu0 %v5145_v25 }
 0x2af   :  { %v1545_v50 = vld [vmem:[#allocation5 + $0x8] sm:$0xff]  ;;  %v1546_v63 = vld [vmem:[#allocation5 + $0x10] sm:$0xff]  ;;  %2505 = vmatprep.subr.bf16.mxu0 %v5154_v7 }
 0x2b0   :  { %1908 = vmatprep.mubr.bf16.mxu1 %v1545_v50  ;;  %v5176_v50 = vcombine.high %v2116_v32, %v2120_v49  ;;  %v5094_v7 = vld [vmem:[%s7820_s6] ss:$0 sm:$0xff] }
 0x2b1   :  { %1909 = vmatmul.mubr.bf16.vlgmr.msra.gmra.mrb[24].mxu1 %v1544_v51  ;;  %v5175_v51 = vcombine.low %v2116_v32, %v2120_v49  ;;  %v2091_v32 = vld [vmem:[%s7821_s7 + $0x278] sm:$0xff] }
 0x2b2   :  { %5659 = vmatpush3.bf16.msra.mxu1 %v5925_v36  ;;  %1949 = vmatprep.mubr.bf16.mxu1 %v1547_v52  ;;  %v2117_v36 = vld [vmem:[%s7821_s7 + $0x348] sm:$0xff] }
 0x2b3   :  { %5660 = vmatprep.subr.bf16.mxu1 %v5926_v62  ;;  %2506 = vmatpush1.bf16.msra.mxu0 %v5153_v34  ;;  %v2121_v62 = vld [vmem:[%s7821_s7 + $0x368] sm:$0xff] }
 0x2b4   :  { %2507 = vmatprep.subr.bf16.mxu0 %v5162_v38  ;;  %v5177_v52 = vcombine.low %v2117_v36, %v2121_v62 }
 0x2b6   :  { %5661 = vmatpush3.bf16.msra.mxu1 %v5927_v53  ;;  %v5178_v53 = vcombine.high %v2117_v36, %v2121_v62 }
 0x2b7   :  { %5662 = vmatprep.subr.bf16.mxu1 %v5928_v54  ;;  %2508 = vmatpush1.bf16.msra.mxu0 %v5161_v13  ;;  %v2124_v54 = vld [vmem:[%s7821_s7 + $0x380] sm:$0xff]  ;;  %v2086_v13 = vld [vmem:[%s7821_s7 + $0x250] sm:$0xff] }
 0x2b8   :  { %2509 = vmatprep.subr.bf16.mxu0 %v5170_v30 }
 0x2ba   :  { %5663 = vmatpush3.bf16.msra.mxu1 %v5929_v55  ;;  %v2128_v55 = vld [vmem:[%s7821_s7 + $0x3a0] sm:$0xff] }
 0x2bb   :  { %5664 = vmatprep.subr.bf16.mxu1 %v5930_v2  ;;  %2510 = vmatpush1.bf16.msra.mxu0 %v5169_v48  ;;  %v2125_v2 = vld [vmem:[%s7821_s7 + $0x388] sm:$0xff]  ;;  %v2087_v48 = vld [vmem:[%s7821_s7 + $0x258] sm:$0xff] }
 0x2bc   :  { %2511 = vmatprep.subr.bf16.mxu0 %v5178_v53 }
 0x2be   :  { %5665 = vmatpush3.bf16.msra.mxu1 %v5931_v56  ;;  %v5184_v56 = vcombine.high %v2124_v54, %v2128_v55 }
 0x2bf   :  { %5666 = vmatprep.subr.bf16.mxu1 %v5932_v57  ;;  %2512 = vmatpush1.bf16.msra.mxu0 %v5177_v52  ;;  %v2129_v57 = vld [vmem:[%s7821_s7 + $0x3a8] sm:$0xff] }
 0x2c2   :  { %5667 = vmatpush3.bf16.msra.mxu1 %v5933_v27  ;;  %v5183_v27 = vcombine.low %v2124_v54, %v2128_v55  ;;  %v5150_v55 = vcombine.high %v2087_v48, %v2091_v32 }
 0x2c3   :  { %5668 = vmatprep.subr.bf16.mxu1 %v5934_v58  ;;  %v5185_v58 = vcombine.low %v2125_v2, %v2129_v57 }
 0x2c6   :  { %5669 = vmatpush3.bf16.msra.mxu1 %v5935_v59  ;;  %v5186_v59 = vcombine.high %v2125_v2, %v2129_v57  ;;  %v2094_v2 = vld [vmem:[%s7821_s7 + $0x290] sm:$0xff]  ;;  %v2095_v57 = vld [vmem:[%s7821_s7 + $0x298] sm:$0xff] }
 0x2c7   :  { %5670 = vmatprep.subr.bf16.mxu1 %v5936_v17  ;;  %v2132_v17 = vld [vmem:[%s7821_s7 + $0x3c0] sm:$0xff] }
 0x2c8   :  { %2513 = vmatprep.subr.bf16.mxu0 %v5186_v59 }
 0x2c9   :  { %2514 = vmatpush1.bf16.msra.mxu0 %v5185_v58 }
 0x2ca   :  { %5671 = vmatpush3.bf16.msra.mxu1 %v5937_v60  ;;  %v2136_v60 = vld [vmem:[%s7821_s7 + $0x3e0] sm:$0xff] }
 0x2cb   :  { %5672 = vmatprep.subr.bf16.mxu1 %v5938_v18  ;;  %v2133_v18 = vld [vmem:[%s7821_s7 + $0x3c8] sm:$0xff] }
 0x2ce   :  { %5673 = vmatpush3.bf16.msra.mxu1 %v5939_v61  ;;  %v5191_v61 = vcombine.low %v2132_v17, %v2136_v60 }
 0x2cf   :  { %2460 = vmatprep.subr.bf16.mxu1 %v5136_v3  ;;  %v5194_v3 = vcombine.high %v2133_v18, %v2137_v4 }
 0x2d1   :  { %1950 = vmatmul.mubr.bf16.vlgmr.msra.gmra.mrb[28].mxu1 %v1546_v63  ;;  %v5192_v63 = vcombine.high %v2132_v17, %v2136_v60  ;;  %2515 = vmatprep.subr.bf16.mxu0 %v5194_v3 }
 0x2d2   :  { %2492 = vmatprep.mubr.bf16.mxu1 %v6028_v45  ;;  %2461 = vmatpush1.bf16.msra.mxu1 %v5135_v5  ;;  %v5193_v5 = vcombine.low %v2133_v18, %v2137_v4  ;;  %v5149_v18 = vcombine.low %v2087_v48, %v2091_v32  ;;  %v2102_v4 = vld [vmem:[%s7821_s7 + $0x2d0] sm:$0xff]  ;;  %v2007_v32 = vld [vmem:[%s7821_s7] sm:$0xff] }
 0x2d3   :  { %2462 = vmatprep.subr.bf16.mxu1 %v5144_v11  ;;  %v5142_v11 = vcombine.high %v2079_v9, %v2083_v1  ;;  %v2110_v1 = vld [vmem:[%s7821_s7 + $0x310] sm:$0xff] }
 0x2d4   :  { %2516 = vmatpush1.bf16.msra.mxu0 %v5193_v5  ;;  %v2107_v5 = vld [vmem:[%s7821_s7 + $0x2f8] sm:$0xff] }
 0x2d5   :  { %2583 = vmatprep.subr.bf16.mxu0 %v5142_v11  ;;  %v5166_v9 = vcombine.high %v2103_v44, %v2107_v5  ;;  %v2111_v11 = vld [vmem:[%s7821_s7 + $0x318] sm:$0xff] }
 0x2d6   :  { %2463 = vmatpush1.bf16.msra.mxu1 %v5143_v24 }
 0x2d7   :  { %2464 = vmatprep.subr.bf16.mxu1 %v5152_v26 }
 0x2da   :  { %2465 = vmatpush1.bf16.msra.mxu1 %v5151_v33 }
 0x2db   :  { %2466 = vmatprep.subr.bf16.mxu1 %v5160_v35 }
 0x2de   :  { %2467 = vmatpush1.bf16.msra.mxu1 %v5159_v43 }
 0x2df   :  { %2468 = vmatprep.subr.bf16.mxu1 %v5168_v37 }
 0x2e2   :  { %2469 = vmatpush1.bf16.msra.mxu1 %v5167_v47  ;;  %v2090_v47 = vld [vmem:[%s7821_s7 + $0x270] sm:$0xff] }
 0x2e3   :  { %2470 = vmatprep.subr.bf16.mxu1 %v5176_v50  ;;  %v5148_v54 = vcombine.high %v2086_v13, %v2090_v47  ;;  %v5147_v60 = vcombine.low %v2086_v13, %v2090_v47  ;;  %v2139_v13 = vld [vmem:[%s7821_s7 + $0x3f8] sm:$0xff] }
 0x2e6   :  { %2471 = vmatpush1.bf16.msra.mxu1 %v5175_v51 }
 0x2e7   :  { %2472 = vmatprep.subr.bf16.mxu1 %v5184_v56  ;;  %v2098_v56 = vld [vmem:[%s7821_s7 + $0x2b0] sm:$0xff] }
 0x2e8   :  { %v5155_v3 = vcombine.low %v2094_v2, %v2098_v56 }
 0x2ea   :  { %2473 = vmatpush1.bf16.msra.mxu1 %v5183_v27  ;;  %v2099_v27 = vld [vmem:[%s7821_s7 + $0x2b8] sm:$0xff] }
 0x2eb   :  { %2474 = vmatprep.subr.bf16.mxu1 %v5192_v63  ;;  %v5158_v63 = vcombine.high %v2095_v57, %v2099_v27 }
 0x2ee   :  { %2475 = vmatpush1.bf16.msra.mxu1 %v5191_v61  ;;  %v5156_v61 = vcombine.high %v2094_v2, %v2098_v56  ;;  %v2019_v2 = vld [vmem:[%s7821_s7 + $0x60] sm:$0xff]  ;;  %v2016_v56 = vld [vmem:[%s7821_s7 + $0x48] sm:$0xff] }
 0x2ef   :  { %2542 = vmatprep.subr.bf16.mxu1 %v5140_v42  ;;  %v5164_v42 = vcombine.high %v2102_v4, %v2106_v6 }
 0x37c   :  { %v1992_v16 = vpop.f32.mrb[64].mxu0 }
 0x37d   :  { %v5795_v12 = vpop.f32.mrb[65].mxu0 }
 0x37e   :  { %v1995_v14 = vpop.f32.mrb[66].mxu0  ;;  %v5163_v12 = vcombine.low %v2102_v4, %v2106_v6  ;;  %v2027_v4 = vld [vmem:[%s7821_s7 + $0xa0] sm:$0xff]  ;;  %v2024_v6 = vld [vmem:[%s7821_s7 + $0x88] sm:$0xff] }
 0x37f   :  { %v5796_v19 = vpop.f32.mrb[67].mxu0 }
 0x384   :  { %v5652_v20 = vpop.f32.mrb[24].mxu1 }
 0x385   :  { %v5653_v15 = vpop.f32.mrb[25].mxu1 }
 0x386   :  { %v5654_v23 = vadd.f32 %v5653_v15, %v5652_v20  ;;  %v5655_v24 = vpop.f32.mrb[26].mxu1  ;;  %v2118_v15 = vld [vmem:[%s7821_s7 + $0x350] sm:$0xff] }
 0x387   :  { %v5656_v25 = vpop.f32.mrb[27].mxu1 }
 0x388   :  { %v5657_v26 = vadd.f32 %v5656_v25, %v5655_v24  ;;  %v1911_v21 = vadd.f32 %v5654_v23, %v5094_v7  ;;  %v2122_v23 = vld [vmem:[%s7821_s7 + $0x370] sm:$0xff]  ;;  %v2119_v24 = vld [vmem:[%s7821_s7 + $0x358] sm:$0xff] }
 0x389   :  { %v2123_v25 = vld [vmem:[%s7821_s7 + $0x378] sm:$0xff] }
 0x38a   :  { %v1914_v35 = vadd.f32 %v5657_v26, %v5094_v7 }
 0x3a4   :  { %v5674_v28 = vpop.f32.mrb[28].mxu1 }
 0x3a5   :  { %v5675_v0 = vpop.f32.mrb[29].mxu1 }
 0x3a6   :  { %v5676_v31 = vadd.f32 %v5675_v0, %v5674_v28  ;;  %v5677_v33 = vpop.f32.mrb[30].mxu1  ;;  %v5180_v28 = vcombine.high %v2118_v15, %v2122_v23  ;;  %v5182_v0 = vcombine.high %v2119_v24, %v2123_v25 }
 0x3a7   :  { %v5678_v34 = vpop.f32.mrb[31].mxu1 }
 0x3a8   :  { %v1952_v38 = vadd.f32 %v5676_v31, %v1911_v21  ;;  %v5679_v39 = vadd.f32 %v5678_v34, %v5677_v33  ;;  %v2126_v21 = vld [vmem:[%s7821_s7 + $0x390] sm:$0xff]  ;;  %v2127_v33 = vld [vmem:[%s7821_s7 + $0x398] sm:$0xff] }
 0x3a9   :  { %v2130_v31 = vld [vmem:[%s7821_s7 + $0x3b0] sm:$0xff]  ;;  %v2131_v34 = vld [vmem:[%s7821_s7 + $0x3b8] sm:$0xff] }
 0x3aa   :  { %v1993_v46 = vadd.f32 %v1992_v16, %v1952_v38  ;;  %v1955_v40 = vadd.f32 %v5679_v39, %v1914_v35  ;;  %v2115_v16 = vld [vmem:[%s7821_s7 + $0x338] sm:$0xff]  ;;  %v5179_v35 = vcombine.low %v2118_v15, %v2122_v23  ;;  %v5181_v38 = vcombine.low %v2119_v24, %v2123_v25  ;;  %v2040_v15 = vld [vmem:[%s7821_s7 + $0x108] sm:$0xff] }
 0x3ab   :  { %v5174_v20 = vcombine.high %v2111_v11, %v2115_v16  ;;  %v5173_v7 = vcombine.low %v2111_v11, %v2115_v16  ;;  %v5188_v39 = vcombine.high %v2126_v21, %v2130_v31  ;;  %v2044_v23 = vld [vmem:[%s7821_s7 + $0x128] sm:$0xff] }
 0x3ac   :  { %v1999_v41 = vmax.f32 %v1993_v46, 0.0  ;;  %v1996_v43 = vadd.f32 %v1995_v14, %v1955_v40  ;;  %v5165_v14 = vcombine.low %v2103_v44, %v2107_v5  ;;  %v5190_v46 = vcombine.high %v2127_v33, %v2131_v34  ;;  %v2134_v40 = vld [vmem:[%s7821_s7 + $0x3d0] sm:$0xff]  ;;  %v2028_v44 = vld [vmem:[%s7821_s7 + $0xa8] sm:$0xff] }
 0x3ad   :  { %v5217_v16 = vcombine.low %v2024_v6, %v2028_v44 }
 0x3ae   :  { %v2000_v37 = vmax.f32 %v1996_v43, 0.0  ;;  %v2072_v30 = vrot.slane %v1999_v41, 1  ;;  %v3108_v49 = vrot.slane %v1999_v41, 5  ;;  %v3670_v36 = vrot.slane %v1999_v41, 6  ;;  %v2135_v43 = vld [vmem:[%s7821_s7 + $0x3d8] sm:$0xff] }
 0x3af   :  { %v5198_v48 = vcombine.high %v2135_v43, %v2139_v13 }
 0x3b0   :  { %v2074_v50 = vsel %vm2004_vm3, %v2072_v30, %v2000_v37  ;;  %v2002_v62 = vrot.slane %v2000_v37, 7  ;;  %v3110_v51 = vrot.slane %v2000_v37, 4  ;;  %v3672_v52 = vrot.slane %v2000_v37, 5 }
 0x3b1   :  { %v6849_v53 = vpack.c.bf16 %v2074_v50, %v2074_v50  ;;  %v5187_v37 = vcombine.low %v2126_v21, %v2130_v31  ;;  %v5189_v30 = vcombine.low %v2127_v33, %v2131_v34  ;;  %v2012_v50 = vld [vmem:[%s7821_s7 + $0x28] sm:$0xff]  ;;  %v5233_v34 = vcombine.low %v2040_v15, %v2044_v23 }
 0x3b2   :  { %v6864_v58 = vsel %vm2004_vm3, %v1999_v41, %v2002_v62  ;;  %v6867_v59 = vsel %vm2004_vm3, %v3108_v49, %v3110_v51  ;;  %v6870_v17 = vsel %vm2004_vm3, %v3670_v36, %v3672_v52  ;;  %v2138_v41 = vld [vmem:[%s7821_s7 + $0x3f0] sm:$0xff]  ;;  %v2011_v49 = vld [vmem:[%s7821_s7 + $0x20] sm:$0xff]  ;;  %v2008_v36 = vld [vmem:[%s7821_s7 + $0x8] sm:$0xff]  ;;  %v5197_v51 = vcombine.low %v2135_v43, %v2139_v13 }
 0x3b3   :  { %2493 = vmatmul.mubr.bf16.vlgmr.msra.gmra.mrb[32].mxu1 %v6849_v53  ;;  %2534 = vmatmul.mubr.bf16.vlgmr.msra.gmra.mrb[68].mxu0 %v6849_v53  ;;  %v5196_v47 = vcombine.high %v2134_v40, %v2138_v41  ;;  %v5195_v62 = vcombine.low %v2134_v40, %v2138_v41  ;;  %v5200_v52 = vcombine.high %v2007_v32, %v2011_v49  ;;  %v2048_v21 = vld [vmem:[%s7821_s7 + $0x148] sm:$0xff] }
 0x3b4   :  { %2543 = vmatpush1.bf16.msra.mxu1 %v5139_v8  ;;  %2584 = vmatpush1.bf16.msra.mxu0 %v5141_v10  ;;  %v5157_v8 = vcombine.low %v2095_v57, %v2099_v27  ;;  %v2114_v10 = vld [vmem:[%s7821_s7 + $0x330] sm:$0xff]  ;;  %v2020_v57 = vld [vmem:[%s7821_s7 + $0x68] sm:$0xff]  ;;  %v5199_v27 = vcombine.low %v2007_v32, %v2011_v49 }
 0x3b5   :  { %2544 = vmatprep.subr.bf16.mxu1 %v5148_v54  ;;  %2585 = vmatprep.subr.bf16.mxu0 %v5150_v55  ;;  %v5172_v19 = vcombine.high %v2110_v1, %v2114_v10  ;;  %v5171_v26 = vcombine.low %v2110_v1, %v2114_v10  ;;  %v5202_v54 = vcombine.high %v2008_v36, %v2012_v50  ;;  %v2015_v55 = vld [vmem:[%s7821_s7 + $0x40] sm:$0xff]  ;;  %v2036_v10 = vld [vmem:[%s7821_s7 + $0xe8] sm:$0xff] }
 0x3b6   :  { %2574 = vmatprep.mubr.bf16.mxu1 %v6028_v45  ;;  %2615 = vmatprep.mubr.bf16.mxu0 %v6028_v45  ;;  %v5207_v5 = vcombine.low %v2015_v55, %v2019_v2  ;;  %v2035_v1 = vld [vmem:[%s7821_s7 + $0xe0] sm:$0xff]  ;;  %v2052_v31 = vld [vmem:[%s7821_s7 + $0x168] sm:$0xff] }
 0x3b7   :  { %v2056_v40 = vld [vmem:[%s7821_s7 + $0x188] sm:$0xff]  ;;  %v5241_v13 = vcombine.low %v2048_v21, %v2052_v31 }
 0x3b8   :  { %2545 = vmatpush1.bf16.msra.mxu1 %v5147_v60  ;;  %2586 = vmatpush1.bf16.msra.mxu0 %v5149_v18  ;;  %v5201_v60 = vcombine.low %v2008_v36, %v2012_v50  ;;  %v5208_v18 = vcombine.high %v2015_v55, %v2019_v2  ;;  %v2060_v41 = vld [vmem:[%s7821_s7 + $0x1a8] sm:$0xff]  ;;  %v2010_v55 = vld [vmem:[%s7821_s7 + $0x18] sm:$0xff] }
 0x3b9   :  { %2546 = vmatprep.subr.bf16.mxu1 %v5156_v61  ;;  %2587 = vmatprep.subr.bf16.mxu0 %v5158_v63  ;;  %v5210_v61 = vcombine.high %v2016_v56, %v2020_v57  ;;  %v2023_v63 = vld [vmem:[%s7821_s7 + $0x80] sm:$0xff]  ;;  %v2064_v32 = vld [vmem:[%s7821_s7 + $0x1c8] sm:$0xff]  ;;  %v5249_v50 = vcombine.low %v2056_v40, %v2060_v41  ;;  %v2014_v2 = vld [vmem:[%s7821_s7 + $0x38] sm:$0xff] }
 0x3ba   :  { %v5215_v11 = vcombine.low %v2023_v63, %v2027_v4  ;;  %v2068_v49 = vld [vmem:[%s7821_s7 + $0x1e8] sm:$0xff] }
 0x3bc   :  { %2547 = vmatpush1.bf16.msra.mxu1 %v5155_v3  ;;  %2588 = vmatpush1.bf16.msra.mxu0 %v5157_v8  ;;  %v5209_v3 = vcombine.low %v2016_v56, %v2020_v57  ;;  %v5216_v8 = vcombine.high %v2023_v63, %v2027_v4  ;;  %v5257_v57 = vcombine.low %v2064_v32, %v2068_v49  ;;  %v2018_v63 = vld [vmem:[%s7821_s7 + $0x58] sm:$0xff] }
 0x3bd   :  { %2548 = vmatprep.subr.bf16.mxu1 %v5164_v42  ;;  %2589 = vmatprep.subr.bf16.mxu0 %v5166_v9  ;;  %v5218_v42 = vcombine.high %v2024_v6, %v2028_v44  ;;  %v2031_v9 = vld [vmem:[%s7821_s7 + $0xc0] sm:$0xff]  ;;  %v2022_v4 = vld [vmem:[%s7821_s7 + $0x78] sm:$0xff]  ;;  %v5205_v44 = vcombine.low %v2010_v55, %v2014_v2 }
 0x3be   :  { %v5223_v24 = vcombine.low %v2031_v9, %v2035_v1 }
 0x3c0   :  { %2549 = vmatpush1.bf16.msra.mxu1 %v5163_v12  ;;  %2590 = vmatpush1.bf16.msra.mxu0 %v5165_v14  ;;  %v5224_v12 = vcombine.high %v2031_v9, %v2035_v1  ;;  %v2029_v9 = vld [vmem:[%s7821_s7 + $0xb0] sm:$0xff]  ;;  %v2026_v1 = vld [vmem:[%s7821_s7 + $0x98] sm:$0xff] }
 0x3c1   :  { %2550 = vmatprep.subr.bf16.mxu1 %v5172_v19  ;;  %2591 = vmatprep.subr.bf16.mxu0 %v5174_v20  ;;  %v2039_v19 = vld [vmem:[%s7821_s7 + $0x100] sm:$0xff] }
 0x3c2   :  { %v2043_v20 = vld [vmem:[%s7821_s7 + $0x120] sm:$0xff] }
 0x3c3   :  { %v5231_v33 = vcombine.low %v2039_v19, %v2043_v20 }
 0x3c4   :  { %2551 = vmatpush1.bf16.msra.mxu1 %v5171_v26  ;;  %2592 = vmatpush1.bf16.msra.mxu0 %v5173_v7  ;;  %v5232_v26 = vcombine.high %v2039_v19, %v2043_v20  ;;  %v5234_v7 = vcombine.high %v2040_v15, %v2044_v23  ;;  %v2034_v19 = vld [vmem:[%s7821_s7 + $0xd8] sm:$0xff] }
 0x3c5   :  { %2552 = vmatprep.subr.bf16.mxu1 %v5180_v28  ;;  %2593 = vmatprep.subr.bf16.mxu0 %v5182_v0  ;;  %v2047_v28 = vld [vmem:[%s7821_s7 + $0x140] sm:$0xff]  ;;  %v2038_v20 = vld [vmem:[%s7821_s7 + $0xf8] sm:$0xff] }
 0x3c6   :  { %v2051_v0 = vld [vmem:[%s7821_s7 + $0x160] sm:$0xff] }
 0x3c7   :  { %v5239_v43 = vcombine.low %v2047_v28, %v2051_v0 }
 0x3c8   :  { %2553 = vmatpush1.bf16.msra.mxu1 %v5179_v35  ;;  %2594 = vmatpush1.bf16.msra.mxu0 %v5181_v38  ;;  %v5240_v35 = vcombine.high %v2047_v28, %v2051_v0  ;;  %v5242_v38 = vcombine.high %v2048_v21, %v2052_v31  ;;  %v2042_v28 = vld [vmem:[%s7821_s7 + $0x118] sm:$0xff]  ;;  %v5229_v31 = vcombine.low %v2034_v19, %v2038_v20 }
 0x3c9   :  { %2554 = vmatprep.subr.bf16.mxu1 %v5188_v39  ;;  %2595 = vmatprep.subr.bf16.mxu0 %v5190_v46  ;;  %v2055_v39 = vld [vmem:[%s7821_s7 + $0x180] sm:$0xff]  ;;  %v2046_v0 = vld [vmem:[%s7821_s7 + $0x138] sm:$0xff] }
 0x3ca   :  { %v2059_v46 = vld [vmem:[%s7821_s7 + $0x1a0] sm:$0xff] }
 0x3cb   :  { %v5247_v36 = vcombine.low %v2055_v39, %v2059_v46 }
 0x3cc   :  { %2555 = vmatpush1.bf16.msra.mxu1 %v5187_v37  ;;  %2596 = vmatpush1.bf16.msra.mxu0 %v5189_v30  ;;  %v5248_v37 = vcombine.high %v2055_v39, %v2059_v46  ;;  %v5250_v30 = vcombine.high %v2056_v40, %v2060_v41  ;;  %v2050_v39 = vld [vmem:[%s7821_s7 + $0x158] sm:$0xff]  ;;  %v5237_v41 = vcombine.low %v2042_v28, %v2046_v0 }
 0x3cd   :  { %2556 = vmatprep.subr.bf16.mxu1 %v5196_v47  ;;  %2597 = vmatprep.subr.bf16.mxu0 %v5198_v48  ;;  %v2063_v47 = vld [vmem:[%s7821_s7 + $0x1c0] sm:$0xff]  ;;  %v2054_v46 = vld [vmem:[%s7821_s7 + $0x178] sm:$0xff] }
 0x3ce   :  { %v2067_v48 = vld [vmem:[%s7821_s7 + $0x1e0] sm:$0xff] }
 0x3cf   :  { %v5255_v56 = vcombine.low %v2063_v47, %v2067_v48 }
 0x3d0   :  { %2557 = vmatpush1.bf16.msra.mxu1 %v5195_v62  ;;  %2598 = vmatpush1.bf16.msra.mxu0 %v5197_v51  ;;  %v5256_v62 = vcombine.high %v2063_v47, %v2067_v48  ;;  %v5258_v51 = vcombine.high %v2064_v32, %v2068_v49  ;;  %v2058_v47 = vld [vmem:[%s7821_s7 + $0x198] sm:$0xff]  ;;  %v5245_v49 = vcombine.low %v2050_v39, %v2054_v46 }
 0x3d1   :  { %2944 = vmatprep.subr.bf16.mxu1 %v5200_v52  ;;  %2985 = vmatprep.subr.bf16.mxu0 %v5202_v54  ;;  %v2009_v52 = vld [vmem:[%s7821_s7 + $0x10] sm:$0xff]  ;;  %v2062_v48 = vld [vmem:[%s7821_s7 + $0x1b8] sm:$0xff] }
 0x3d2   :  { %v2013_v54 = vld [vmem:[%s7821_s7 + $0x30] sm:$0xff] }
 0x3d3   :  { %2575 = vmatmul.mubr.bf16.vlgmr.msra.gmra.mrb[36].mxu1 %v6849_v53  ;;  %2616 = vmatmul.mubr.bf16.vlgmr.msra.gmra.mrb[72].mxu0 %v6849_v53  ;;  %v2032_v53 = vld [vmem:[%s7821_s7 + $0xc8] sm:$0xff]  ;;  %v5203_v6 = vcombine.low %v2009_v52, %v2013_v54 }
 0x3d4   :  { %2945 = vmatpush1.bf16.msra.mxu1 %v5199_v27  ;;  %2986 = vmatpush1.bf16.msra.mxu0 %v5201_v60  ;;  %v5226_v14 = vcombine.high %v2032_v53, %v2036_v10  ;;  %v5225_v25 = vcombine.low %v2032_v53, %v2036_v10  ;;  %v5204_v27 = vcombine.high %v2009_v52, %v2013_v54  ;;  %v2066_v52 = vld [vmem:[%s7821_s7 + $0x1d8] sm:$0xff] }
 0x3d5   :  { %2946 = vmatprep.subr.bf16.mxu1 %v5208_v18  ;;  %2987 = vmatprep.subr.bf16.mxu0 %v5210_v61  ;;  %v5206_v60 = vcombine.high %v2010_v55, %v2014_v2  ;;  %v2017_v18 = vld [vmem:[%s7821_s7 + $0x50] sm:$0xff]  ;;  %v5213_v10 = vcombine.low %v2018_v63, %v2022_v4  ;;  %v2070_v54 = vld [vmem:[%s7821_s7 + $0x1f8] sm:$0xff]  ;;  %v5253_v2 = vcombine.low %v2058_v47, %v2062_v48 }
 0x3d6   :  { %2976 = vmatprep.mubr.bf16.mxu1 %v6028_v45  ;;  %3017 = vmatprep.mubr.bf16.mxu0 %v6028_v45  ;;  %v2021_v61 = vld [vmem:[%s7821_s7 + $0x70] sm:$0xff] }
 0x3d7   :  { %v5211_v53 = vcombine.low %v2017_v18, %v2021_v61 }
 0x3d8   :  { %2947 = vmatpush1.bf16.msra.mxu1 %v5207_v5  ;;  %2988 = vmatpush1.bf16.msra.mxu0 %v5209_v3  ;;  %v7062_v5 = vpack.c.bf16 %v6864_v58, %v6864_v58  ;;  %v5212_v3 = vcombine.high %v2017_v18, %v2021_v61  ;;  %v2030_v58 = vld [vmem:[%s7821_s7 + $0xb8] sm:$0xff]  ;;  %v3115_v18 = vld [vmem:[%s7821_s7 + $0x408] sm:$0xff] }
 0x3d9   :  { %2948 = vmatprep.subr.bf16.mxu1 %v5216_v8  ;;  %2989 = vmatprep.subr.bf16.mxu0 %v5218_v42  ;;  %v5214_v8 = vcombine.high %v2018_v63, %v2022_v4  ;;  %v2025_v42 = vld [vmem:[%s7821_s7 + $0x90] sm:$0xff]  ;;  %v5221_v23 = vcombine.low %v2026_v1, %v2030_v58  ;;  %v3119_v61 = vld [vmem:[%s7821_s7 + $0x428] sm:$0xff]  ;;  %v5261_v4 = vcombine.low %v2066_v52, %v2070_v54 }
 0x3da   :  { %v5219_v15 = vcombine.low %v2025_v42, %v2029_v9 }
 0x3dc   :  { %2949 = vmatpush1.bf16.msra.mxu1 %v5215_v11  ;;  %2990 = vmatpush1.bf16.msra.mxu0 %v5217_v16  ;;  %v5220_v11 = vcombine.high %v2025_v42, %v2029_v9  ;;  %v5222_v16 = vcombine.high %v2026_v1, %v2030_v58  ;;  %v3123_v42 = vld [vmem:[%s7821_s7 + $0x448] sm:$0xff]  ;;  %v5265_v58 = vcombine.low %v3115_v18, %v3119_v61 }
 0x3dd   :  { %2950 = vmatprep.subr.bf16.mxu1 %v5224_v12  ;;  %2991 = vmatprep.subr.bf16.mxu0 %v5226_v14  ;;  %v2033_v12 = vld [vmem:[%s7821_s7 + $0xd0] sm:$0xff]  ;;  %v3127_v9 = vld [vmem:[%s7821_s7 + $0x468] sm:$0xff] }
 0x3de   :  { %v2037_v14 = vld [vmem:[%s7821_s7 + $0xf0] sm:$0xff] }
 0x3df   :  { %v5227_v21 = vcombine.low %v2033_v12, %v2037_v14 }
 0x3e0   :  { %2951 = vmatpush1.bf16.msra.mxu1 %v5223_v24  ;;  %2992 = vmatpush1.bf16.msra.mxu0 %v5225_v25  ;;  %v5228_v24 = vcombine.high %v2033_v12, %v2037_v14  ;;  %v5230_v25 = vcombine.high %v2034_v19, %v2038_v20  ;;  %v3131_v12 = vld [vmem:[%s7821_s7 + $0x488] sm:$0xff]  ;;  %v5273_v20 = vcombine.low %v3123_v42, %v3127_v9 }
 0x3e1   :  { %2952 = vmatprep.subr.bf16.mxu1 %v5232_v26  ;;  %2993 = vmatprep.subr.bf16.mxu0 %v5234_v7  ;;  %v2041_v26 = vld [vmem:[%s7821_s7 + $0x110] sm:$0xff]  ;;  %v3135_v14 = vld [vmem:[%s7821_s7 + $0x4a8] sm:$0xff] }
 0x3e2   :  { %v2045_v7 = vld [vmem:[%s7821_s7 + $0x130] sm:$0xff] }
 0x3e3   :  { %v5235_v40 = vcombine.low %v2041_v26, %v2045_v7 }
 0x3e4   :  { %2953 = vmatpush1.bf16.msra.mxu1 %v5231_v33  ;;  %2994 = vmatpush1.bf16.msra.mxu0 %v5233_v34  ;;  %v5236_v33 = vcombine.high %v2041_v26, %v2045_v7  ;;  %v5238_v34 = vcombine.high %v2042_v28, %v2046_v0  ;;  %v3143_v26 = vld [vmem:[%s7821_s7 + $0x4e8] sm:$0xff]  ;;  %v5281_v28 = vcombine.low %v3131_v12, %v3135_v14 }
 0x3e5   :  { %2954 = vmatprep.subr.bf16.mxu1 %v5240_v35  ;;  %2995 = vmatprep.subr.bf16.mxu0 %v5242_v38  ;;  %v2049_v35 = vld [vmem:[%s7821_s7 + $0x150] sm:$0xff] }
 0x3e6   :  { %v2053_v38 = vld [vmem:[%s7821_s7 + $0x170] sm:$0xff] }
 0x3e7   :  { %v5243_v32 = vcombine.low %v2049_v35, %v2053_v38 }
 0x3e8   :  { %2955 = vmatpush1.bf16.msra.mxu1 %v5239_v43  ;;  %2996 = vmatpush1.bf16.msra.mxu0 %v5241_v13  ;;  %v5244_v43 = vcombine.high %v2049_v35, %v2053_v38  ;;  %v5246_v13 = vcombine.high %v2050_v39, %v2054_v46  ;;  %v3151_v35 = vld [vmem:[%s7821_s7 + $0x528] sm:$0xff] }
 0x3e9   :  { %2956 = vmatprep.subr.bf16.mxu1 %v5248_v37  ;;  %2997 = vmatprep.subr.bf16.mxu0 %v5250_v30  ;;  %v2057_v37 = vld [vmem:[%s7821_s7 + $0x190] sm:$0xff] }
 0x3ea   :  { %v2061_v30 = vld [vmem:[%s7821_s7 + $0x1b0] sm:$0xff] }
 0x3eb   :  { %v5251_v55 = vcombine.low %v2057_v37, %v2061_v30 }
 0x3ec   :  { %2957 = vmatpush1.bf16.msra.mxu1 %v5247_v36  ;;  %2998 = vmatpush1.bf16.msra.mxu0 %v5249_v50  ;;  %v5252_v36 = vcombine.high %v2057_v37, %v2061_v30  ;;  %v5254_v50 = vcombine.high %v2058_v47, %v2062_v48  ;;  %v3159_v37 = vld [vmem:[%s7821_s7 + $0x568] sm:$0xff] }
 0x3ed   :  { %2958 = vmatprep.subr.bf16.mxu1 %v5256_v62  ;;  %2999 = vmatprep.subr.bf16.mxu0 %v5258_v51  ;;  %v2065_v62 = vld [vmem:[%s7821_s7 + $0x1d0] sm:$0xff] }
 0x3ee   :  { %v2069_v51 = vld [vmem:[%s7821_s7 + $0x1f0] sm:$0xff] }
 0x3ef   :  { %v5259_v63 = vcombine.low %v2065_v62, %v2069_v51 }
 0x3f0   :  { %2959 = vmatpush1.bf16.msra.mxu1 %v5255_v56  ;;  %3000 = vmatpush1.bf16.msra.mxu0 %v5257_v57  ;;  %v5260_v56 = vcombine.high %v2065_v62, %v2069_v51  ;;  %v5262_v57 = vcombine.high %v2066_v52, %v2070_v54  ;;  %v3167_v62 = vld [vmem:[%s7821_s7 + $0x5a8] sm:$0xff] }
 0x3f1   :  { %3026 = vmatprep.subr.bf16.mxu1 %v5204_v27  ;;  %3067 = vmatprep.subr.bf16.mxu0 %v5206_v60  ;;  %v3114_v27 = vld [vmem:[%s7821_s7 + $0x400] sm:$0xff] }
 0x3f2   :  { %v3118_v60 = vld [vmem:[%s7821_s7 + $0x420] sm:$0xff] }
 0x3f3   :  { %2977 = vmatmul.mubr.bf16.vlgmr.msra.gmra.mrb[40].mxu1 %v7062_v5  ;;  %3018 = vmatmul.mubr.bf16.vlgmr.msra.gmra.mrb[76].mxu0 %v7062_v5  ;;  %v5263_v1 = vcombine.low %v3114_v27, %v3118_v60 }
 0x3f4   :  { %3027 = vmatpush1.bf16.msra.mxu1 %v5203_v6  ;;  %3068 = vmatpush1.bf16.msra.mxu0 %v5205_v44  ;;  %v5264_v6 = vcombine.high %v3114_v27, %v3118_v60  ;;  %v5266_v44 = vcombine.high %v3115_v18, %v3119_v61  ;;  %v3175_v27 = vld [vmem:[%s7821_s7 + $0x5e8] sm:$0xff] }
 0x3f5   :  { %3028 = vmatprep.subr.bf16.mxu1 %v5212_v3  ;;  %3069 = vmatprep.subr.bf16.mxu0 %v5214_v8  ;;  %v3122_v3 = vld [vmem:[%s7821_s7 + $0x440] sm:$0xff] }
 0x3f6   :  { %3058 = vmatprep.mubr.bf16.mxu1 %v6028_v45  ;;  %3099 = vmatprep.mubr.bf16.mxu0 %v6028_v45  ;;  %v3126_v8 = vld [vmem:[%s7821_s7 + $0x460] sm:$0xff] }
 0x3f7   :  { %v5271_v19 = vcombine.low %v3122_v3, %v3126_v8 }
 0x3f8   :  { %3029 = vmatpush1.bf16.msra.mxu1 %v5211_v53  ;;  %3070 = vmatpush1.bf16.msra.mxu0 %v5213_v10  ;;  %v5272_v53 = vcombine.high %v3122_v3, %v3126_v8  ;;  %v5274_v10 = vcombine.high %v3123_v42, %v3127_v9  ;;  %v3121_v3 = vld [vmem:[%s7821_s7 + $0x438] sm:$0xff] }
 0x3f9   :  { %3030 = vmatprep.subr.bf16.mxu1 %v5220_v11  ;;  %3071 = vmatprep.subr.bf16.mxu0 %v5222_v16  ;;  %v3130_v11 = vld [vmem:[%s7821_s7 + $0x480] sm:$0xff] }
 0x3fa   :  { %v3134_v16 = vld [vmem:[%s7821_s7 + $0x4a0] sm:$0xff] }
 0x3fb   :  { %v5279_v7 = vcombine.low %v3130_v11, %v3134_v16 }
 0x3fc   :  { %3031 = vmatpush1.bf16.msra.mxu1 %v5219_v15  ;;  %3072 = vmatpush1.bf16.msra.mxu0 %v5221_v23  ;;  %v5280_v15 = vcombine.high %v3130_v11, %v3134_v16  ;;  %v5282_v23 = vcombine.high %v3131_v12, %v3135_v14  ;;  %v3129_v11 = vld [vmem:[%s7821_s7 + $0x478] sm:$0xff]  ;;  %v7266_v14 = vpack.c.bf16 %v6867_v59, %v6867_v59 }
 0x3fd   :  { %3032 = vmatprep.subr.bf16.mxu1 %v5228_v24  ;;  %3073 = vmatprep.subr.bf16.mxu0 %v5230_v25  ;;  %v3138_v24 = vld [vmem:[%s7821_s7 + $0x4c0] sm:$0xff]  ;;  %v3137_v59 = vld [vmem:[%s7821_s7 + $0x4b8] sm:$0xff] }
 0x3fe   :  { %v3142_v25 = vld [vmem:[%s7821_s7 + $0x4e0] sm:$0xff] }
 0x3ff   :  { %v5288_v0 = vcombine.high %v3138_v24, %v3142_v25  ;;  %v5287_v38 = vcombine.low %v3138_v24, %v3142_v25  ;;  %v3133_v24 = vld [vmem:[%s7821_s7 + $0x498] sm:$0xff] }
 0x400   :  { %3033 = vmatpush1.bf16.msra.mxu1 %v5227_v21  ;;  %3074 = vmatpush1.bf16.msra.mxu0 %v5229_v31  ;;  %v3146_v31 = vld [vmem:[%s7821_s7 + $0x500] sm:$0xff] }
 0x401   :  { %3034 = vmatprep.subr.bf16.mxu1 %v5236_v33  ;;  %3075 = vmatprep.subr.bf16.mxu0 %v5238_v34  ;;  %v3150_v33 = vld [vmem:[%s7821_s7 + $0x520] sm:$0xff]  ;;  %v3147_v34 = vld [vmem:[%s7821_s7 + $0x508] sm:$0xff] }
 0x402   :  { %v5296_v46 = vcombine.high %v3146_v31, %v3150_v33  ;;  %v5295_v30 = vcombine.low %v3146_v31, %v3150_v33  ;;  %v5297_v47 = vcombine.low %v3147_v34, %v3151_v35  ;;  %v3145_v31 = vld [vmem:[%s7821_s7 + $0x4f8] sm:$0xff] }
 0x404   :  { %3035 = vmatpush1.bf16.msra.mxu1 %v5235_v40  ;;  %3076 = vmatpush1.bf16.msra.mxu0 %v5237_v41  ;;  %v5298_v40 = vcombine.high %v3147_v34, %v3151_v35  ;;  %v3154_v41 = vld [vmem:[%s7821_s7 + $0x540] sm:$0xff]  ;;  %v5285_v34 = vcombine.low %v3133_v24, %v3137_v59 }
 0x405   :  { %3036 = vmatprep.subr.bf16.mxu1 %v5244_v43  ;;  %3077 = vmatprep.subr.bf16.mxu0 %v5246_v13  ;;  %v3158_v43 = vld [vmem:[%s7821_s7 + $0x560] sm:$0xff]  ;;  %v3155_v13 = vld [vmem:[%s7821_s7 + $0x548] sm:$0xff] }
 0x406   :  { %v5304_v48 = vcombine.high %v3154_v41, %v3158_v43  ;;  %v5303_v51 = vcombine.low %v3154_v41, %v3158_v43  ;;  %v5305_v52 = vcombine.low %v3155_v13, %v3159_v37  ;;  %v3153_v41 = vld [vmem:[%s7821_s7 + $0x538] sm:$0xff] }
 0x408   :  { %3037 = vmatpush1.bf16.msra.mxu1 %v5243_v32  ;;  %3078 = vmatpush1.bf16.msra.mxu0 %v5245_v49  ;;  %v5306_v32 = vcombine.high %v3155_v13, %v3159_v37  ;;  %v3162_v49 = vld [vmem:[%s7821_s7 + $0x580] sm:$0xff] }
 0x409   :  { %3038 = vmatprep.subr.bf16.mxu1 %v5252_v36  ;;  %3079 = vmatprep.subr.bf16.mxu0 %v5254_v50  ;;  %v3166_v36 = vld [vmem:[%s7821_s7 + $0x5a0] sm:$0xff]  ;;  %v3163_v50 = vld [vmem:[%s7821_s7 + $0x588] sm:$0xff] }
 0x40a   :  { %v5312_v54 = vcombine.high %v3162_v49, %v3166_v36  ;;  %v5311_v60 = vcombine.low %v3162_v49, %v3166_v36  ;;  %v5313_v18 = vcombine.low %v3163_v50, %v3167_v62  ;;  %v3161_v49 = vld [vmem:[%s7821_s7 + $0x578] sm:$0xff] }
 0x40c   :  { %3039 = vmatpush1.bf16.msra.mxu1 %v5251_v55  ;;  %3080 = vmatpush1.bf16.msra.mxu0 %v5253_v2  ;;  %v5314_v55 = vcombine.high %v3163_v50, %v3167_v62  ;;  %v3170_v2 = vld [vmem:[%s7821_s7 + $0x5c0] sm:$0xff] }
 0x40d   :  { %3040 = vmatprep.subr.bf16.mxu1 %v5260_v56  ;;  %3081 = vmatprep.subr.bf16.mxu0 %v5262_v57  ;;  %v3174_v56 = vld [vmem:[%s7821_s7 + $0x5e0] sm:$0xff]  ;;  %v3171_v57 = vld [vmem:[%s7821_s7 + $0x5c8] sm:$0xff] }
 0x40e   :  { %v5320_v61 = vcombine.high %v3170_v2, %v3174_v56  ;;  %v5319_v8 = vcombine.low %v3170_v2, %v3174_v56  ;;  %v5321_v42 = vcombine.low %v3171_v57, %v3175_v27  ;;  %v3169_v2 = vld [vmem:[%s7821_s7 + $0x5b8] sm:$0xff] }
 0x410   :  { %3041 = vmatpush1.bf16.msra.mxu1 %v5259_v63  ;;  %3082 = vmatpush1.bf16.msra.mxu0 %v5261_v4  ;;  %v5322_v63 = vcombine.high %v3171_v57, %v3175_v27  ;;  %v3116_v4 = vld [vmem:[%s7821_s7 + $0x410] sm:$0xff] }
 0x411   :  { %3498 = vmatprep.subr.bf16.mxu1 %v5264_v6  ;;  %3539 = vmatprep.subr.bf16.mxu0 %v5266_v44  ;;  %v3120_v6 = vld [vmem:[%s7821_s7 + $0x430] sm:$0xff]  ;;  %v3117_v44 = vld [vmem:[%s7821_s7 + $0x418] sm:$0xff] }
 0x412   :  { %v5268_v9 = vcombine.high %v3116_v4, %v3120_v6  ;;  %v5267_v16 = vcombine.low %v3116_v4, %v3120_v6  ;;  %v5269_v12 = vcombine.low %v3117_v44, %v3121_v3  ;;  %v3177_v4 = vld [vmem:[%s7821_s7 + $0x5f8] sm:$0xff] }
 0x413   :  { %3059 = vmatmul.mubr.bf16.vlgmr.msra.gmra.mrb[44].mxu1 %v7062_v5  ;;  %3100 = vmatmul.mubr.bf16.vlgmr.msra.gmra.mrb[80].mxu0 %v7062_v5  ;;  %v3139_v5 = vld [vmem:[%s7821_s7 + $0x4c8] sm:$0xff] }
 0x414   :  { %3499 = vmatpush1.bf16.msra.mxu1 %v5263_v1  ;;  %3540 = vmatpush1.bf16.msra.mxu0 %v5265_v58  ;;  %v5290_v21 = vcombine.high %v3139_v5, %v3143_v26  ;;  %v5289_v39 = vcombine.low %v3139_v5, %v3143_v26  ;;  %v5270_v1 = vcombine.high %v3117_v44, %v3121_v3  ;;  %v3124_v58 = vld [vmem:[%s7821_s7 + $0x450] sm:$0xff] }
 0x415   :  { %3500 = vmatprep.subr.bf16.mxu1 %v5272_v53  ;;  %3541 = vmatprep.subr.bf16.mxu0 %v5274_v10  ;;  %v3128_v53 = vld [vmem:[%s7821_s7 + $0x470] sm:$0xff]  ;;  %v3125_v10 = vld [vmem:[%s7821_s7 + $0x458] sm:$0xff] }
 0x416   :  { %3530 = vmatprep.mubr.bf16.mxu1 %v6028_v45  ;;  %3571 = vmatprep.mubr.bf16.mxu0 %v6028_v45  ;;  %v5275_v25 = vcombine.low %v3124_v58, %v3128_v53  ;;  %v5277_v5 = vcombine.low %v3125_v10, %v3129_v11 }
 0x418   :  { %3501 = vmatpush1.bf16.msra.mxu1 %v5271_v19  ;;  %3542 = vmatpush1.bf16.msra.mxu0 %v5273_v20  ;;  %v5276_v19 = vcombine.high %v3124_v58, %v3128_v53  ;;  %v5278_v20 = vcombine.high %v3125_v10, %v3129_v11  ;;  %v3681_v58 = vld [vmem:[%s7821_s7 + $0x628] sm:$0xff] }
 0x419   :  { %3502 = vmatprep.subr.bf16.mxu1 %v5280_v15  ;;  %3543 = vmatprep.subr.bf16.mxu0 %v5282_v23  ;;  %v3132_v15 = vld [vmem:[%s7821_s7 + $0x490] sm:$0xff] }
 0x41a   :  { %v3136_v23 = vld [vmem:[%s7821_s7 + $0x4b0] sm:$0xff] }
 0x41b   :  { %v5284_v26 = vcombine.high %v3132_v15, %v3136_v23  ;;  %v5283_v33 = vcombine.low %v3132_v15, %v3136_v23  ;;  %v3689_v15 = vld [vmem:[%s7821_s7 + $0x668] sm:$0xff] }
 0x41c   :  { %3503 = vmatpush1.bf16.msra.mxu1 %v5279_v7  ;;  %3544 = vmatpush1.bf16.msra.mxu0 %v5281_v28  ;;  %v5286_v7 = vcombine.high %v3133_v24, %v3137_v59  ;;  %v3140_v28 = vld [vmem:[%s7821_s7 + $0x4d0] sm:$0xff] }
 0x41d   :  { %3504 = vmatprep.subr.bf16.mxu1 %v5288_v0  ;;  %3545 = vmatprep.subr.bf16.mxu0 %v5290_v21  ;;  %v3144_v0 = vld [vmem:[%s7821_s7 + $0x4f0] sm:$0xff]  ;;  %v3141_v21 = vld [vmem:[%s7821_s7 + $0x4d8] sm:$0xff] }
 0x41e   :  { %v5292_v35 = vcombine.high %v3140_v28, %v3144_v0  ;;  %v5291_v43 = vcombine.low %v3140_v28, %v3144_v0  ;;  %v5293_v13 = vcombine.low %v3141_v21, %v3145_v31  ;;  %v3697_v28 = vld [vmem:[%s7821_s7 + $0x6a8] sm:$0xff] }
 0x420   :  { %3505 = vmatpush1.bf16.msra.mxu1 %v5287_v38  ;;  %3546 = vmatpush1.bf16.msra.mxu0 %v5289_v39  ;;  %v5294_v38 = vcombine.high %v3141_v21, %v3145_v31  ;;  %v3148_v39 = vld [vmem:[%s7821_s7 + $0x510] sm:$0xff] }
 0x421   :  { %3506 = vmatprep.subr.bf16.mxu1 %v5296_v46  ;;  %3547 = vmatprep.subr.bf16.mxu0 %v5298_v40  ;;  %v3152_v46 = vld [vmem:[%s7821_s7 + $0x530] sm:$0xff]  ;;  %v3149_v40 = vld [vmem:[%s7821_s7 + $0x518] sm:$0xff] }
 0x422   :  { %v5300_v37 = vcombine.high %v3148_v39, %v3152_v46  ;;  %v5299_v36 = vcombine.low %v3148_v39, %v3152_v46  ;;  %v5301_v50 = vcombine.low %v3149_v40, %v3153_v41 }
 0x424   :  { %3507 = vmatpush1.bf16.msra.mxu1 %v5295_v30  ;;  %3548 = vmatpush1.bf16.msra.mxu0 %v5297_v47  ;;  %v5302_v30 = vcombine.high %v3149_v40, %v3153_v41  ;;  %v3156_v47 = vld [vmem:[%s7821_s7 + $0x550] sm:$0xff] }
 0x425   :  { %3508 = vmatprep.subr.bf16.mxu1 %v5304_v48  ;;  %3549 = vmatprep.subr.bf16.mxu0 %v5306_v32  ;;  %v3160_v48 = vld [vmem:[%s7821_s7 + $0x570] sm:$0xff]  ;;  %v3157_v32 = vld [vmem:[%s7821_s7 + $0x558] sm:$0xff] }
 0x426   :  { %v5308_v62 = vcombine.high %v3156_v47, %v3160_v48  ;;  %v5307_v56 = vcombine.low %v3156_v47, %v3160_v48  ;;  %v5309_v57 = vcombine.low %v3157_v32, %v3161_v49 }
 0x428   :  { %3509 = vmatpush1.bf16.msra.mxu1 %v5303_v51  ;;  %3550 = vmatpush1.bf16.msra.mxu0 %v5305_v52  ;;  %v5310_v51 = vcombine.high %v3157_v32, %v3161_v49  ;;  %v3164_v52 = vld [vmem:[%s7821_s7 + $0x590] sm:$0xff] }
 0x429   :  { %3510 = vmatprep.subr.bf16.mxu1 %v5312_v54  ;;  %3551 = vmatprep.subr.bf16.mxu0 %v5314_v55  ;;  %v3168_v54 = vld [vmem:[%s7821_s7 + $0x5b0] sm:$0xff]  ;;  %v3165_v55 = vld [vmem:[%s7821_s7 + $0x598] sm:$0xff] }
 0x42a   :  { %v5316_v27 = vcombine.high %v3164_v52, %v3168_v54  ;;  %v5315_v6 = vcombine.low %v3164_v52, %v3168_v54  ;;  %v5317_v44 = vcombine.low %v3165_v55, %v3169_v2 }
 0x42c   :  { %3511 = vmatpush1.bf16.msra.mxu1 %v5311_v60  ;;  %3552 = vmatpush1.bf16.msra.mxu0 %v5313_v18  ;;  %v5318_v60 = vcombine.high %v3165_v55, %v3169_v2  ;;  %v3172_v18 = vld [vmem:[%s7821_s7 + $0x5d0] sm:$0xff] }
 0x42d   :  { %3512 = vmatprep.subr.bf16.mxu1 %v5320_v61  ;;  %3553 = vmatprep.subr.bf16.mxu0 %v5322_v63  ;;  %v3176_v61 = vld [vmem:[%s7821_s7 + $0x5f0] sm:$0xff]  ;;  %v3173_v63 = vld [vmem:[%s7821_s7 + $0x5d8] sm:$0xff] }
 0x42e   :  { %v5324_v3 = vcombine.high %v3172_v18, %v3176_v61  ;;  %v5323_v53 = vcombine.low %v3172_v18, %v3176_v61  ;;  %v5325_v10 = vcombine.low %v3173_v63, %v3177_v4 }
 0x430   :  { %3513 = vmatpush1.bf16.msra.mxu1 %v5319_v8  ;;  %3554 = vmatpush1.bf16.msra.mxu0 %v5321_v42  ;;  %v5326_v8 = vcombine.high %v3173_v63, %v3177_v4  ;;  %v3676_v42 = vld [vmem:[%s7821_s7 + $0x600] sm:$0xff] }
 0x431   :  { %3580 = vmatprep.subr.bf16.mxu1 %v5268_v9  ;;  %3621 = vmatprep.subr.bf16.mxu0 %v5270_v1  ;;  %v3680_v9 = vld [vmem:[%s7821_s7 + $0x620] sm:$0xff]  ;;  %v3677_v1 = vld [vmem:[%s7821_s7 + $0x608] sm:$0xff] }
 0x432   :  { %v5328_v11 = vcombine.high %v3676_v42, %v3680_v9  ;;  %v5327_v23 = vcombine.low %v3676_v42, %v3680_v9  ;;  %v5329_v24 = vcombine.low %v3677_v1, %v3681_v58 }
 0x433   :  { %3531 = vmatmul.mubr.bf16.vlgmr.msra.gmra.mrb[48].mxu1 %v7266_v14  ;;  %3572 = vmatmul.mubr.bf16.vlgmr.msra.gmra.mrb[84].mxu0 %v7266_v14 }
 0x434   :  { %3581 = vmatpush1.bf16.msra.mxu1 %v5267_v16  ;;  %3622 = vmatpush1.bf16.msra.mxu0 %v5269_v12  ;;  %v5330_v16 = vcombine.high %v3677_v1, %v3681_v58  ;;  %v3684_v12 = vld [vmem:[%s7821_s7 + $0x640] sm:$0xff] }
 0x435   :  { %3582 = vmatprep.subr.bf16.mxu1 %v5276_v19  ;;  %3623 = vmatprep.subr.bf16.mxu0 %v5278_v20  ;;  %v3688_v19 = vld [vmem:[%s7821_s7 + $0x660] sm:$0xff]  ;;  %v3685_v20 = vld [vmem:[%s7821_s7 + $0x648] sm:$0xff] }
 0x436   :  { %3612 = vmatprep.mubr.bf16.mxu1 %v6028_v45  ;;  %3653 = vmatprep.mubr.bf16.mxu0 %v6028_v45  ;;  %v5336_v59 = vcombine.high %v3684_v12, %v3688_v19  ;;  %v5335_v0 = vcombine.low %v3684_v12, %v3688_v19  ;;  %v5337_v21 = vcombine.low %v3685_v20, %v3689_v15 }
 0x438   :  { %3583 = vmatpush1.bf16.msra.mxu1 %v5275_v25  ;;  %3624 = vmatpush1.bf16.msra.mxu0 %v5277_v5  ;;  %v5338_v25 = vcombine.high %v3685_v20, %v3689_v15  ;;  %v3692_v5 = vld [vmem:[%s7821_s7 + $0x680] sm:$0xff] }
 0x439   :  { %3584 = vmatprep.subr.bf16.mxu1 %v5284_v26  ;;  %3625 = vmatprep.subr.bf16.mxu0 %v5286_v7  ;;  %v3696_v26 = vld [vmem:[%s7821_s7 + $0x6a0] sm:$0xff]  ;;  %v3693_v7 = vld [vmem:[%s7821_s7 + $0x688] sm:$0xff] }
 0x43a   :  { %v5344_v31 = vcombine.high %v3692_v5, %v3696_v26  ;;  %v5343_v39 = vcombine.low %v3692_v5, %v3696_v26  ;;  %v5345_v46 = vcombine.low %v3693_v7, %v3697_v28 }
 0x43c   :  { %3585 = vmatpush1.bf16.msra.mxu1 %v5283_v33  ;;  %3626 = vmatpush1.bf16.msra.mxu0 %v5285_v34  ;;  %v5346_v33 = vcombine.high %v3693_v7, %v3697_v28  ;;  %v3700_v34 = vld [vmem:[%s7821_s7 + $0x6c0] sm:$0xff]  ;;  %v7470_v7 = vpack.c.bf16 %v6870_v17, %v6870_v17  ;;  %v3699_v17 = vld [vmem:[%s7821_s7 + $0x6b8] sm:$0xff] }
 0x43d   :  { %3586 = vmatprep.subr.bf16.mxu1 %v5292_v35  ;;  %3627 = vmatprep.subr.bf16.mxu0 %v5294_v38  ;;  %v3704_v35 = vld [vmem:[%s7821_s7 + $0x6e0] sm:$0xff]  ;;  %v3705_v38 = vld [vmem:[%s7821_s7 + $0x6e8] sm:$0xff] }
 0x43e   :  { %v5352_v40 = vcombine.high %v3700_v34, %v3704_v35  ;;  %v5351_v47 = vcombine.low %v3700_v34, %v3704_v35 }
 0x440   :  { %3587 = vmatpush1.bf16.msra.mxu1 %v5291_v43  ;;  %3628 = vmatpush1.bf16.msra.mxu0 %v5293_v13  ;;  %v3708_v43 = vld [vmem:[%s7821_s7 + $0x700] sm:$0xff] }
 0x441   :  { %3588 = vmatprep.subr.bf16.mxu1 %v5300_v37  ;;  %3629 = vmatprep.subr.bf16.mxu0 %v5302_v30  ;;  %v3712_v13 = vld [vmem:[%s7821_s7 + $0x720] sm:$0xff]  ;;  %v3709_v37 = vld [vmem:[%s7821_s7 + $0x708] sm:$0xff] }
 0x442   :  { %v3713_v30 = vld [vmem:[%s7821_s7 + $0x728] sm:$0xff]  ;;  %v5360_v32 = vcombine.high %v3708_v43, %v3712_v13  ;;  %v5359_v52 = vcombine.low %v3708_v43, %v3712_v13 }
 0x443   :  { %v5362_v49 = vcombine.high %v3709_v37, %v3713_v30  ;;  %v5361_v54 = vcombine.low %v3709_v37, %v3713_v30 }
 0x444   :  { %3589 = vmatpush1.bf16.msra.mxu1 %v5299_v36  ;;  %3630 = vmatpush1.bf16.msra.mxu0 %v5301_v50  ;;  %v3716_v36 = vld [vmem:[%s7821_s7 + $0x740] sm:$0xff] }
 0x445   :  { %3590 = vmatprep.subr.bf16.mxu1 %v5308_v62  ;;  %3631 = vmatprep.subr.bf16.mxu0 %v5310_v51  ;;  %v3720_v50 = vld [vmem:[%s7821_s7 + $0x760] sm:$0xff]  ;;  %v3717_v62 = vld [vmem:[%s7821_s7 + $0x748] sm:$0xff] }
 0x446   :  { %v3721_v51 = vld [vmem:[%s7821_s7 + $0x768] sm:$0xff]  ;;  %v5368_v55 = vcombine.high %v3716_v36, %v3720_v50  ;;  %v5367_v18 = vcombine.low %v3716_v36, %v3720_v50 }
 0x447   :  { %v5370_v2 = vcombine.high %v3717_v62, %v3721_v51  ;;  %v5369_v61 = vcombine.low %v3717_v62, %v3721_v51  ;;  %v3718_v51 = vld [vmem:[%s7821_s7 + $0x750] sm:$0xff] }
 0x448   :  { %3591 = vmatpush1.bf16.msra.mxu1 %v5307_v56  ;;  %3632 = vmatpush1.bf16.msra.mxu0 %v5309_v57  ;;  %v3724_v56 = vld [vmem:[%s7821_s7 + $0x780] sm:$0xff] }
 0x449   :  { %3592 = vmatprep.subr.bf16.mxu1 %v5316_v27  ;;  %3633 = vmatprep.subr.bf16.mxu0 %v5318_v60  ;;  %v3728_v57 = vld [vmem:[%s7821_s7 + $0x7a0] sm:$0xff]  ;;  %v3725_v27 = vld [vmem:[%s7821_s7 + $0x788] sm:$0xff] }
 0x44a   :  { %v3729_v60 = vld [vmem:[%s7821_s7 + $0x7a8] sm:$0xff]  ;;  %v5376_v63 = vcombine.high %v3724_v56, %v3728_v57  ;;  %v5375_v42 = vcombine.low %v3724_v56, %v3728_v57 }
 0x44b   :  { %v5378_v4 = vcombine.high %v3725_v27, %v3729_v60  ;;  %v5377_v9 = vcombine.low %v3725_v27, %v3729_v60  ;;  %v3726_v60 = vld [vmem:[%s7821_s7 + $0x790] sm:$0xff] }
 0x44c   :  { %3593 = vmatpush1.bf16.msra.mxu1 %v5315_v6  ;;  %3634 = vmatpush1.bf16.msra.mxu0 %v5317_v44  ;;  %v3732_v6 = vld [vmem:[%s7821_s7 + $0x7c0] sm:$0xff] }
 0x44d   :  { %3594 = vmatprep.subr.bf16.mxu1 %v5324_v3  ;;  %3635 = vmatprep.subr.bf16.mxu0 %v5326_v8  ;;  %v3736_v44 = vld [vmem:[%s7821_s7 + $0x7e0] sm:$0xff]  ;;  %v3733_v3 = vld [vmem:[%s7821_s7 + $0x7c8] sm:$0xff] }
 0x44e   :  { %v3737_v8 = vld [vmem:[%s7821_s7 + $0x7e8] sm:$0xff]  ;;  %v5384_v1 = vcombine.high %v3732_v6, %v3736_v44  ;;  %v5383_v12 = vcombine.low %v3732_v6, %v3736_v44 }
 0x44f   :  { %v5386_v58 = vcombine.high %v3733_v3, %v3737_v8  ;;  %v5385_v19 = vcombine.low %v3733_v3, %v3737_v8  ;;  %v3734_v8 = vld [vmem:[%s7821_s7 + $0x7d0] sm:$0xff] }
 0x450   :  { %3595 = vmatpush1.bf16.msra.mxu1 %v5323_v53  ;;  %3636 = vmatpush1.bf16.msra.mxu0 %v5325_v10  ;;  %v3678_v53 = vld [vmem:[%s7821_s7 + $0x610] sm:$0xff] }
 0x451   :  { %4060 = vmatprep.subr.bf16.mxu1 %v5328_v11  ;;  %4101 = vmatprep.subr.bf16.mxu0 %v5330_v16  ;;  %v3682_v10 = vld [vmem:[%s7821_s7 + $0x630] sm:$0xff]  ;;  %v3679_v11 = vld [vmem:[%s7821_s7 + $0x618] sm:$0xff] }
 0x452   :  { %v3683_v16 = vld [vmem:[%s7821_s7 + $0x638] sm:$0xff]  ;;  %v5332_v20 = vcombine.high %v3678_v53, %v3682_v10  ;;  %v5331_v5 = vcombine.low %v3678_v53, %v3682_v10 }
 0x453   :  { %3613 = vmatmul.mubr.bf16.vlgmr.msra.gmra.mrb[52].mxu1 %v7266_v14  ;;  %3654 = vmatmul.mubr.bf16.vlgmr.msra.gmra.mrb[88].mxu0 %v7266_v14  ;;  %v3701_v14 = vld [vmem:[%s7821_s7 + $0x6c8] sm:$0xff]  ;;  %v5334_v15 = vcombine.high %v3679_v11, %v3683_v16  ;;  %v5333_v26 = vcombine.low %v3679_v11, %v3683_v16  ;;  %v3739_v53 = vld [vmem:[%s7821_s7 + $0x7f8] sm:$0xff] }
 0x454   :  { %4061 = vmatpush1.bf16.msra.mxu1 %v5327_v23  ;;  %4102 = vmatpush1.bf16.msra.mxu0 %v5329_v24  ;;  %v5354_v41 = vcombine.high %v3701_v14, %v3705_v38  ;;  %v5353_v48 = vcombine.low %v3701_v14, %v3705_v38  ;;  %v3686_v23 = vld [vmem:[%s7821_s7 + $0x650] sm:$0xff] }
 0x455   :  { %4062 = vmatprep.subr.bf16.mxu1 %v5336_v59  ;;  %4103 = vmatprep.subr.bf16.mxu0 %v5338_v25  ;;  %v3690_v24 = vld [vmem:[%s7821_s7 + $0x670] sm:$0xff]  ;;  %v3687_v59 = vld [vmem:[%s7821_s7 + $0x658] sm:$0xff] }
 0x456   :  { %4092 = vmatprep.mubr.bf16.mxu1 %v6028_v45  ;;  %4133 = vmatprep.mubr.bf16.mxu0 %v6028_v45  ;;  %v3691_v25 = vld [vmem:[%s7821_s7 + $0x678] sm:$0xff]  ;;  %v5340_v28 = vcombine.high %v3686_v23, %v3690_v24  ;;  %v5339_v34 = vcombine.low %v3686_v23, %v3690_v24 }
 0x457   :  { %v5341_v35 = vcombine.low %v3687_v59, %v3691_v25 }
 0x458   :  { %4063 = vmatpush1.bf16.msra.mxu1 %v5335_v0  ;;  %4104 = vmatpush1.bf16.msra.mxu0 %v5337_v21  ;;  %v5342_v0 = vcombine.high %v3687_v59, %v3691_v25  ;;  %v3694_v21 = vld [vmem:[%s7821_s7 + $0x690] sm:$0xff] }
 0x459   :  { %4064 = vmatprep.subr.bf16.mxu1 %v5344_v31  ;;  %4105 = vmatprep.subr.bf16.mxu0 %v5346_v33  ;;  %v3698_v31 = vld [vmem:[%s7821_s7 + $0x6b0] sm:$0xff]  ;;  %v3695_v33 = vld [vmem:[%s7821_s7 + $0x698] sm:$0xff] }
 0x45a   :  { %v5348_v14 = vcombine.high %v3694_v21, %v3698_v31  ;;  %v5350_v38 = vcombine.high %v3695_v33, %v3699_v17  ;;  %v5347_v43 = vcombine.low %v3694_v21, %v3698_v31  ;;  %v5349_v13 = vcombine.low %v3695_v33, %v3699_v17 }
 0x45c   :  { %4065 = vmatpush1.bf16.msra.mxu1 %v5343_v39  ;;  %4106 = vmatpush1.bf16.msra.mxu0 %v5345_v46  ;;  %v3702_v39 = vld [vmem:[%s7821_s7 + $0x6d0] sm:$0xff] }
 0x45d   :  { %4066 = vmatprep.subr.bf16.mxu1 %v5352_v40  ;;  %4107 = vmatprep.subr.bf16.mxu0 %v5354_v41  ;;  %v3706_v46 = vld [vmem:[%s7821_s7 + $0x6f0] sm:$0xff]  ;;  %v3703_v40 = vld [vmem:[%s7821_s7 + $0x6d8] sm:$0xff] }
 0x45e   :  { %v3707_v41 = vld [vmem:[%s7821_s7 + $0x6f8] sm:$0xff]  ;;  %v5356_v37 = vcombine.high %v3702_v39, %v3706_v46 }
 0x45f   :  { %v5358_v30 = vcombine.high %v3703_v40, %v3707_v41  ;;  %v5357_v36 = vcombine.low %v3703_v40, %v3707_v41  ;;  %v5946_v40 = vld [vmem:[%s7823_s9 + $0x8] sm:$0xff]  }
 0x460   :  { %4067 = vmatpush1.bf16.msra.mxu1 %v5351_v47  ;;  %4108 = vmatpush1.bf16.msra.mxu0 %v5353_v48  ;;  %v3710_v47 = vld [vmem:[%s7821_s7 + $0x710] sm:$0xff]  ;;  %v5947_v41 = vld [vmem:[%s7823_s9 + $0x88] sm:$0xff]  }
 0x461   :  { %4068 = vmatprep.subr.bf16.mxu1 %v5360_v32  ;;  %4109 = vmatprep.subr.bf16.mxu0 %v5362_v49  ;;  %v3714_v48 = vld [vmem:[%s7821_s7 + $0x730] sm:$0xff]  ;;  %v3715_v32 = vld [vmem:[%s7821_s7 + $0x738] sm:$0xff]  ;;  %v5355_v49 = vcombine.low %v3702_v39, %v3706_v46  ;;  %v5944_v39 = vld [vmem:[%s7823_s9 + $0x48] sm:$0xff]  }
 0x462   :  { %v5364_v50 = vcombine.high %v3710_v47, %v3714_v48  ;;  %v5945_v46 = vld [vmem:[%s7823_s9 + $0xc8] sm:$0xff]  }
 0x464   :  { %4069 = vmatpush1.bf16.msra.mxu1 %v5359_v52  ;;  %4110 = vmatpush1.bf16.msra.mxu0 %v5361_v54  ;;  %v3722_v52 = vld [vmem:[%s7821_s7 + $0x770] sm:$0xff]  ;;  %v3719_v54 = vld [vmem:[%s7821_s7 + $0x758] sm:$0xff] }
 0x465   :  { %4070 = vmatprep.subr.bf16.mxu1 %v5368_v55  ;;  %4111 = vmatprep.subr.bf16.mxu0 %v5370_v2  ;;  %v3723_v55 = vld [vmem:[%s7821_s7 + $0x778] sm:$0xff]  ;;  %v5363_v2 = vcombine.low %v3710_v47, %v3714_v48  ;;  %v5372_v57 = vcombine.high %v3718_v51, %v3722_v52 }
 0x466   :  { %v5374_v27 = vcombine.high %v3719_v54, %v3723_v55  ;;  %v5373_v6 = vcombine.low %v3719_v54, %v3723_v55  ;;  %v5952_v47 = vld [vmem:[%s7823_s9 + $0x58] sm:$0xff]   ;;  %v5962_v54 = vld [vmem:[%s7823_s9 + $0x28] sm:$0xff]  }
 0x467   :  { %v5953_v48 = vld [vmem:[%s7823_s9 + $0xd8] sm:$0xff]   ;;  %v5963_v55 = vld [vmem:[%s7823_s9 + $0xa8] sm:$0xff]  }
 0x468   :  { %4071 = vmatpush1.bf16.msra.mxu1 %v5367_v18  ;;  %4112 = vmatpush1.bf16.msra.mxu0 %v5369_v61  ;;  %v3730_v18 = vld [vmem:[%s7821_s7 + $0x7b0] sm:$0xff]  ;;  %v3727_v61 = vld [vmem:[%s7821_s7 + $0x798] sm:$0xff] }
 0x469   :  { %4072 = vmatprep.subr.bf16.mxu1 %v5376_v63  ;;  %4113 = vmatprep.subr.bf16.mxu0 %v5378_v4  ;;  %v3731_v63 = vld [vmem:[%s7821_s7 + $0x7b8] sm:$0xff]  ;;  %v5371_v4 = vcombine.low %v3718_v51, %v3722_v52  ;;  %v5380_v44 = vcombine.high %v3726_v60, %v3730_v18  ;;  %v5960_v51 = vld [vmem:[%s7823_s9 + $0x68] sm:$0xff]  }
 0x46a   :  { %v5382_v3 = vcombine.high %v3727_v61, %v3731_v63  ;;  %v5961_v52 = vld [vmem:[%s7823_s9 + $0xe8] sm:$0xff]  }
 0x46c   :  { %4073 = vmatpush1.bf16.msra.mxu1 %v5375_v42  ;;  %4114 = vmatpush1.bf16.msra.mxu0 %v5377_v9 }
 0x46d   :  { %4074 = vmatprep.subr.bf16.mxu1 %v5384_v1  ;;  %4115 = vmatprep.subr.bf16.mxu0 %v5386_v58  ;;  %v3738_v1 = vld [vmem:[%s7821_s7 + $0x7f0] sm:$0xff]  ;;  %v3735_v58 = vld [vmem:[%s7821_s7 + $0x7d8] sm:$0xff] }
 0x46e   :  { %v5388_v24 = vcombine.high %v3734_v8, %v3738_v1  ;;  %v5390_v59 = vcombine.high %v3735_v58, %v3739_v53  ;;  %v5387_v25 = vcombine.low %v3734_v8, %v3738_v1  ;;  %v5967_v1 = vld [vmem:[%s7823_s9 + $0xb0] sm:$0xff]  }
 0x470   :  { %4075 = vmatpush1.bf16.msra.mxu1 %v5383_v12  ;;  %4116 = vmatpush1.bf16.msra.mxu0 %v5385_v19  ;;  %v5379_v19 = vcombine.low %v3726_v60, %v3730_v18 }
 0x471   :  { %4142 = vmatprep.subr.bf16.mxu1 %v5332_v20  ;;  %4183 = vmatprep.subr.bf16.mxu0 %v5334_v15  ;;  %v5381_v20 = vcombine.low %v3727_v61, %v3731_v63 }
 0x473   :  { %4093 = vmatmul.mubr.bf16.vlgmr.msra.gmra.mrb[56].mxu1 %v7470_v7  ;;  %4134 = vmatmul.mubr.bf16.vlgmr.msra.gmra.mrb[92].mxu0 %v7470_v7 }
 0x474   :  { %4143 = vmatpush1.bf16.msra.mxu1 %v5331_v5  ;;  %4184 = vmatpush1.bf16.msra.mxu0 %v5333_v26  ;;  %v5389_v5 = vcombine.low %v3735_v58, %v3739_v53  ;;  %v5968_v58 = vld [vmem:[%s7823_s9 + $0x78] sm:$0xff]  }
 0x475   :  { %4144 = vmatprep.subr.bf16.mxu1 %v5340_v28  ;;  %4185 = vmatprep.subr.bf16.mxu0 %v5342_v0  ;;  %v5969_v53 = vld [vmem:[%s7823_s9 + $0xf8] sm:$0xff]  }
 0x476   :  { %4174 = vmatprep.mubr.bf16.mxu1 %v6028_v45  ;;  %4215 = vmatprep.mubr.bf16.mxu0 %v6028_v45  ;;  %v3711_v45 = vld [vmem:[%s7821_s7 + $0x718] sm:$0xff] }
 0x477   :  { %v5366_v62 = vcombine.high %v3711_v45, %v3715_v32  ;;  %v5365_v56 = vcombine.low %v3711_v45, %v3715_v32  ;;  %v5954_v45 = vld [vmem:[%s7823_s9 + $0x18] sm:$0xff]  }
 0x478   :  { %4145 = vmatpush1.bf16.msra.mxu1 %v5339_v34  ;;  %4186 = vmatpush1.bf16.msra.mxu0 %v5341_v35  ;;  %v5940_v35 = vld [vmem:[%s7823_s9 + $0x40] sm:$0xff]   ;;  %v5955_v32 = vld [vmem:[%s7823_s9 + $0x98] sm:$0xff]  }
 0x479   :  { %4146 = vmatprep.subr.bf16.mxu1 %v5348_v14  ;;  %4187 = vmatprep.subr.bf16.mxu0 %v5350_v38  ;;  %v5942_v14 = vld [vmem:[%s7823_s9] sm:$0xff]  }
 0x47a   :  { %v5943_v38 = vld [vmem:[%s7823_s9 + $0x80] sm:$0xff]  }
 0x47c   :  { %4147 = vmatpush1.bf16.msra.mxu1 %v5347_v43  ;;  %4188 = vmatpush1.bf16.msra.mxu0 %v5349_v13  ;;  %v5948_v43 = vld [vmem:[%s7823_s9 + $0x50] sm:$0xff]  }
 0x47d   :  { %4148 = vmatprep.subr.bf16.mxu1 %v5356_v37  ;;  %4189 = vmatprep.subr.bf16.mxu0 %v5358_v30  ;;  %v5949_v13 = vld [vmem:[%s7823_s9 + $0xd0] sm:$0xff]  }
 0x47e   :  { %v5950_v37 = vld [vmem:[%s7823_s9 + $0x10] sm:$0xff]  }
 0x47f   :  { %v5951_v30 = vld [vmem:[%s7823_s9 + $0x90] sm:$0xff]  }
 0x480   :  { %4149 = vmatpush1.bf16.msra.mxu1 %v5355_v49  ;;  %4190 = vmatpush1.bf16.msra.mxu0 %v5357_v36  ;;  %v5956_v49 = vld [vmem:[%s7823_s9 + $0x60] sm:$0xff]  }
 0x481   :  { %4150 = vmatprep.subr.bf16.mxu1 %v5364_v50  ;;  %4191 = vmatprep.subr.bf16.mxu0 %v5366_v62  ;;  %v5957_v36 = vld [vmem:[%s7823_s9 + $0xe0] sm:$0xff]  }
 0x482   :  { %v5958_v50 = vld [vmem:[%s7823_s9 + $0x20] sm:$0xff]  }
 0x483   :  { %v5959_v62 = vld [vmem:[%s7823_s9 + $0xa0] sm:$0xff]  }
 0x484   :  { %4151 = vmatpush1.bf16.msra.mxu1 %v5363_v2  ;;  %4192 = vmatpush1.bf16.msra.mxu0 %v5365_v56 }
 0x485   :  { %4152 = vmatprep.subr.bf16.mxu1 %v5372_v57  ;;  %4193 = vmatprep.subr.bf16.mxu0 %v5374_v27 }
 0x486   :  { %v7539_v42 = vpop.f32.mrb[32].mxu1  ;;  %v7541_v9 = vpop.f32.mrb[68].mxu0 }
 0x487   :  { %v7552_v10 = vpop.f32.mrb[33].mxu1  ;;  %v7554_v11 = vpop.f32.mrb[69].mxu0 }
 0x488   :  { %4153 = vmatpush1.bf16.msra.mxu1 %v5371_v4  ;;  %4194 = vmatpush1.bf16.msra.mxu0 %v5373_v6  ;;  %v2498_v16 = vpop.f32.mrb[34].mxu1  ;;  %v2539_v12 = vpop.f32.mrb[70].mxu0 }
 0x489   :  { %v2499_v15 = vpop.f32.mrb[35].mxu1  ;;  %v2540_v23 = vpop.f32.mrb[71].mxu0  ;;  %4154 = vmatprep.subr.bf16.mxu1 %v5380_v44  ;;  %4195 = vmatprep.subr.bf16.mxu0 %v5382_v3  ;;  %v5964_v44 = vld [vmem:[%s7823_s9 + $0x70] sm:$0xff]   ;;  %v5972_v16 = vld [vmem:[%s7823_s9 + $0x140] sm:$0xff]  }
 0x48a   :  { %v5965_v3 = vld [vmem:[%s7823_s9 + $0xf0] sm:$0xff]   ;;  %v5973_v12 = vld [vmem:[%s7823_s9 + $0x1c0] sm:$0xff]  }
 0x48c   :  { %4155 = vmatpush1.bf16.msra.mxu1 %v5379_v19  ;;  %4196 = vmatpush1.bf16.msra.mxu0 %v5381_v20 }
 0x48d   :  { %4156 = vmatprep.subr.bf16.mxu1 %v5388_v24  ;;  %4197 = vmatprep.subr.bf16.mxu0 %v5390_v59 }
 0x490   :  { %4157 = vmatpush1.bf16.msra.mxu1 %v5387_v25  ;;  %4198 = vmatpush1.bf16.msra.mxu0 %v5389_v5 }
 0x491   :  { %5689 = vmatprep.subr.bf16.mxu1 %v5940_v35 }
 0x493   :  { %4175 = vmatmul.mubr.bf16.vlgmr.msra.gmra.mrb[60].mxu1 %v7470_v7  ;;  %4216 = vmatmul.mubr.bf16.vlgmr.msra.gmra.mrb[96].mxu0 %v7470_v7  ;;  %v5941_v7 = vld [vmem:[%s7823_s9 + $0xc0] sm:$0xff]  }
 0x494   :  { %5711 = vmatprep.subr.bf16.mxu0 %v5941_v7  ;;  %5690 = vmatpush3.bf16.msra.mxu1 %v5942_v14 }
 0x495   :  { %5712 = vmatpush3.bf16.msra.mxu0 %v5943_v38  ;;  %5691 = vmatprep.subr.bf16.mxu1 %v5944_v39 }
 0x496   :  { %5713 = vmatprep.subr.bf16.mxu0 %v5945_v46 }
 0x498   :  { %5692 = vmatpush3.bf16.msra.mxu1 %v5946_v40 }
 0x499   :  { %5714 = vmatpush3.bf16.msra.mxu0 %v5947_v41  ;;  %5693 = vmatprep.subr.bf16.mxu1 %v5948_v43 }
 0x49a   :  { %5715 = vmatprep.subr.bf16.mxu0 %v5949_v13 }
 0x49c   :  { %5694 = vmatpush3.bf16.msra.mxu1 %v5950_v37 }
 0x49d   :  { %5716 = vmatpush3.bf16.msra.mxu0 %v5951_v30  ;;  %5695 = vmatprep.subr.bf16.mxu1 %v5952_v47 }
 0x49e   :  { %5717 = vmatprep.subr.bf16.mxu0 %v5953_v48 }
 0x4a0   :  { %5696 = vmatpush3.bf16.msra.mxu1 %v5954_v45 }
 0x4a1   :  { %5718 = vmatpush3.bf16.msra.mxu0 %v5955_v32  ;;  %5697 = vmatprep.subr.bf16.mxu1 %v5956_v49 }
 0x4a2   :  { %5719 = vmatprep.subr.bf16.mxu0 %v5957_v36 }
 0x4a4   :  { %5698 = vmatpush3.bf16.msra.mxu1 %v5958_v50 }
 0x4a5   :  { %5720 = vmatpush3.bf16.msra.mxu0 %v5959_v62  ;;  %5699 = vmatprep.subr.bf16.mxu1 %v5960_v51  ;;  %v4244_v51 = vsub.s32 2, %v6298_v22 }
 0x4a6   :  { %v7558_v26 = vpop.f32.mrb[36].mxu1  ;;  %v7560_v28 = vpop.f32.mrb[72].mxu0  ;;  %5721 = vmatprep.subr.bf16.mxu0 %v5961_v52  ;;  %v7688_v52 = vld [vmem:[%s7822_s8] sm:$0xff] }
 0x4a7   :  { %v7562_v0 = vpop.f32.mrb[37].mxu1  ;;  %v7564_v21 = vpop.f32.mrb[73].mxu0 }
 0x4a8   :  { %v2580_v31 = vpop.f32.mrb[38].mxu1  ;;  %v2621_v33 = vpop.f32.mrb[74].mxu0  ;;  %5700 = vmatpush3.bf16.msra.mxu1 %v5962_v54  ;;  %v4240_v54 = vsub.s32 1, %v6298_v22 }
 0x4a9   :  { %v2581_v17 = vpop.f32.mrb[39].mxu1  ;;  %v2622_v34 = vpop.f32.mrb[75].mxu0  ;;  %5722 = vmatpush3.bf16.msra.mxu0 %v5963_v55  ;;  %5701 = vmatprep.subr.bf16.mxu1 %v5964_v44  ;;  %v4248_v55 = vsub.s32 3, %v6298_v22 }
 0x4aa   :  { %5723 = vmatprep.subr.bf16.mxu0 %v5965_v3 }
 0x4ad   :  { %5724 = vmatpush3.bf16.msra.mxu0 %v5967_v1 }
 0x4ae   :  { %5725 = vmatprep.subr.bf16.mxu0 %v5969_v53 }
 0x4c6   :  { %v2978_v2 = vpop.f32.mrb[40].mxu1  ;;  %v3019_v56 = vpop.f32.mrb[76].mxu0 }
 0x4c7   :  { %v2979_v57 = vadd.f32 %v2978_v2, %v7539_v42  ;;  %v3020_v27 = vadd.f32 %v3019_v56, %v7541_v9  ;;  %v2980_v60 = vpop.f32.mrb[41].mxu1  ;;  %v3021_v18 = vpop.f32.mrb[77].mxu0  ;;  %v5966_v9 = vld [vmem:[%s7823_s9 + $0x30] sm:$0xff]   ;;  %v4237_v2 = vrot.slane %v7688_v52, %v6305_v29  ;;  %v4245_v56 = vrot.slane %v7688_v52, %v4244_v51 }
 0x4c8   :  { %v2981_v61 = vadd.f32 %v2980_v60, %v7552_v10  ;;  %v3022_v63 = vadd.f32 %v3021_v18, %v7554_v11  ;;  %v2982_v4 = vpop.f32.mrb[42].mxu1  ;;  %v3023_v6 = vpop.f32.mrb[78].mxu0  ;;  %5702 = vmatpush3.bf16.msra.mxu1 %v5966_v9  ;;  %v5970_v10 = vld [vmem:[%s7823_s9 + $0x38] sm:$0xff]   ;;  %v4241_v60 = vrot.slane %v7688_v52, %v4240_v54  ;;  %v4249_v18 = vrot.slane %v7688_v52, %v4248_v55  ;;  %v5997_v51 = vld [vmem:[%s7823_s9 + $0x1f0] sm:$0xff]  }
 0x4c9   :  { %v2983_v8 = vpop.f32.mrb[43].mxu1  ;;  %v3024_v42 = vpop.f32.mrb[79].mxu0  ;;  %v5971_v11 = vld [vmem:[%s7823_s9 + $0xb8] sm:$0xff]   ;;  %5703 = vmatprep.subr.bf16.mxu1 %v5968_v58 }
 0x4ca   :  { %5726 = vmatpush3.bf16.msra.mxu0 %v5971_v11 }
 0x4cb   :  { %5755 = vmatprep.subr.bf16.mxu0 %v5973_v12 }
 0x4cc   :  { %5704 = vmatpush3.bf16.msra.mxu1 %v5970_v10 }
 0x4cd   :  { %5733 = vmatprep.subr.bf16.mxu1 %v5972_v16 }
 0x4e6   :  { %v3060_v19 = vpop.f32.mrb[44].mxu1  ;;  %v3101_v20 = vpop.f32.mrb[80].mxu0 }
 0x4e7   :  { %v3061_v15 = vadd.f32 %v3060_v19, %v7558_v26  ;;  %v3102_v23 = vadd.f32 %v3101_v20, %v7560_v28  ;;  %v3062_v24 = vpop.f32.mrb[45].mxu1  ;;  %v3103_v59 = vpop.f32.mrb[81].mxu0 }
 0x4e8   :  { %v3063_v25 = vadd.f32 %v3062_v24, %v7562_v0  ;;  %v3104_v5 = vadd.f32 %v3103_v59, %v7564_v21  ;;  %v3064_v31 = vpop.f32.mrb[46].mxu1  ;;  %v3105_v33 = vpop.f32.mrb[82].mxu0  ;;  %v5975_v24 = vld [vmem:[%s7823_s9 + $0x180] sm:$0xff]  }
 0x4e9   :  { %v3065_v17 = vpop.f32.mrb[47].mxu1  ;;  %v3106_v34 = vpop.f32.mrb[83].mxu0  ;;  %v5977_v31 = vld [vmem:[%s7823_s9 + $0x1c8] sm:$0xff]  }
 0x4ea   :  { %v5978_v33 = vld [vmem:[%s7823_s9 + $0x108] sm:$0xff]   ;;  %v5980_v34 = vld [vmem:[%s7823_s9 + $0x150] sm:$0xff]  }
 0x4eb   :  { %v5979_v17 = vld [vmem:[%s7823_s9 + $0x188] sm:$0xff]  }
 0x506   :  { %v3532_v35 = vpop.f32.mrb[48].mxu1  ;;  %v3573_v7 = vpop.f32.mrb[84].mxu0 }
 0x507   :  { %v3662_v14 = vadd.f32 %v3532_v35, %v2979_v57  ;;  %v3664_v38 = vadd.f32 %v3573_v7, %v3020_v27  ;;  %v3534_v39 = vpop.f32.mrb[49].mxu1  ;;  %v3575_v46 = vpop.f32.mrb[85].mxu0  ;;  %v5981_v35 = vld [vmem:[%s7823_s9 + $0x1d0] sm:$0xff]  }
 0x508   :  { %v3663_v40 = vadd.f32 %v3534_v39, %v2981_v61  ;;  %v3665_v26 = vadd.f32 %v3575_v46, %v3022_v63  ;;  %v3536_v41 = vpop.f32.mrb[50].mxu1  ;;  %v3577_v28 = vpop.f32.mrb[86].mxu0  ;;  %v5982_v7 = vld [vmem:[%s7823_s9 + $0x110] sm:$0xff]   ;;  %v5985_v39 = vld [vmem:[%s7823_s9 + $0x1d8] sm:$0xff]  }
 0x509   :  { %v3537_v43 = vpop.f32.mrb[51].mxu1  ;;  %v3578_v13 = vpop.f32.mrb[87].mxu0  ;;  %v5986_v46 = vld [vmem:[%s7823_s9 + $0x118] sm:$0xff]   ;;  %v5989_v41 = vld [vmem:[%s7823_s9 + $0x1e0] sm:$0xff]  }
 0x50a   :  { %v5990_v28 = vld [vmem:[%s7823_s9 + $0x120] sm:$0xff]   ;;  %v5992_v13 = vld [vmem:[%s7823_s9 + $0x168] sm:$0xff]  }
 0x50b   :  { %v5991_v43 = vld [vmem:[%s7823_s9 + $0x1a0] sm:$0xff]  }
 0x526   :  { %v3614_v37 = vpop.f32.mrb[52].mxu1  ;;  %v3655_v0 = vpop.f32.mrb[88].mxu0 }
 0x527   :  { %v7676_v30 = vadd.f32 %v3614_v37, %v3061_v15  ;;  %v7678_v21 = vadd.f32 %v3655_v0, %v3102_v23  ;;  %v3616_v47 = vpop.f32.mrb[53].mxu1  ;;  %v3657_v48 = vpop.f32.mrb[89].mxu0  ;;  %v5974_v23 = vld [vmem:[%s7823_s9 + $0x100] sm:$0xff]   ;;  %v5993_v37 = vld [vmem:[%s7823_s9 + $0x1e8] sm:$0xff]   ;;  %v4252_v0 = vsub.s32 4, %v6298_v22 }
 0x528   :  { %v7680_v45 = vadd.f32 %v3616_v47, %v3063_v25  ;;  %v7682_v32 = vadd.f32 %v3657_v48, %v3104_v5  ;;  %v3618_v49 = vpop.f32.mrb[54].mxu1  ;;  %v3659_v36 = vpop.f32.mrb[90].mxu0  ;;  %v5976_v5 = vld [vmem:[%s7823_s9 + $0x148] sm:$0xff]   ;;  %v4260_v47 = vsub.s32 6, %v6298_v22 }
 0x529   :  { %v3619_v50 = vpop.f32.mrb[55].mxu1  ;;  %v3660_v62 = vpop.f32.mrb[91].mxu0  ;;  %v5994_v48 = vld [vmem:[%s7823_s9 + $0x128] sm:$0xff]   ;;  %v4256_v36 = vsub.s32 5, %v6298_v22  ;;  %v4253_v54 = vrot.slane %v7688_v52, %v4252_v0 }
 0x52a   :  { %v5995_v49 = vld [vmem:[%s7823_s9 + $0x1a8] sm:$0xff]   ;;  %v4264_v50 = vsub.s32 7, %v6298_v22  ;;  %v5996_v62 = vld [vmem:[%s7823_s9 + $0x170] sm:$0xff]   ;;  %v4261_v55 = vrot.slane %v7688_v52, %v4260_v47 }
 0x52b   :  { %v4257_v22 = vrot.slane %v7688_v52, %v4256_v36 }
 0x546   :  { %v4094_v57 = vpop.f32.mrb[56].mxu1  ;;  %v4135_v27 = vpop.f32.mrb[92].mxu0 }
 0x547   :  { %v4224_v61 = vadd.f32 %v4094_v57, %v3662_v14  ;;  %v4226_v63 = vadd.f32 %v4135_v27, %v3664_v38  ;;  %v4096_v4 = vpop.f32.mrb[57].mxu1  ;;  %v4137_v6 = vpop.f32.mrb[93].mxu0  ;;  %v5983_v14 = vld [vmem:[%s7823_s9 + $0x190] sm:$0xff]   ;;  %v5984_v38 = vld [vmem:[%s7823_s9 + $0x158] sm:$0xff]   ;;  %v4265_v57 = vrot.slane %v7688_v52, %v4264_v50 }
 0x548   :  { %v4225_v44 = vadd.f32 %v4096_v4, %v3663_v40  ;;  %v4227_v3 = vadd.f32 %v4137_v6, %v3665_v26  ;;  %v4098_v8 = vpop.f32.mrb[58].mxu1  ;;  %v4139_v42 = vpop.f32.mrb[94].mxu0  ;;  %v5987_v40 = vld [vmem:[%s7823_s9 + $0x198] sm:$0xff]   ;;  %v5988_v26 = vld [vmem:[%s7823_s9 + $0x160] sm:$0xff]   ;;  %v5998_v27 = vld [vmem:[%s7823_s9 + $0x130] sm:$0xff]  }
 0x549   :  { %v4274_v9 = vadd.f32 %v4237_v2, %v4224_v61  ;;  %v4276_v1 = vadd.f32 %v4245_v56, %v4226_v63  ;;  %v4099_v58 = vpop.f32.mrb[59].mxu1  ;;  %v4140_v29 = vpop.f32.mrb[95].mxu0  ;;  %v6000_v52 = vld [vmem:[%s7823_s9 + $0x178] sm:$0xff]  }
 0x54a   :  { %v4275_v53 = vadd.f32 %v4241_v60, %v4225_v44  ;;  %v4277_v10 = vadd.f32 %v4249_v18, %v4227_v3  ;;  %v5999_v60 = vld [vmem:[%s7823_s9 + $0x1b0] sm:$0xff]   ;;  %v6001_v6 = vld [vmem:[%s7823_s9 + $0x1f8] sm:$0xff]  }
 0x54b   :  { %v4282_v11 = vmax.f32 %v4274_v9, 0.0  ;;  %v4284_v16 = vmax.f32 %v4276_v1, 0.0 }
 0x54c   :  { %v4283_v12 = vmax.f32 %v4275_v53, 0.0  ;;  %v4285_v19 = vmax.f32 %v4277_v10, 0.0  ;;  %v6002_v53 = vld [vmem:[%s7823_s9 + $0x138] sm:$0xff]  }
 0x54d   :  { %v4290_v59 = vpack.c.bf16 %v4282_v11, %v4282_v11  ;;  %v4292_v25 = vpack.c.bf16 %v4284_v16, %v4284_v16 }
 0x54e   :  { %v4291_v20 = vpack.c.bf16 %v4283_v12, %v4283_v12  ;;  %v4293_v15 = vpack.c.bf16 %v4285_v19, %v4285_v19 }
 0x550   :  { %4849 = vmatprep.mubr.bf16.mxu1 %v4291_v20  ;;  %4889 = vmatprep.mubr.bf16.mxu0 %v4293_v15 }
 0x551   :  { %4850 = vmatmul.mubr.bf16.vlgmr.msra.gmra.mrb[64].mxu1 %v4290_v59  ;;  %4890 = vmatmul.mubr.bf16.vlgmr.msra.gmra.mrb[100].mxu0 %v4292_v25  ;;  %v5391_v59 = vld [vmem:[%s7824_s10] ss:$0 sm:$0xff]  ;;  %s6031_s10 = smov 127  }
 0x552   :  { %5734 = vmatpush3.bf16.msra.mxu1 %v5974_v23  ;;  %5756 = vmatpush3.bf16.msra.mxu0 %v5975_v24 }
 0x553   :  { %5735 = vmatprep.subr.bf16.mxu1 %v5976_v5  ;;  %5757 = vmatprep.subr.bf16.mxu0 %v5977_v31 }
 0x556   :  { %5736 = vmatpush3.bf16.msra.mxu1 %v5978_v33  ;;  %5758 = vmatpush3.bf16.msra.mxu0 %v5979_v17 }
 0x557   :  { %5737 = vmatprep.subr.bf16.mxu1 %v5980_v34  ;;  %5759 = vmatprep.subr.bf16.mxu0 %v5981_v35 }
 0x55a   :  { %5738 = vmatpush3.bf16.msra.mxu1 %v5982_v7  ;;  %5760 = vmatpush3.bf16.msra.mxu0 %v5983_v14 }
 0x55b   :  { %5739 = vmatprep.subr.bf16.mxu1 %v5984_v38  ;;  %5761 = vmatprep.subr.bf16.mxu0 %v5985_v39 }
 0x55e   :  { %5740 = vmatpush3.bf16.msra.mxu1 %v5986_v46  ;;  %5762 = vmatpush3.bf16.msra.mxu0 %v5987_v40 }
 0x55f   :  { %5741 = vmatprep.subr.bf16.mxu1 %v5988_v26  ;;  %5763 = vmatprep.subr.bf16.mxu0 %v5989_v41 }
 0x562   :  { %5742 = vmatpush3.bf16.msra.mxu1 %v5990_v28  ;;  %5764 = vmatpush3.bf16.msra.mxu0 %v5991_v43 }
 0x563   :  { %5743 = vmatprep.subr.bf16.mxu1 %v5992_v13  ;;  %5765 = vmatprep.subr.bf16.mxu0 %v5993_v37 }
 0x566   :  { %v4176_v2 = vpop.f32.mrb[60].mxu1  ;;  %v4217_v56 = vpop.f32.mrb[96].mxu0  ;;  %5744 = vmatpush3.bf16.msra.mxu1 %v5994_v48  ;;  %5766 = vmatpush3.bf16.msra.mxu0 %v5995_v49 }
 0x567   :  { %v4228_v18 = vadd.f32 %v4176_v2, %v7676_v30  ;;  %v4230_v61 = vadd.f32 %v4217_v56, %v7678_v21  ;;  %v4178_v63 = vpop.f32.mrb[61].mxu1  ;;  %v4219_v4 = vpop.f32.mrb[97].mxu0  ;;  %5745 = vmatprep.subr.bf16.mxu1 %v5996_v62  ;;  %5767 = vmatprep.subr.bf16.mxu0 %v5997_v51 }
 0x568   :  { %v4229_v44 = vadd.f32 %v4178_v63, %v7680_v45  ;;  %v4231_v3 = vadd.f32 %v4219_v4, %v7682_v32  ;;  %v4180_v8 = vpop.f32.mrb[62].mxu1  ;;  %v4221_v30 = vpop.f32.mrb[98].mxu0  ;;  %v6003_v45 = vld [vmem:[%s7823_s9 + $0x1b8] sm:$0xff]  }
 0x569   :  { %v4278_v42 = vadd.f32 %v4253_v54, %v4228_v18  ;;  %v4280_v21 = vadd.f32 %v4261_v55, %v4230_v61  ;;  %v4181_v9 = vpop.f32.mrb[63].mxu1  ;;  %v4222_v1 = vpop.f32.mrb[99].mxu0 }
 0x56a   :  { %v4279_v58 = vadd.f32 %v4257_v22, %v4229_v44  ;;  %v4281_v29 = vadd.f32 %v4265_v57, %v4231_v3  ;;  %5746 = vmatpush3.bf16.msra.mxu1 %v5998_v27  ;;  %5768 = vmatpush3.bf16.msra.mxu0 %v5999_v60 }
 0x56b   :  { %v4286_v10 = vmax.f32 %v4278_v42, 0.0  ;;  %v4288_v32 = vmax.f32 %v4280_v21, 0.0  ;;  %5747 = vmatprep.subr.bf16.mxu1 %v6000_v52  ;;  %5769 = vmatprep.subr.bf16.mxu0 %v6001_v6 }
 0x56c   :  { %v4287_v11 = vmax.f32 %v4279_v58, 0.0  ;;  %v4289_v16 = vmax.f32 %v4281_v29, 0.0 }
 0x56d   :  { %v4294_v20 = vpack.c.bf16 %v4286_v10, %v4286_v10  ;;  %v4296_v15 = vpack.c.bf16 %v4288_v32, %v4288_v32 }
 0x56e   :  { %v4295_v12 = vpack.c.bf16 %v4287_v11, %v4287_v11  ;;  %v4297_v19 = vpack.c.bf16 %v4289_v16, %v4289_v16  ;;  %5748 = vmatpush3.bf16.msra.mxu1 %v6002_v53  ;;  %5770 = vmatpush3.bf16.msra.mxu0 %v6003_v45 }
 0x570   :  { %4929 = vmatprep.mubr.bf16.mxu1 %v4295_v12  ;;  %4969 = vmatprep.mubr.bf16.mxu0 %v4297_v19 }
 0x571   :  { %4930 = vmatmul.mubr.bf16.vlgmr.msra.gmra.mrb[68].mxu1 %v4294_v20  ;;  %4970 = vmatmul.mubr.bf16.vlgmr.msra.gmra.mrb[104].mxu0 %v4296_v15 }
 0x624   :  { %v5705_v23 = vpop.f32.mrb[64].mxu1  ;;  %v5727_v24 = vpop.f32.mrb[100].mxu0 }
 0x625   :  { %v5706_v25 = vpop.f32.mrb[65].mxu1  ;;  %v5728_v5 = vpop.f32.mrb[101].mxu0 }
 0x626   :  { %v5707_v31 = vadd.f32 %v5706_v25, %v5705_v23  ;;  %v5729_v33 = vadd.f32 %v5728_v5, %v5727_v24  ;;  %v5708_v17 = vpop.f32.mrb[66].mxu1  ;;  %v5730_v34 = vpop.f32.mrb[102].mxu0 }
 0x627   :  { %v5709_v35 = vpop.f32.mrb[67].mxu1  ;;  %v5731_v7 = vpop.f32.mrb[103].mxu0 }
 0x628   :  { %v4852_v14 = vadd.f32 %v5707_v31, %v5391_v59 }
 0x62a   :  { %v4892_v38 = vadd.f32 %v5729_v33, %v4852_v14 }
 0x644   :  { %v5749_v39 = vpop.f32.mrb[68].mxu1  ;;  %v5771_v46 = vpop.f32.mrb[104].mxu0 }
 0x645   :  { %v5750_v40 = vpop.f32.mrb[69].mxu1  ;;  %v5772_v26 = vpop.f32.mrb[105].mxu0 }
 0x646   :  { %v5751_v41 = vadd.f32 %v5750_v40, %v5749_v39  ;;  %v5773_v28 = vadd.f32 %v5772_v26, %v5771_v46  ;;  %v5752_v43 = vpop.f32.mrb[70].mxu1  ;;  %v5774_v13 = vpop.f32.mrb[106].mxu0 }
 0x647   :  { %v5753_v37 = vpop.f32.mrb[71].mxu1  ;;  %v5775_v0 = vpop.f32.mrb[107].mxu0 }
 0x648   :  { %v4932_v47 = vadd.f32 %v5751_v41, %v4892_v38 }
 0x64a   :  { %v4972_v48 = vadd.f32 %v5773_v28, %v4932_v47 }
 0x64c   :  { %4979 = vperm.xlu1 %5802, %v4972_v48   ;;  %4983 = vrot.lane.b32.xlu0 %v4972_v48, %s6031_s10 }
 0x6be   :  { %v4984_v49 = vpop.permute.xlu0 %4983 }
 0x6bf   :  { %v4987_v36 = vsel %vm4986_vm4, %v4984_v49, 0.0 }
 0x6c0   :  { %4988 = vadd.xlane.f32.xlu0 %v4987_v36 }
 0x6cb   :  { %v4980_v50 = vpop.permute.xlu1 %4979 }
 0x6cc   :  { %v4982_v51 = vadd.f32 %v4980_v50, %v4972_v48 }
 0x74d   :  { %v4989_v62 = vpop.xlane.xlu0 %4988 }
 0x74e   :  { %v4991_v54 = vmul.f32 0.16666667, %v4989_v62 }
 0x750   :  { %v4992_v55 = vsub.f32 %v4982_v51, %v4991_v54 }
 0x752   :  { %4994 = vrot.lane.b32.xlu1 %v4992_v55, %s6031_s10 }
 0x7c4   :  { %v4995_v2 = vpop.permute.xlu1 %4994 }
 0x7c5   :  { %4997 = vst.msk [vmem:[#allocation6] sm:$0x3] %vm4986_vm4, %v4995_v2 }
 0x7c6   :  { %6015 = shalt.err (!%p6012_p4)
}
 0x7c7   :  { %s6016_s1 = scalar_lea.hbm %s7825_s11, 32 }
 0x7c8   :  { %p6017_p5 = scmp.ne.s32.totalorder %s7825_s11, %s6016_s1  ;;  %p6020_p6 = scmp.lt.u32.totalorder %s6016_s1, %s7825_s11 }
 0x7ca   :  { %p6022_p7 = pnand %p6020_p6, %p6017_p5 }
 0x7cc   :  { %6025 = shalt.err (!%p6022_p7)
}
 0x7cd   :  { %5007 = dma.vmem_to_hbm [thread:$0]  %s5005_s18, 32, %s7825_s11, [#allocation7]  }
 0x7ce   :  { %6026 = dma.done.wait [#allocation7], 32  }
 0x7cf   :  { %6027 = vsyncadd [#allocation7], 4294967264 }
 0x7d0   :  { %5011 = vsyncpa [#allocation7], 1 }

</bundles_post_ra>
